<compile_context>
chip_gen: v7x
topology: tpu7x:2x2x1
jax: 0.10.0
libtpu: 0.0.40
codegen_flags: <defaults>
</compile_context>

<pallas_src>
import functools

import jax
import jax.numpy as jnp
from jax.experimental import pallas as pl
from jax.experimental.pallas import tpu as pltpu


def _nerf_mlp_kernel(x_ref,
                     w00, b00, w01, b01, w02, b02, w03, b03,
                     w10a, w10b, b10, w11, b11, w12, b12, w13, b13,
                     wf, bf, wra, wrb, br, wrgb, brgb,
                     out_ref):
    f32 = jnp.float32
    x = x_ref[...]                       # (T, Pin+Din), f32
    xc = x.astype(w00.dtype)             # cast once; reused by all skip matmuls

    def mm(a, w_ref):
        # MXU matmul: bf16 (or f32) operands, f32 accumulation.
        return jnp.dot(a.astype(w_ref.dtype), w_ref[...],
                       preferred_element_type=f32)

    def linear_relu(a, w_ref, b_ref):
        return jnp.maximum(mm(a, w_ref) + b_ref[...], 0.0)

    # layers0: 4 x (Linear + ReLU)
    h = linear_relu(xc, w00, b00)
    h = linear_relu(h, w01, b01)
    h = linear_relu(h, w02, b02)
    h = linear_relu(h, w03, b03)

    # layers1[0]: Linear(D + pos_in, D) on cat([h, pos]) == h@w10a + x@w10b_pad
    h = jnp.maximum(mm(h, w10a) + mm(xc, w10b) + b10[...], 0.0)
    h = linear_relu(h, w11, b11)
    h = linear_relu(h, w12, b12)
    h = linear_relu(h, w13, b13)

    # fc_feature: Linear(D, D), no ReLU
    feat = mm(h, wf) + bf[...]

    # rgb_layers: Linear(D + dir_in, D//2) on cat([feat, dir]) + ReLU
    h2 = jnp.maximum(mm(feat, wra) + mm(xc, wrb) + br[...], 0.0)

    # fc_rgb: Linear(D//2, 1) done on the VPU/XLU (no N=1 MXU pass).
    rgb = jnp.sum(h2 * wrgb[...], axis=-1, keepdims=True) + brgb[...]
    out_ref[...] = rgb.astype(out_ref.dtype)


def _resident_spec(shape):
    """Full-array BlockSpec with a constant index map (stays in VMEM)."""
    zeros = (0,) * len(shape)
    return pl.BlockSpec(shape, lambda i: zeros)


@functools.partial(jax.jit, static_argnames=("row_tile", "use_bf16"))
def official_nerf_forward(params, pos_enc, dir_enc, *,
                          row_tile: int = 2048, use_bf16: bool = True):
    """Pallas forward for OfficialNerf.

    pos_enc: (H, W, N_sample, pos_in_dims)
    dir_enc: (H, W, N_sample, dir_in_dims)
    returns: (H, W, N_sample, 1)
    """
    # TODO(synk): the `dir_enc is None` branch of the reference forward is not
    # implemented; dir_enc is required here.
    H, W, N, Pin = pos_enc.shape
    Din = dir_enc.shape[-1]
    D = params["w01"].shape[0]
    dtype = pos_enc.dtype
    R = H * W * N
    Kin = Pin + Din

    # Clamp the tile so tiny inputs do not over-pad; keep a multiple of 256.
    r_cap = pl.cdiv(R, 256) * 256
    row_tile = max(256, min(int(row_tile), r_cap))
    row_tile = (row_tile // 256) * 256
    Rp = pl.cdiv(R, row_tile) * row_tile

    # Single fused input stream (pos || dir), padded to the tile boundary.
    x2d = jnp.concatenate(
        [pos_enc.reshape(R, Pin), dir_enc.reshape(R, Din)], axis=-1)
    if Rp != R:
        x2d = jnp.pad(x2d, ((0, Rp - R), (0, 0)))

    p = params
    f32 = jnp.float32
    mm_dtype = jnp.bfloat16 if use_bf16 else dtype

    # Zero-pad the skip-connection weights so they consume the fused input:
    #   pos @ w00  == x @ [[w00 ], [0  ]]
    #   pos @ w10b == x @ [[w10b], [0  ]]
    #   dir @ wrb  == x @ [[0   ], [wrb]]
    w00p = jnp.concatenate([p["w00"], jnp.zeros((Din, D), p["w00"].dtype)], 0)
    w10bp = jnp.concatenate([p["w10b"], jnp.zeros((Din, D), p["w10b"].dtype)], 0)
    wrbp = jnp.concatenate([jnp.zeros((Pin, D // 2), p["wrb"].dtype), p["wrb"]], 0)

    def mx(w):  # MXU-operand dtype (bf16 on all gens; f32 if disabled)
        return w.astype(mm_dtype)

    weights = [
        mx(w00p), p["b00"].astype(f32),
        mx(p["w01"]), p["b01"].astype(f32),
        mx(p["w02"]), p["b02"].astype(f32),
        mx(p["w03"]), p["b03"].astype(f32),
        mx(p["w10a"]), mx(w10bp), p["b10"].astype(f32),
        mx(p["w11"]), p["b11"].astype(f32),
        mx(p["w12"]), p["b12"].astype(f32),
        mx(p["w13"]), p["b13"].astype(f32),
        mx(p["wf"]), p["bf"].astype(f32),
        mx(p["wra"]), mx(wrbp), p["br"].astype(f32),
        p["wrgb"].reshape(1, D // 2).astype(f32),   # VPU path stays f32
        p["brgb"].reshape(1, 1).astype(f32),
    ]

    grid = (Rp // row_tile,)
    in_specs = ([pl.BlockSpec((row_tile, Kin), lambda i: (i, 0))]
                + [_resident_spec(w.shape) for w in weights])

    cp_kwargs = dict(dimension_semantics=("parallel",))
    if row_tile >= 1024:
        # Large tiles need more scoped VMEM than the per-generation default;
        # 48 MiB keeps headroom even on v7x's 64 MiB physical VMEM.
        cp_kwargs["vmem_limit_bytes"] = 48 * 1024 * 1024

    out2d = pl.pallas_call(
        _nerf_mlp_kernel,
        out_shape=jax.ShapeDtypeStruct((Rp, 1), dtype),
        grid=grid,
        in_specs=in_specs,
        out_specs=pl.BlockSpec((row_tile, 1), lambda i: (i, 0)),
        compiler_params=pltpu.CompilerParams(**cp_kwargs),
    )(x2d, *weights)

    return out2d[:R].reshape(H, W, N, 1)


def official_nerf_reference(params, pos_enc, dir_enc, use_bf16=True):
    """Pure-JAX reference mirroring the PyTorch forward (explicit concats).

    With use_bf16=True it applies the same mixed-precision policy as the
    kernel (bf16 matmul operands, f32 accumulation, f32 elementwise).
    """
    p = params
    relu = jax.nn.relu
    cdt = jnp.bfloat16 if use_bf16 else pos_enc.dtype

    def lin(x, w, b):
        return jnp.dot(x.astype(cdt), w.astype(cdt),
                       preferred_element_type=jnp.float32) + b

    x = relu(lin(pos_enc, p["w00"], p["b00"]))
    x = relu(lin(x, p["w01"], p["b01"]))
    x = relu(lin(x, p["w02"], p["b02"]))
    x = relu(lin(x, p["w03"], p["b03"]))
    x = jnp.concatenate([x, pos_enc], axis=-1)
    w10 = jnp.concatenate([p["w10a"], p["w10b"]], axis=0)
    x = relu(lin(x, w10, p["b10"]))
    x = relu(lin(x, p["w11"], p["b11"]))
    x = relu(lin(x, p["w12"], p["b12"]))
    x = relu(lin(x, p["w13"], p["b13"]))
    feat = lin(x, p["wf"], p["bf"])
    x = jnp.concatenate([feat, dir_enc], axis=-1)
    wr = jnp.concatenate([p["wra"], p["wrb"]], axis=0)
    x = relu(lin(x, wr, p["br"]))
    # fc_rgb stays f32, matching the kernel's VPU path.
    return jnp.dot(x, p["wrgb"]) + p["brgb"]


def init_nerf_params(key, pos_in_dims, dir_in_dims, D, dtype=jnp.float32):
    keys = list(jax.random.split(key, 16))

    def w(idx, shape):
        scale = 1.0 / float(shape[0]) ** 0.5
        return (scale * jax.random.normal(keys[idx], shape, jnp.float32)).astype(dtype)

    def b(n):
        return jnp.zeros((1, n), dtype)

    return {
        "w00": w(0, (pos_in_dims, D)),  "b00": b(D),
        "w01": w(1, (D, D)),            "b01": b(D),
        "w02": w(2, (D, D)),            "b02": b(D),
        "w03": w(3, (D, D)),            "b03": b(D),
        "w10a": w(4, (D, D)),
        "w10b": w(5, (pos_in_dims, D)), "b10": b(D),
        "w11": w(6, (D, D)),            "b11": b(D),
        "w12": w(7, (D, D)),            "b12": b(D),
        "w13": w(8, (D, D)),            "b13": b(D),
        "wf":  w(9, (D, D)),            "bf": b(D),
        "wra": w(10, (D, D // 2)),
        "wrb": w(11, (dir_in_dims, D // 2)),
        "br":  b(D // 2),
        "wrgb": w(12, (D // 2, 1)),
        # fc_rgb.bias is explicitly set to 0.02 in the reference __init__.
        "brgb": jnp.full((1, 1), 0.02, dtype),
    }


if __name__ == "__main__":
    key = jax.random.PRNGKey(0)
    k_params, k_pos, k_dir = jax.random.split(key, 3)

    # Small NeRF-style query batch: 8x8 pixels, 8 samples per ray.
    H, W, N_sample = 8, 8, 8
    pos_in_dims, dir_in_dims, D = 32, 32, 128

    params = init_nerf_params(k_params, pos_in_dims, dir_in_dims, D)
    pos_enc = jax.random.normal(k_pos, (H, W, N_sample, pos_in_dims), jnp.float32)
    dir_enc = jax.random.normal(k_dir, (H, W, N_sample, dir_in_dims), jnp.float32)

    rgb = official_nerf_forward(params, pos_enc, dir_enc)
    rgb = jax.block_until_ready(rgb)

    ref = jax.block_until_ready(
        official_nerf_reference(params, pos_enc, dir_enc, use_bf16=True))

    assert rgb.shape == (H, W, N_sample, 1), rgb.shape
    assert rgb.dtype == pos_enc.dtype
    max_err = float(jnp.max(jnp.abs(rgb - ref)))
    assert max_err < 2e-3, max_err
    print("KERNEL_OK")
</pallas_src>

<mosaic_0001>
module attributes {stable_mosaic.version = 11 : i64} {
  func.func @_nerf_mlp_kernel(%arg0: i32, %arg1: memref<512x64xf32, #tpu.memory_space<vmem>>, %arg2: memref<64x128xbf16, #tpu.memory_space<vmem>>, %arg3: memref<1x128xf32, #tpu.memory_space<vmem>>, %arg4: memref<128x128xbf16, #tpu.memory_space<vmem>>, %arg5: memref<1x128xf32, #tpu.memory_space<vmem>>, %arg6: memref<128x128xbf16, #tpu.memory_space<vmem>>, %arg7: memref<1x128xf32, #tpu.memory_space<vmem>>, %arg8: memref<128x128xbf16, #tpu.memory_space<vmem>>, %arg9: memref<1x128xf32, #tpu.memory_space<vmem>>, %arg10: memref<128x128xbf16, #tpu.memory_space<vmem>>, %arg11: memref<64x128xbf16, #tpu.memory_space<vmem>>, %arg12: memref<1x128xf32, #tpu.memory_space<vmem>>, %arg13: memref<128x128xbf16, #tpu.memory_space<vmem>>, %arg14: memref<1x128xf32, #tpu.memory_space<vmem>>, %arg15: memref<128x128xbf16, #tpu.memory_space<vmem>>, %arg16: memref<1x128xf32, #tpu.memory_space<vmem>>, %arg17: memref<128x128xbf16, #tpu.memory_space<vmem>>, %arg18: memref<1x128xf32, #tpu.memory_space<vmem>>, %arg19: memref<128x128xbf16, #tpu.memory_space<vmem>>, %arg20: memref<1x128xf32, #tpu.memory_space<vmem>>, %arg21: memref<128x64xbf16, #tpu.memory_space<vmem>>, %arg22: memref<64x64xbf16, #tpu.memory_space<vmem>>, %arg23: memref<1x64xf32, #tpu.memory_space<vmem>>, %arg24: memref<1x64xf32, #tpu.memory_space<vmem>>, %arg25: memref<1x1xf32, #tpu.memory_space<vmem>>, %arg26: memref<512x1xf32, #tpu.memory_space<vmem>>) attributes {dimension_semantics = [#tpu.dimension_semantics<parallel>], iteration_bounds = array<i64: 1>, scalar_prefetch = 0 : i64, scratch_operands = 0 : i64, tpu.core_type = #tpu.core_type<tc>, window_params = [{transform_indices = @transform_0, window_bounds = array<i64: 512, 64>}, {pipeline_mode = #tpu.pipeline_mode<synchronous>, transform_indices = @transform_1, window_bounds = array<i64: 64, 128>}, {pipeline_mode = #tpu.pipeline_mode<synchronous>, transform_indices = @transform_2, window_bounds = array<i64: 1, 128>}, {pipeline_mode = #tpu.pipeline_mode<synchronous>, transform_indices = @transform_3, window_bounds = array<i64: 128, 128>}, {pipeline_mode = #tpu.pipeline_mode<synchronous>, transform_indices = @transform_4, window_bounds = array<i64: 1, 128>}, {pipeline_mode = #tpu.pipeline_mode<synchronous>, transform_indices = @transform_5, window_bounds = array<i64: 128, 128>}, {pipeline_mode = #tpu.pipeline_mode<synchronous>, transform_indices = @transform_6, window_bounds = array<i64: 1, 128>}, {pipeline_mode = #tpu.pipeline_mode<synchronous>, transform_indices = @transform_7, window_bounds = array<i64: 128, 128>}, {pipeline_mode = #tpu.pipeline_mode<synchronous>, transform_indices = @transform_8, window_bounds = array<i64: 1, 128>}, {pipeline_mode = #tpu.pipeline_mode<synchronous>, transform_indices = @transform_9, window_bounds = array<i64: 128, 128>}, {pipeline_mode = #tpu.pipeline_mode<synchronous>, transform_indices = @transform_10, window_bounds = array<i64: 64, 128>}, {pipeline_mode = #tpu.pipeline_mode<synchronous>, transform_indices = @transform_11, window_bounds = array<i64: 1, 128>}, {pipeline_mode = #tpu.pipeline_mode<synchronous>, transform_indices = @transform_12, window_bounds = array<i64: 128, 128>}, {pipeline_mode = #tpu.pipeline_mode<synchronous>, transform_indices = @transform_13, window_bounds = array<i64: 1, 128>}, {pipeline_mode = #tpu.pipeline_mode<synchronous>, transform_indices = @transform_14, window_bounds = array<i64: 128, 128>}, {pipeline_mode = #tpu.pipeline_mode<synchronous>, transform_indices = @transform_15, window_bounds = array<i64: 1, 128>}, {pipeline_mode = #tpu.pipeline_mode<synchronous>, transform_indices = @transform_16, window_bounds = array<i64: 128, 128>}, {pipeline_mode = #tpu.pipeline_mode<synchronous>, transform_indices = @transform_17, window_bounds = array<i64: 1, 128>}, {pipeline_mode = #tpu.pipeline_mode<synchronous>, transform_indices = @transform_18, window_bounds = array<i64: 128, 128>}, {pipeline_mode = #tpu.pipeline_mode<synchronous>, transform_indices = @transform_19, window_bounds = array<i64: 1, 128>}, {pipeline_mode = #tpu.pipeline_mode<synchronous>, transform_indices = @transform_20, window_bounds = array<i64: 128, 64>}, {pipeline_mode = #tpu.pipeline_mode<synchronous>, transform_indices = @transform_21, window_bounds = array<i64: 64, 64>}, {pipeline_mode = #tpu.pipeline_mode<synchronous>, transform_indices = @transform_22, window_bounds = array<i64: 1, 64>}, {pipeline_mode = #tpu.pipeline_mode<synchronous>, transform_indices = @transform_23, window_bounds = array<i64: 1, 64>}, {pipeline_mode = #tpu.pipeline_mode<synchronous>, transform_indices = @transform_24, window_bounds = array<i64: 1, 1>}, {transform_indices = @transform_25, window_bounds = array<i64: 512, 1>}]} {
    %c0 = arith.constant 0 : index
    %c0_0 = arith.constant 0 : index
    %0 = vector.load %arg1[%c0, %c0_0] : memref<512x64xf32, #tpu.memory_space<vmem>>, vector<512x64xf32>
    %1 = arith.truncf %0 : vector<512x64xf32> to vector<512x64xbf16>
    %c0_1 = arith.constant 0 : index
    %c0_2 = arith.constant 0 : index
    %2 = vector.load %arg2[%c0_1, %c0_2] : memref<64x128xbf16, #tpu.memory_space<vmem>>, vector<64x128xbf16>
    %cst = arith.constant dense<0.000000e+00> : vector<512x128xf32>
    %3 = tpu.matmul %1, %2, %cst {dimension_numbers = #tpu.dot_dimension_numbers<[1], [0], [0], [1], [0, 0, 1, 1], [], []>} : vector<512x64xbf16>, vector<64x128xbf16>, vector<512x128xf32> -> vector<512x128xf32>
    %c0_3 = arith.constant 0 : index
    %c0_4 = arith.constant 0 : index
    %4 = vector.load %arg3[%c0_3, %c0_4] : memref<1x128xf32, #tpu.memory_space<vmem>>, vector<1x128xf32>
    %5 = vector.broadcast %4 : vector<1x128xf32> to vector<512x128xf32>
    %6 = arith.addf %3, %5 : vector<512x128xf32>
    %cst_5 = arith.constant 0.000000e+00 : f32
    %7 = vector.broadcast %cst_5 : f32 to vector<512x128xf32>
    %8 = arith.maximumf %6, %7 : vector<512x128xf32>
    %9 = arith.truncf %8 : vector<512x128xf32> to vector<512x128xbf16>
    %c0_6 = arith.constant 0 : index
    %c0_7 = arith.constant 0 : index
    %10 = vector.load %arg4[%c0_6, %c0_7] : memref<128x128xbf16, #tpu.memory_space<vmem>>, vector<128x128xbf16>
    %cst_8 = arith.constant dense<0.000000e+00> : vector<512x128xf32>
    %11 = tpu.matmul %9, %10, %cst_8 {dimension_numbers = #tpu.dot_dimension_numbers<[1], [0], [0], [1], [0, 0, 1, 1], [], []>} : vector<512x128xbf16>, vector<128x128xbf16>, vector<512x128xf32> -> vector<512x128xf32>
    %c0_9 = arith.constant 0 : index
    %c0_10 = arith.constant 0 : index
    %12 = vector.load %arg5[%c0_9, %c0_10] : memref<1x128xf32, #tpu.memory_space<vmem>>, vector<1x128xf32>
    %13 = vector.broadcast %12 : vector<1x128xf32> to vector<512x128xf32>
    %14 = arith.addf %11, %13 : vector<512x128xf32>
    %cst_11 = arith.constant 0.000000e+00 : f32
    %15 = vector.broadcast %cst_11 : f32 to vector<512x128xf32>
    %16 = arith.maximumf %14, %15 : vector<512x128xf32>
    %17 = arith.truncf %16 : vector<512x128xf32> to vector<512x128xbf16>
    %c0_12 = arith.constant 0 : index
    %c0_13 = arith.constant 0 : index
    %18 = vector.load %arg6[%c0_12, %c0_13] : memref<128x128xbf16, #tpu.memory_space<vmem>>, vector<128x128xbf16>
    %cst_14 = arith.constant dense<0.000000e+00> : vector<512x128xf32>
    %19 = tpu.matmul %17, %18, %cst_14 {dimension_numbers = #tpu.dot_dimension_numbers<[1], [0], [0], [1], [0, 0, 1, 1], [], []>} : vector<512x128xbf16>, vector<128x128xbf16>, vector<512x128xf32> -> vector<512x128xf32>
    %c0_15 = arith.constant 0 : index
    %c0_16 = arith.constant 0 : index
    %20 = vector.load %arg7[%c0_15, %c0_16] : memref<1x128xf32, #tpu.memory_space<vmem>>, vector<1x128xf32>
    %21 = vector.broadcast %20 : vector<1x128xf32> to vector<512x128xf32>
    %22 = arith.addf %19, %21 : vector<512x128xf32>
    %cst_17 = arith.constant 0.000000e+00 : f32
    %23 = vector.broadcast %cst_17 : f32 to vector<512x128xf32>
    %24 = arith.maximumf %22, %23 : vector<512x128xf32>
    %25 = arith.truncf %24 : vector<512x128xf32> to vector<512x128xbf16>
    %c0_18 = arith.constant 0 : index
    %c0_19 = arith.constant 0 : index
    %26 = vector.load %arg8[%c0_18, %c0_19] : memref<128x128xbf16, #tpu.memory_space<vmem>>, vector<128x128xbf16>
    %cst_20 = arith.constant dense<0.000000e+00> : vector<512x128xf32>
    %27 = tpu.matmul %25, %26, %cst_20 {dimension_numbers = #tpu.dot_dimension_numbers<[1], [0], [0], [1], [0, 0, 1, 1], [], []>} : vector<512x128xbf16>, vector<128x128xbf16>, vector<512x128xf32> -> vector<512x128xf32>
    %c0_21 = arith.constant 0 : index
    %c0_22 = arith.constant 0 : index
    %28 = vector.load %arg9[%c0_21, %c0_22] : memref<1x128xf32, #tpu.memory_space<vmem>>, vector<1x128xf32>
    %29 = vector.broadcast %28 : vector<1x128xf32> to vector<512x128xf32>
    %30 = arith.addf %27, %29 : vector<512x128xf32>
    %cst_23 = arith.constant 0.000000e+00 : f32
    %31 = vector.broadcast %cst_23 : f32 to vector<512x128xf32>
    %32 = arith.maximumf %30, %31 : vector<512x128xf32>
    %33 = arith.truncf %32 : vector<512x128xf32> to vector<512x128xbf16>
    %c0_24 = arith.constant 0 : index
    %c0_25 = arith.constant 0 : index
    %34 = vector.load %arg10[%c0_24, %c0_25] : memref<128x128xbf16, #tpu.memory_space<vmem>>, vector<128x128xbf16>
    %cst_26 = arith.constant dense<0.000000e+00> : vector<512x128xf32>
    %35 = tpu.matmul %33, %34, %cst_26 {dimension_numbers = #tpu.dot_dimension_numbers<[1], [0], [0], [1], [0, 0, 1, 1], [], []>} : vector<512x128xbf16>, vector<128x128xbf16>, vector<512x128xf32> -> vector<512x128xf32>
    %c0_27 = arith.constant 0 : index
    %c0_28 = arith.constant 0 : index
    %36 = vector.load %arg11[%c0_27, %c0_28] : memref<64x128xbf16, #tpu.memory_space<vmem>>, vector<64x128xbf16>
    %cst_29 = arith.constant dense<0.000000e+00> : vector<512x128xf32>
    %37 = tpu.matmul %1, %36, %cst_29 {dimension_numbers = #tpu.dot_dimension_numbers<[1], [0], [0], [1], [0, 0, 1, 1], [], []>} : vector<512x64xbf16>, vector<64x128xbf16>, vector<512x128xf32> -> vector<512x128xf32>
    %38 = arith.addf %35, %37 : vector<512x128xf32>
    %c0_30 = arith.constant 0 : index
    %c0_31 = arith.constant 0 : index
    %39 = vector.load %arg12[%c0_30, %c0_31] : memref<1x128xf32, #tpu.memory_space<vmem>>, vector<1x128xf32>
    %40 = vector.broadcast %39 : vector<1x128xf32> to vector<512x128xf32>
    %41 = arith.addf %38, %40 : vector<512x128xf32>
    %cst_32 = arith.constant 0.000000e+00 : f32
    %42 = vector.broadcast %cst_32 : f32 to vector<512x128xf32>
    %43 = arith.maximumf %41, %42 : vector<512x128xf32>
    %44 = arith.truncf %43 : vector<512x128xf32> to vector<512x128xbf16>
    %c0_33 = arith.constant 0 : index
    %c0_34 = arith.constant 0 : index
    %45 = vector.load %arg13[%c0_33, %c0_34] : memref<128x128xbf16, #tpu.memory_space<vmem>>, vector<128x128xbf16>
    %cst_35 = arith.constant dense<0.000000e+00> : vector<512x128xf32>
    %46 = tpu.matmul %44, %45, %cst_35 {dimension_numbers = #tpu.dot_dimension_numbers<[1], [0], [0], [1], [0, 0, 1, 1], [], []>} : vector<512x128xbf16>, vector<128x128xbf16>, vector<512x128xf32> -> vector<512x128xf32>
    %c0_36 = arith.constant 0 : index
    %c0_37 = arith.constant 0 : index
    %47 = vector.load %arg14[%c0_36, %c0_37] : memref<1x128xf32, #tpu.memory_space<vmem>>, vector<1x128xf32>
    %48 = vector.broadcast %47 : vector<1x128xf32> to vector<512x128xf32>
    %49 = arith.addf %46, %48 : vector<512x128xf32>
    %cst_38 = arith.constant 0.000000e+00 : f32
    %50 = vector.broadcast %cst_38 : f32 to vector<512x128xf32>
    %51 = arith.maximumf %49, %50 : vector<512x128xf32>
    %52 = arith.truncf %51 : vector<512x128xf32> to vector<512x128xbf16>
    %c0_39 = arith.constant 0 : index
    %c0_40 = arith.constant 0 : index
    %53 = vector.load %arg15[%c0_39, %c0_40] : memref<128x128xbf16, #tpu.memory_space<vmem>>, vector<128x128xbf16>
    %cst_41 = arith.constant dense<0.000000e+00> : vector<512x128xf32>
    %54 = tpu.matmul %52, %53, %cst_41 {dimension_numbers = #tpu.dot_dimension_numbers<[1], [0], [0], [1], [0, 0, 1, 1], [], []>} : vector<512x128xbf16>, vector<128x128xbf16>, vector<512x128xf32> -> vector<512x128xf32>
    %c0_42 = arith.constant 0 : index
    %c0_43 = arith.constant 0 : index
    %55 = vector.load %arg16[%c0_42, %c0_43] : memref<1x128xf32, #tpu.memory_space<vmem>>, vector<1x128xf32>
    %56 = vector.broadcast %55 : vector<1x128xf32> to vector<512x128xf32>
    %57 = arith.addf %54, %56 : vector<512x128xf32>
    %cst_44 = arith.constant 0.000000e+00 : f32
    %58 = vector.broadcast %cst_44 : f32 to vector<512x128xf32>
    %59 = arith.maximumf %57, %58 : vector<512x128xf32>
    %60 = arith.truncf %59 : vector<512x128xf32> to vector<512x128xbf16>
    %c0_45 = arith.constant 0 : index
    %c0_46 = arith.constant 0 : index
    %61 = vector.load %arg17[%c0_45, %c0_46] : memref<128x128xbf16, #tpu.memory_space<vmem>>, vector<128x128xbf16>
    %cst_47 = arith.constant dense<0.000000e+00> : vector<512x128xf32>
    %62 = tpu.matmul %60, %61, %cst_47 {dimension_numbers = #tpu.dot_dimension_numbers<[1], [0], [0], [1], [0, 0, 1, 1], [], []>} : vector<512x128xbf16>, vector<128x128xbf16>, vector<512x128xf32> -> vector<512x128xf32>
    %c0_48 = arith.constant 0 : index
    %c0_49 = arith.constant 0 : index
    %63 = vector.load %arg18[%c0_48, %c0_49] : memref<1x128xf32, #tpu.memory_space<vmem>>, vector<1x128xf32>
    %64 = vector.broadcast %63 : vector<1x128xf32> to vector<512x128xf32>
    %65 = arith.addf %62, %64 : vector<512x128xf32>
    %cst_50 = arith.constant 0.000000e+00 : f32
    %66 = vector.broadcast %cst_50 : f32 to vector<512x128xf32>
    %67 = arith.maximumf %65, %66 : vector<512x128xf32>
    %68 = arith.truncf %67 : vector<512x128xf32> to vector<512x128xbf16>
    %c0_51 = arith.constant 0 : index
    %c0_52 = arith.constant 0 : index
    %69 = vector.load %arg19[%c0_51, %c0_52] : memref<128x128xbf16, #tpu.memory_space<vmem>>, vector<128x128xbf16>
    %cst_53 = arith.constant dense<0.000000e+00> : vector<512x128xf32>
    %70 = tpu.matmul %68, %69, %cst_53 {dimension_numbers = #tpu.dot_dimension_numbers<[1], [0], [0], [1], [0, 0, 1, 1], [], []>} : vector<512x128xbf16>, vector<128x128xbf16>, vector<512x128xf32> -> vector<512x128xf32>
    %c0_54 = arith.constant 0 : index
    %c0_55 = arith.constant 0 : index
    %71 = vector.load %arg20[%c0_54, %c0_55] : memref<1x128xf32, #tpu.memory_space<vmem>>, vector<1x128xf32>
    %72 = vector.broadcast %71 : vector<1x128xf32> to vector<512x128xf32>
    %73 = arith.addf %70, %72 : vector<512x128xf32>
    %74 = arith.truncf %73 : vector<512x128xf32> to vector<512x128xbf16>
    %c0_56 = arith.constant 0 : index
    %c0_57 = arith.constant 0 : index
    %75 = vector.load %arg21[%c0_56, %c0_57] : memref<128x64xbf16, #tpu.memory_space<vmem>>, vector<128x64xbf16>
    %cst_58 = arith.constant dense<0.000000e+00> : vector<512x64xf32>
    %76 = tpu.matmul %74, %75, %cst_58 {dimension_numbers = #tpu.dot_dimension_numbers<[1], [0], [0], [1], [0, 0, 1, 1], [], []>} : vector<512x128xbf16>, vector<128x64xbf16>, vector<512x64xf32> -> vector<512x64xf32>
    %c0_59 = arith.constant 0 : index
    %c0_60 = arith.constant 0 : index
    %77 = vector.load %arg22[%c0_59, %c0_60] : memref<64x64xbf16, #tpu.memory_space<vmem>>, vector<64x64xbf16>
    %cst_61 = arith.constant dense<0.000000e+00> : vector<512x64xf32>
    %78 = tpu.matmul %1, %77, %cst_61 {dimension_numbers = #tpu.dot_dimension_numbers<[1], [0], [0], [1], [0, 0, 1, 1], [], []>} : vector<512x64xbf16>, vector<64x64xbf16>, vector<512x64xf32> -> vector<512x64xf32>
    %79 = arith.addf %76, %78 : vector<512x64xf32>
    %c0_62 = arith.constant 0 : index
    %c0_63 = arith.constant 0 : index
    %80 = vector.load %arg23[%c0_62, %c0_63] : memref<1x64xf32, #tpu.memory_space<vmem>>, vector<1x64xf32>
    %81 = vector.broadcast %80 : vector<1x64xf32> to vector<512x64xf32>
    %82 = arith.addf %79, %81 : vector<512x64xf32>
    %cst_64 = arith.constant 0.000000e+00 : f32
    %83 = vector.broadcast %cst_64 : f32 to vector<512x64xf32>
    %84 = arith.maximumf %82, %83 : vector<512x64xf32>
    %c0_65 = arith.constant 0 : index
    %c0_66 = arith.constant 0 : index
    %85 = vector.load %arg24[%c0_65, %c0_66] : memref<1x64xf32, #tpu.memory_space<vmem>>, vector<1x64xf32>
    %86 = vector.broadcast %85 : vector<1x64xf32> to vector<512x64xf32>
    %87 = arith.mulf %84, %86 : vector<512x64xf32>
    %cst_67 = arith.constant dense<0.000000e+00> : vector<512xf32>
    %88 = vector.multi_reduction <add>, %87, %cst_67 [1] : vector<512x64xf32> to vector<512xf32>
    %89 = vector.shape_cast %88 : vector<512xf32> to vector<512x1xf32>
    %c0_68 = arith.constant 0 : index
    %c0_69 = arith.constant 0 : index
    %90 = vector.load %arg25[%c0_68, %c0_69] : memref<1x1xf32, #tpu.memory_space<vmem>>, vector<1x1xf32>
    %91 = vector.broadcast %90 : vector<1x1xf32> to vector<512x1xf32>
    %92 = arith.addf %89, %91 : vector<512x1xf32>
    %c0_70 = arith.constant 0 : index
    %c0_71 = arith.constant 0 : index
    %93 = vector.load %arg26[%c0_70, %c0_71] : memref<512x1xf32, #tpu.memory_space<vmem>>, vector<512x1xf32>
    tpu.vector_store %arg26[%c0_70, %c0_71], %92 {strides = array<i32>} : memref<512x1xf32, #tpu.memory_space<vmem>>, vector<512x1xf32>,
    return
  }
  func.func @transform_0(%arg0: i32) -> (i32, i32) {
    %c0_i32 = arith.constant 0 : i32
    %c0_i32_0 = arith.constant 0 : i32
    return %arg0, %c0_i32 : i32, i32
  }
  func.func @transform_1(%arg0: i32) -> (i32, i32) {
    %c0_i32 = arith.constant 0 : i32
    %c0_i32_0 = arith.constant 0 : i32
    %c0_i32_1 = arith.constant 0 : i32
    return %c0_i32, %c0_i32_0 : i32, i32
  }
  func.func @transform_2(%arg0: i32) -> (i32, i32) {
    %c0_i32 = arith.constant 0 : i32
    %c0_i32_0 = arith.constant 0 : i32
    %c0_i32_1 = arith.constant 0 : i32
    return %c0_i32, %c0_i32_0 : i32, i32
  }
  func.func @transform_3(%arg0: i32) -> (i32, i32) {
    %c0_i32 = arith.constant 0 : i32
    %c0_i32_0 = arith.constant 0 : i32
    %c0_i32_1 = arith.constant 0 : i32
    return %c0_i32, %c0_i32_0 : i32, i32
  }
  func.func @transform_4(%arg0: i32) -> (i32, i32) {
    %c0_i32 = arith.constant 0 : i32
    %c0_i32_0 = arith.constant 0 : i32
    %c0_i32_1 = arith.constant 0 : i32
    return %c0_i32, %c0_i32_0 : i32, i32
  }
  func.func @transform_5(%arg0: i32) -> (i32, i32) {
    %c0_i32 = arith.constant 0 : i32
    %c0_i32_0 = arith.constant 0 : i32
    %c0_i32_1 = arith.constant 0 : i32
    return %c0_i32, %c0_i32_0 : i32, i32
  }
  func.func @transform_6(%arg0: i32) -> (i32, i32) {
    %c0_i32 = arith.constant 0 : i32
    %c0_i32_0 = arith.constant 0 : i32
    %c0_i32_1 = arith.constant 0 : i32
    return %c0_i32, %c0_i32_0 : i32, i32
  }
  func.func @transform_7(%arg0: i32) -> (i32, i32) {
    %c0_i32 = arith.constant 0 : i32
    %c0_i32_0 = arith.constant 0 : i32
    %c0_i32_1 = arith.constant 0 : i32
    return %c0_i32, %c0_i32_0 : i32, i32
  }
  func.func @transform_8(%arg0: i32) -> (i32, i32) {
    %c0_i32 = arith.constant 0 : i32
    %c0_i32_0 = arith.constant 0 : i32
    %c0_i32_1 = arith.constant 0 : i32
    return %c0_i32, %c0_i32_0 : i32, i32
  }
  func.func @transform_9(%arg0: i32) -> (i32, i32) {
    %c0_i32 = arith.constant 0 : i32
    %c0_i32_0 = arith.constant 0 : i32
    %c0_i32_1 = arith.constant 0 : i32
    return %c0_i32, %c0_i32_0 : i32, i32
  }
  func.func @transform_10(%arg0: i32) -> (i32, i32) {
    %c0_i32 = arith.constant 0 : i32
    %c0_i32_0 = arith.constant 0 : i32
    %c0_i32_1 = arith.constant 0 : i32
    return %c0_i32, %c0_i32_0 : i32, i32
  }
  func.func @transform_11(%arg0: i32) -> (i32, i32) {
    %c0_i32 = arith.constant 0 : i32
    %c0_i32_0 = arith.constant 0 : i32
    %c0_i32_1 = arith.constant 0 : i32
    return %c0_i32, %c0_i32_0 : i32, i32
  }
  func.func @transform_12(%arg0: i32) -> (i32, i32) {
    %c0_i32 = arith.constant 0 : i32
    %c0_i32_0 = arith.constant 0 : i32
    %c0_i32_1 = arith.constant 0 : i32
    return %c0_i32, %c0_i32_0 : i32, i32
  }
  func.func @transform_13(%arg0: i32) -> (i32, i32) {
    %c0_i32 = arith.constant 0 : i32
    %c0_i32_0 = arith.constant 0 : i32
    %c0_i32_1 = arith.constant 0 : i32
    return %c0_i32, %c0_i32_0 : i32, i32
  }
  func.func @transform_14(%arg0: i32) -> (i32, i32) {
    %c0_i32 = arith.constant 0 : i32
    %c0_i32_0 = arith.constant 0 : i32
    %c0_i32_1 = arith.constant 0 : i32
    return %c0_i32, %c0_i32_0 : i32, i32
  }
  func.func @transform_15(%arg0: i32) -> (i32, i32) {
    %c0_i32 = arith.constant 0 : i32
    %c0_i32_0 = arith.constant 0 : i32
    %c0_i32_1 = arith.constant 0 : i32
    return %c0_i32, %c0_i32_0 : i32, i32
  }
  func.func @transform_16(%arg0: i32) -> (i32, i32) {
    %c0_i32 = arith.constant 0 : i32
    %c0_i32_0 = arith.constant 0 : i32
    %c0_i32_1 = arith.constant 0 : i32
    return %c0_i32, %c0_i32_0 : i32, i32
  }
  func.func @transform_17(%arg0: i32) -> (i32, i32) {
    %c0_i32 = arith.constant 0 : i32
    %c0_i32_0 = arith.constant 0 : i32
    %c0_i32_1 = arith.constant 0 : i32
    return %c0_i32, %c0_i32_0 : i32, i32
  }
  func.func @transform_18(%arg0: i32) -> (i32, i32) {
    %c0_i32 = arith.constant 0 : i32
    %c0_i32_0 = arith.constant 0 : i32
    %c0_i32_1 = arith.constant 0 : i32
    return %c0_i32, %c0_i32_0 : i32, i32
  }
  func.func @transform_19(%arg0: i32) -> (i32, i32) {
    %c0_i32 = arith.constant 0 : i32
    %c0_i32_0 = arith.constant 0 : i32
    %c0_i32_1 = arith.constant 0 : i32
    return %c0_i32, %c0_i32_0 : i32, i32
  }
  func.func @transform_20(%arg0: i32) -> (i32, i32) {
    %c0_i32 = arith.constant 0 : i32
    %c0_i32_0 = arith.constant 0 : i32
    %c0_i32_1 = arith.constant 0 : i32
    return %c0_i32, %c0_i32_0 : i32, i32
  }
  func.func @transform_21(%arg0: i32) -> (i32, i32) {
    %c0_i32 = arith.constant 0 : i32
    %c0_i32_0 = arith.constant 0 : i32
    %c0_i32_1 = arith.constant 0 : i32
    return %c0_i32, %c0_i32_0 : i32, i32
  }
  func.func @transform_22(%arg0: i32) -> (i32, i32) {
    %c0_i32 = arith.constant 0 : i32
    %c0_i32_0 = arith.constant 0 : i32
    %c0_i32_1 = arith.constant 0 : i32
    return %c0_i32, %c0_i32_0 : i32, i32
  }
  func.func @transform_23(%arg0: i32) -> (i32, i32) {
    %c0_i32 = arith.constant 0 : i32
    %c0_i32_0 = arith.constant 0 : i32
    %c0_i32_1 = arith.constant 0 : i32
    return %c0_i32, %c0_i32_0 : i32, i32
  }
  func.func @transform_24(%arg0: i32) -> (i32, i32) {
    %c0_i32 = arith.constant 0 : i32
    %c0_i32_0 = arith.constant 0 : i32
    %c0_i32_1 = arith.constant 0 : i32
    return %c0_i32, %c0_i32_0 : i32, i32
  }
  func.func @transform_25(%arg0: i32) -> (i32, i32) {
    %c0_i32 = arith.constant 0 : i32
    %c0_i32_0 = arith.constant 0 : i32
    return %arg0, %c0_i32 : i32, i32
  }
}

</mosaic_0001>

<bundles_post_ra>
// kernel: official_nerf_forward.1
= control target key start
LH: loop header
LB: loop body
LE: loop exit
PB: predicated region body
PF: predicated region fallthrough
CT: control target
= control target key end

     0   :  { %vm218_vm0 = vcmask 523264   ;;  %vm5812_vm1 = vcmask 7168   ;;  %s9887_s1 = inlined_call_operand.vmem [shape: bf16[64,128], index: 1, kind: input, shape index: {}]   ;;  %s9888_s0 = inlined_call_operand.vmem [shape: f32[512,64], index: 0, kind: input, shape index: {}]   ;;  %s9889_s3 = inlined_call_operand.vmem [shape: bf16[128,128], index: 3, kind: input, shape index: {}]   ;;  %s9890_s5 = inlined_call_operand.vmem [shape: bf16[128,128], index: 5, kind: input, shape index: {}]   ;;  %s9891_s2 = inlined_call_operand.vmem [shape: f32[1,128], index: 2, kind: input, shape index: {}]   ;;  %s9892_s7 = inlined_call_operand.vmem [shape: bf16[128,128], index: 7, kind: input, shape index: {}]   ;;  %s9893_s4 = inlined_call_operand.vmem [shape: f32[1,128], index: 4, kind: input, shape index: {}]   ;;  %s9894_s10 = inlined_call_operand.vmem [shape: bf16[64,128], index: 10, kind: input, shape index: {}]   ;;  %s9895_s9 = inlined_call_operand.vmem [shape: bf16[128,128], index: 9, kind: input, shape index: {}]   ;;  %s9896_s6 = inlined_call_operand.vmem [shape: f32[1,128], index: 6, kind: input, shape index: {}]   ;;  %s9897_s12 = inlined_call_operand.vmem [shape: bf16[128,128], index: 12, kind: input, shape index: {}]   ;;  %s9898_s8 = inlined_call_operand.vmem [shape: f32[1,128], index: 8, kind: input, shape index: {}]   ;;  %s9899_s14 = inlined_call_operand.vmem [shape: bf16[128,128], index: 14, kind: input, shape index: {}]   ;;  %s9900_s11 = inlined_call_operand.vmem [shape: f32[1,128], index: 11, kind: input, shape index: {}]   ;;  %s9901_s16 = inlined_call_operand.vmem [shape: bf16[128,128], index: 16, kind: input, shape index: {}]   ;;  %s9902_s13 = inlined_call_operand.vmem [shape: f32[1,128], index: 13, kind: input, shape index: {}]   ;;  %s9903_s18 = inlined_call_operand.vmem [shape: bf16[128,128], index: 18, kind: input, shape index: {}]   ;;  %s9904_s15 = inlined_call_operand.vmem [shape: f32[1,128], index: 15, kind: input, shape index: {}]   ;;  %s9905_s21 = inlined_call_operand.vmem [shape: bf16[64,64], index: 21, kind: input, shape index: {}]   ;;  %s9906_s20 = inlined_call_operand.vmem [shape: bf16[128,64], index: 20, kind: input, shape index: {}]   ;;  %s9907_s17 = inlined_call_operand.vmem [shape: f32[1,128], index: 17, kind: input, shape index: {}]   ;;  %s9908_s19 = inlined_call_operand.vmem [shape: f32[1,128], index: 19, kind: input, shape index: {}]   ;;  %s9909_s22 = inlined_call_operand.vmem [shape: f32[1,64], index: 22, kind: input, shape index: {}]   ;;  %s9910_s23 = inlined_call_operand.vmem [shape: f32[1,64], index: 23, kind: input, shape index: {}]   ;;  %s9911_s24 = inlined_call_operand.<no memory space> [shape: f32[1,1], index: 24, kind: input, shape index: {}]   ;;  %s9912_s25 = inlined_call_operand.vmem [shape: f32[512,1], index: 25, kind: output, shape index: {}]  }
   0x1   :  { %9920 = sst [smem:[#allocation18_spill]] %s9887_s1 }
   0x2   :  { %9921 = sst [smem:[#allocation19_spill]] %s9888_s0 }
   0x3   :  { %9922 = sst [smem:[#allocation20_spill]] %s9889_s3  ;;  %s9931_s27 = sld [smem:[#allocation19_spill]] }
   0x4   :  { %9923 = sst [smem:[#allocation21_spill]] %s9890_s5 }
   0x5   :  { %9924 = sst [smem:[#allocation22_spill]] %s9891_s2  ;;  %s9932_s2 = sld [smem:[#allocation20_spill]] }
   0x6   :  { %9925 = sst [smem:[#allocation23_spill]] %s9892_s7  ;;  %s9934_s1 = sld [smem:[#allocation22_spill]] }
   0x7   :  { %9926 = sst [smem:[#allocation24_spill]] %s9893_s4  ;;  %s9930_s4 = sld [smem:[#allocation18_spill]] }
   0x8   :  { %9927 = sst [smem:[#allocation25_spill]] %s9894_s10  ;;  %s9936_s10 = sld [smem:[#allocation24_spill]] }
   0x9   :  { %9928 = sst [smem:[#allocation26_spill]] %s9895_s9  ;;  %v83_v3 = vld [vmem:[%s9931_s27] sm:$0xff]  ;;  %v84_v4 = vld [vmem:[%s9931_s27 + $0x8] sm:$0xff]  ;;  %v85_v7 = vld [vmem:[%s9931_s27 + $0x10] sm:$0xff]  ;;  %s9933_s9 = sld [smem:[#allocation21_spill]] }
   0xa   :  { %9929 = sst [smem:[#allocation27_spill]] %s9896_s6  ;;  %v7850_v5 = vpack.c.bf16 %v84_v4, %v83_v3  ;;  %v86_v8 = vld [vmem:[%s9931_s27 + $0x18] sm:$0xff]  ;;  %v87_v9 = vld [vmem:[%s9931_s27 + $0x20] sm:$0xff]  ;;  %v88_v10 = vld [vmem:[%s9931_s27 + $0x28] sm:$0xff] }
   0xb   :  { %v7869_v11 = vpack.c.bf16 %v86_v8, %v85_v7  ;;  %v7871_v12 = vpack.c.bf16 %v88_v10, %v87_v9  ;;  %v89_v13 = vld [vmem:[%s9931_s27 + $0x30] sm:$0xff]  ;;  %v90_v14 = vld [vmem:[%s9931_s27 + $0x38] sm:$0xff]  ;;  %v91_v15 = vld [vmem:[%s9931_s27 + $0x40] sm:$0xff] }
   0xc   :  { %6549 = vmatprep.mubr.msk.bf16.mxu0 %vm218_vm0, %v7850_v5  ;;  %v92_v16 = vld [vmem:[%s9931_s27 + $0x48] sm:$0xff]  ;;  %v7889_v17 = vpack.c.bf16 %v90_v14, %v89_v13  ;;  %v93_v19 = vld [vmem:[%s9931_s27 + $0x50] sm:$0xff]  ;;  %v94_v20 = vld [vmem:[%s9931_s27 + $0x58] sm:$0xff] }
   0xd   :  { %v7621_v0 = vld [vmem:[%s9930_s4] sm:$0xff]   ;;  %v7622_v1 = vld [vmem:[%s9930_s4 + $0x8] sm:$0xff]   ;;  %v7623_v2 = vld [vmem:[%s9930_s4 + $0x10] sm:$0xff]   ;;  %v7891_v18 = vpack.c.bf16 %v92_v16, %v91_v15  ;;  %v7915_v25 = vpack.c.bf16 %v94_v20, %v93_v19 }
   0xe   :  { %6541 = vmatprep.subr.bf16.mxu0 %v7621_v0  ;;  %v7624_v6 = vld [vmem:[%s9930_s4 + $0x18] sm:$0xff]   ;;  %v95_v21 = vld [vmem:[%s9931_s27 + $0x60] sm:$0xff]  ;;  %v7626_v23 = vld [vmem:[%s9932_s2 + $0x8] sm:$0xff]  }
   0xf   :  { %6542 = vmatpush3.bf16.msra.mxu0 %v7621_v0  ;;  %v7625_v22 = vld [vmem:[%s9932_s2] sm:$0xff]   ;;  %v96_v24 = vld [vmem:[%s9931_s27 + $0x68] sm:$0xff]  ;;  %v7627_v26 = vld [vmem:[%s9932_s2 + $0x10] sm:$0xff]  }
  0x10   :  { %6543 = vmatprep.subr.bf16.mxu0 %v7622_v1  ;;  %6613 = vmatprep.subr.bf16.mxu1 %v7625_v22  ;;  %v7920_v27 = vpack.c.bf16 %v96_v24, %v95_v21  ;;  %v7628_v28 = vld [vmem:[%s9932_s2 + $0x18] sm:$0xff]   ;;  %v97_v29 = vld [vmem:[%s9931_s27 + $0x70] sm:$0xff]  ;;  %v99_v31 = vld [vmem:[%s9931_s27 + $0x80] sm:$0xff] }
  0x11   :  { %6614 = vmatpush3.bf16.msra.mxu1 %v7625_v22  ;;  %v98_v30 = vld [vmem:[%s9931_s27 + $0x78] sm:$0xff]  ;;  %v100_v32 = vld [vmem:[%s9931_s27 + $0x88] sm:$0xff]  ;;  %v7629_v34 = vld [vmem:[%s9932_s2 + $0x20] sm:$0xff]  }
  0x12   :  { %6615 = vmatprep.subr.bf16.mxu1 %v7626_v23  ;;  %v7941_v33 = vpack.c.bf16 %v98_v30, %v97_v29  ;;  %v7946_v35 = vpack.c.bf16 %v100_v32, %v99_v31  ;;  %v7630_v36 = vld [vmem:[%s9932_s2 + $0x28] sm:$0xff]   ;;  %v101_v37 = vld [vmem:[%s9931_s27 + $0x90] sm:$0xff]  ;;  %v102_v38 = vld [vmem:[%s9931_s27 + $0x98] sm:$0xff] }
  0x13   :  { %6544 = vmatpush3.bf16.msra.mxu0 %v7622_v1  ;;  %v103_v39 = vld [vmem:[%s9931_s27 + $0xa0] sm:$0xff]  ;;  %v104_v40 = vld [vmem:[%s9931_s27 + $0xa8] sm:$0xff]  ;;  %v7967_v41 = vpack.c.bf16 %v102_v38, %v101_v37  ;;  %v105_v43 = vld [vmem:[%s9931_s27 + $0xb0] sm:$0xff] }
  0x14   :  { %6545 = vmatprep.subr.bf16.mxu0 %v7623_v2  ;;  %v7969_v42 = vpack.c.bf16 %v104_v40, %v103_v39  ;;  %v106_v44 = vld [vmem:[%s9931_s27 + $0xb8] sm:$0xff]  ;;  %v107_v45 = vld [vmem:[%s9931_s27 + $0xc0] sm:$0xff]  ;;  %v108_v46 = vld [vmem:[%s9931_s27 + $0xc8] sm:$0xff] }
  0x15   :  { %6616 = vmatpush3.bf16.msra.mxu1 %v7626_v23  ;;  %v7987_v47 = vpack.c.bf16 %v106_v44, %v105_v43  ;;  %v7989_v48 = vpack.c.bf16 %v108_v46, %v107_v45  ;;  %v109_v49 = vld [vmem:[%s9931_s27 + $0xd0] sm:$0xff]  ;;  %v110_v50 = vld [vmem:[%s9931_s27 + $0xd8] sm:$0xff]  ;;  %v111_v51 = vld [vmem:[%s9931_s27 + $0xe0] sm:$0xff] }
  0x16   :  { %6617 = vmatprep.subr.bf16.mxu1 %v7627_v26  ;;  %v112_v52 = vld [vmem:[%s9931_s27 + $0xe8] sm:$0xff]  ;;  %v8007_v53 = vpack.c.bf16 %v110_v50, %v109_v49  ;;  %v113_v55 = vld [vmem:[%s9931_s27 + $0xf0] sm:$0xff]  ;;  %v114_v56 = vld [vmem:[%s9931_s27 + $0xf8] sm:$0xff] }
  0x17   :  { %6546 = vmatpush3.bf16.msra.mxu0 %v7623_v2  ;;  %v8009_v54 = vpack.c.bf16 %v112_v52, %v111_v51  ;;  %v115_v57 = vld [vmem:[%s9931_s27 + $0x100] sm:$0xff]  ;;  %v116_v58 = vld [vmem:[%s9931_s27 + $0x108] sm:$0xff]  ;;  %v8027_v59 = vpack.c.bf16 %v114_v56, %v113_v55  ;;  %v117_v61 = vld [vmem:[%s9931_s27 + $0x110] sm:$0xff] }
  0x18   :  { %6547 = vmatprep.subr.bf16.mxu0 %v7624_v6  ;;  %v8029_v60 = vpack.c.bf16 %v116_v58, %v115_v57  ;;  %v118_v62 = vld [vmem:[%s9931_s27 + $0x118] sm:$0xff]  ;;  %v119_v63 = vld [vmem:[%s9931_s27 + $0x120] sm:$0xff]  ;;  %v120_v0 = vld [vmem:[%s9931_s27 + $0x128] sm:$0xff] }
  0x19   :  { %6618 = vmatpush3.bf16.msra.mxu1 %v7627_v26  ;;  %v8047_v1 = vpack.c.bf16 %v118_v62, %v117_v61  ;;  %v8049_v2 = vpack.c.bf16 %v120_v0, %v119_v63  ;;  %v121_v3 = vld [vmem:[%s9931_s27 + $0x130] sm:$0xff]  ;;  %v122_v4 = vld [vmem:[%s9931_s27 + $0x138] sm:$0xff]  ;;  %v124_v7 = vld [vmem:[%s9931_s27 + $0x148] sm:$0xff] }
  0x1a   :  { %6619 = vmatprep.subr.bf16.mxu1 %v7628_v28  ;;  %v8067_v8 = vpack.c.bf16 %v122_v4, %v121_v3  ;;  %v125_v10 = vld [vmem:[%s9931_s27 + $0x150] sm:$0xff]  ;;  %v126_v13 = vld [vmem:[%s9931_s27 + $0x158] sm:$0xff]  ;;  %v127_v14 = vld [vmem:[%s9931_s27 + $0x160] sm:$0xff] }
  0x1b   :  { %6548 = vmatpush3.bf16.msra.mxu0 %v7624_v6  ;;  %v123_v6 = vld [vmem:[%s9931_s27 + $0x140] sm:$0xff]  ;;  %v128_v15 = vld [vmem:[%s9931_s27 + $0x168] sm:$0xff]  ;;  %v8087_v16 = vpack.c.bf16 %v126_v13, %v125_v10  ;;  %v129_v20 = vld [vmem:[%s9931_s27 + $0x170] sm:$0xff] }
  0x1c   :  { %v8069_v9 = vpack.c.bf16 %v124_v7, %v123_v6  ;;  %v8089_v19 = vpack.c.bf16 %v128_v15, %v127_v14  ;;  %v130_v21 = vld [vmem:[%s9931_s27 + $0x178] sm:$0xff]  ;;  %v131_v22 = vld [vmem:[%s9931_s27 + $0x180] sm:$0xff]  ;;  %v132_v23 = vld [vmem:[%s9931_s27 + $0x188] sm:$0xff] }
  0x1d   :  { %6620 = vmatpush3.bf16.msra.mxu1 %v7628_v28  ;;  %v8107_v24 = vpack.c.bf16 %v130_v21, %v129_v20  ;;  %v7631_v26 = vld [vmem:[%s9932_s2 + $0x30] sm:$0xff]   ;;  %v8112_v28 = vpack.c.bf16 %v132_v23, %v131_v22  ;;  %v7632_v29 = vld [vmem:[%s9932_s2 + $0x38] sm:$0xff]   ;;  %v135_v32 = vld [vmem:[%s9931_s27 + $0x1a0] sm:$0xff]  ;;  %s9937_s2 = sld [smem:[#allocation25_spill]] }
  0x1e   :  { %6550 = vmatmul.mubr.msk.bf16.vlgmr.msra.gmra.mrb[0].mxu0 %vm218_vm0, %v7869_v11  ;;  %6621 = vmatprep.subr.bf16.mxu1 %v7629_v34  ;;  %v133_v30 = vld [vmem:[%s9931_s27 + $0x190] sm:$0xff]  ;;  %v134_v31 = vld [vmem:[%s9931_s27 + $0x198] sm:$0xff]  ;;  %v139_v40 = vld [vmem:[%s9931_s27 + $0x1c0] sm:$0xff] }
  0x1f   :  { %6553 = vmatprep.mubr.msk.bf16.mxu0 %vm218_vm0, %v7871_v12  ;;  %v137_v38 = vld [vmem:[%s9931_s27 + $0x1b0] sm:$0xff]  ;;  %v138_v39 = vld [vmem:[%s9931_s27 + $0x1b8] sm:$0xff]  ;;  %v140_v43 = vld [vmem:[%s9931_s27 + $0x1c8] sm:$0xff] }
  0x20   :  { %v8153_v44 = vpack.c.bf16 %v138_v39, %v137_v38  ;;  %v8155_v45 = vpack.c.bf16 %v140_v43, %v139_v40  ;;  %v141_v46 = vld [vmem:[%s9931_s27 + $0x1d0] sm:$0xff]  ;;  %v142_v49 = vld [vmem:[%s9931_s27 + $0x1d8] sm:$0xff]  ;;  %v143_v50 = vld [vmem:[%s9931_s27 + $0x1e0] sm:$0xff] }
  0x21   :  { %6622 = vmatpush3.bf16.msra.mxu1 %v7629_v34  ;;  %v136_v34 = vld [vmem:[%s9931_s27 + $0x1a8] sm:$0xff]  ;;  %v8173_v52 = vpack.c.bf16 %v142_v49, %v141_v46  ;;  %v145_v56 = vld [vmem:[%s9931_s27 + $0x1f0] sm:$0xff]  ;;  %v146_v57 = vld [vmem:[%s9931_s27 + $0x1f8] sm:$0xff] }
  0x22   :  { %6623 = vmatprep.subr.bf16.mxu1 %v7630_v36  ;;  %v8135_v37 = vpack.c.bf16 %v136_v34, %v135_v32  ;;  %v144_v51 = vld [vmem:[%s9931_s27 + $0x1e8] sm:$0xff]  ;;  %v8187_v58 = vpack.c.bf16 %v146_v57, %v145_v56  ;;  %v7633_v61 = vld [vmem:[%s9933_s9] sm:$0xff]   ;;  %v7635_v14 = vld [vmem:[%s9933_s9 + $0x10] sm:$0xff]  }
  0x23   :  { %v8175_v55 = vpack.c.bf16 %v144_v51, %v143_v50  ;;  %6693 = vmatprep.subr.bf16.mxu0 %v7633_v61  ;;  %v7634_v62 = vld [vmem:[%s9933_s9 + $0x8] sm:$0xff]   ;;  %v8200_v63 = vld [vmem:[%s9934_s1] ss:$0 sm:$0xff]  ;;  %v7636_v15 = vld [vmem:[%s9933_s9 + $0x18] sm:$0xff]   ;;  %s9935_s1 = sld [smem:[#allocation23_spill]] }
  0x24   :  { %6694 = vmatpush3.bf16.msra.mxu0 %v7633_v61  ;;  %v7638_v49 = vld [vmem:[%s9933_s9 + $0x28] sm:$0xff]  }
  0x25   :  { %6624 = vmatpush3.bf16.msra.mxu1 %v7630_v36  ;;  %v8133_v36 = vpack.c.bf16 %v134_v31, %v133_v30  ;;  %6695 = vmatprep.subr.bf16.mxu0 %v7634_v62  ;;  %v7637_v30 = vld [vmem:[%s9933_s9 + $0x20] sm:$0xff]  }
  0x26   :  { %6554 = vmatmul.mubr.msk.bf16.gmra.mrb[4].mxu0 %vm218_vm0, %v7889_v17  ;;  %6625 = vmatprep.subr.bf16.mxu1 %v7631_v26 }
  0x27   :  { %6557 = vmatprep.mubr.msk.bf16.mxu0 %vm218_vm0, %v7891_v18 }
  0x28   :  { %6696 = vmatpush3.bf16.msra.mxu0 %v7634_v62 }
  0x29   :  { %6626 = vmatpush3.bf16.msra.mxu1 %v7631_v26  ;;  %6697 = vmatprep.subr.bf16.mxu0 %v7635_v14 }
  0x2a   :  { %6627 = vmatprep.subr.bf16.mxu1 %v7632_v29 }
  0x2c   :  { %6698 = vmatpush3.bf16.msra.mxu0 %v7635_v14 }
  0x2d   :  { %6628 = vmatpush3.bf16.msra.mxu1 %v7632_v29  ;;  %6699 = vmatprep.subr.bf16.mxu0 %v7636_v15 }
  0x2e   :  { %6558 = vmatmul.mubr.msk.bf16.gmra.mrb[8].mxu0 %vm218_vm0, %v7915_v25 }
  0x2f   :  { %6561 = vmatprep.mubr.msk.bf16.mxu0 %vm218_vm0, %v7920_v27 }
  0x30   :  { %6700 = vmatpush3.bf16.msra.mxu0 %v7636_v15 }
  0x31   :  { %6701 = vmatprep.subr.bf16.mxu0 %v7637_v30 }
  0x34   :  { %6702 = vmatpush3.bf16.msra.mxu0 %v7637_v30 }
  0x35   :  { %6703 = vmatprep.subr.bf16.mxu0 %v7638_v49 }
  0x36   :  { %6562 = vmatmul.mubr.msk.bf16.gmra.mrb[12].mxu0 %vm218_vm0, %v7941_v33 }
  0x37   :  { %6565 = vmatprep.mubr.msk.bf16.mxu0 %vm218_vm0, %v7946_v35 }
  0x38   :  { %6704 = vmatpush3.bf16.msra.mxu0 %v7638_v49 }
  0x3e   :  { %6566 = vmatmul.mubr.msk.bf16.gmra.mrb[16].mxu0 %vm218_vm0, %v7967_v41 }
  0x3f   :  { %6569 = vmatprep.mubr.msk.bf16.mxu0 %vm218_vm0, %v7969_v42 }
  0x46   :  { %6570 = vmatmul.mubr.msk.bf16.gmra.mrb[20].mxu0 %vm218_vm0, %v7987_v47 }
  0x47   :  { %6573 = vmatprep.mubr.msk.bf16.mxu0 %vm218_vm0, %v7989_v48 }
  0x4e   :  { %6574 = vmatmul.mubr.msk.bf16.gmra.mrb[24].mxu0 %vm218_vm0, %v8007_v53 }
  0x4f   :  { %6577 = vmatprep.mubr.msk.bf16.mxu0 %vm218_vm0, %v8009_v54 }
  0x56   :  { %6578 = vmatmul.mubr.msk.bf16.gmra.mrb[28].mxu0 %vm218_vm0, %v8027_v59 }
  0x57   :  { %6581 = vmatprep.mubr.msk.bf16.mxu0 %vm218_vm0, %v8029_v60 }
  0x5e   :  { %6582 = vmatmul.mubr.msk.bf16.gmra.mrb[32].mxu0 %vm218_vm0, %v8047_v1 }
  0x5f   :  { %6585 = vmatprep.mubr.msk.bf16.mxu0 %vm218_vm0, %v8049_v2 }
  0x66   :  { %6586 = vmatmul.mubr.msk.bf16.gmra.mrb[36].mxu0 %vm218_vm0, %v8067_v8 }
  0x67   :  { %6589 = vmatprep.mubr.msk.bf16.mxu0 %vm218_vm0, %v8069_v9 }
  0x6e   :  { %6590 = vmatmul.mubr.msk.bf16.gmra.mrb[40].mxu0 %vm218_vm0, %v8087_v16 }
  0x6f   :  { %6593 = vmatprep.mubr.msk.bf16.mxu0 %vm218_vm0, %v8089_v19 }
  0x76   :  { %6594 = vmatmul.mubr.msk.bf16.gmra.mrb[44].mxu0 %vm218_vm0, %v8107_v24 }
  0x77   :  { %6597 = vmatprep.mubr.msk.bf16.mxu0 %vm218_vm0, %v8112_v28 }
  0x7e   :  { %6598 = vmatmul.mubr.msk.bf16.gmra.mrb[48].mxu0 %vm218_vm0, %v8133_v36 }
  0x7f   :  { %6601 = vmatprep.mubr.msk.bf16.mxu0 %vm218_vm0, %v8135_v37 }
  0x86   :  { %6602 = vmatmul.mubr.msk.bf16.gmra.mrb[52].mxu0 %vm218_vm0, %v8153_v44 }
  0x87   :  { %6605 = vmatprep.mubr.msk.bf16.mxu0 %vm218_vm0, %v8155_v45 }
  0x8e   :  { %6606 = vmatmul.mubr.msk.bf16.gmra.mrb[56].mxu0 %vm218_vm0, %v8173_v52 }
  0x8f   :  { %6609 = vmatprep.mubr.msk.bf16.mxu0 %vm218_vm0, %v8175_v55 }
  0x96   :  { %6610 = vmatmul.mubr.msk.bf16.gmra.mrb[60].mxu0 %vm218_vm0, %v8187_v58 }
  0xf1   :  { %v6551_v0 = vpop.f32.mrb[0].mxu0 }
  0xf2   :  { %v358_v3 = vadd.f32 %v6551_v0, %v8200_v63  ;;  %v349_v4 = vpop.f32.mrb[1].mxu0  ;;  %v7639_v0 = vld [vmem:[%s9933_s9 + $0x30] sm:$0xff]  }
  0xf3   :  { %v6552_v6 = vpop.f32.mrb[2].mxu0  ;;  %v350_v7 = vadd.f32 %v8200_v63, %v349_v4  ;;  %6705 = vmatprep.subr.bf16.mxu0 %v7639_v0 }
  0xf4   :  { %v361_v10 = vadd.f32 %v6552_v6, %v8200_v63  ;;  %v352_v13 = vpop.f32.mrb[3].mxu0  ;;  %v606_v21 = vmax.f32 %v358_v3, 0.0  ;;  %6706 = vmatpush3.bf16.msra.mxu0 %v7639_v0 }
  0xf5   :  { %v353_v20 = vadd.f32 %v8200_v63, %v352_v13  ;;  %v604_v23 = vmax.f32 %v350_v7, 0.0 }
  0xf6   :  { %v607_v22 = vmax.f32 %v361_v10, 0.0 }
  0xf7   :  { %v605_v26 = vmax.f32 %v353_v20, 0.0  ;;  %v7640_v20 = vld [vmem:[%s9933_s9 + $0x38] sm:$0xff]  }
  0xf8   :  { %v669_v29 = vpack.c.bf16 %v607_v22, %v606_v21  ;;  %6707 = vmatprep.subr.bf16.mxu0 %v7640_v20 }
  0xf9   :  { %v6555_v31 = vpop.f32.mrb[4].mxu0  ;;  %v668_v32 = vpack.c.bf16 %v605_v26, %v604_v23  ;;  %6708 = vmatpush3.bf16.msra.mxu0 %v7640_v20 }
  0xfa   :  { %v374_v34 = vadd.f32 %v6555_v31, %v8200_v63  ;;  %v365_v38 = vpop.f32.mrb[5].mxu0 }
  0xfb   :  { %v366_v39 = vadd.f32 %v8200_v63, %v365_v38  ;;  %v6556_v40 = vpop.f32.mrb[6].mxu0  ;;  %6629 = vmatprep.mubr.bf16.mxu1 %v668_v32 }
  0xfc   :  { %v377_v43 = vadd.f32 %v6556_v40, %v8200_v63  ;;  %v368_v46 = vpop.f32.mrb[7].mxu0  ;;  %6630 = vmatmul.mubr.bf16.vlgmr.msra.gmra.mrb[0].mxu1 %v669_v29  ;;  %v610_v51 = vmax.f32 %v374_v34, 0.0 }
  0xfd   :  { %v369_v50 = vadd.f32 %v8200_v63, %v368_v46  ;;  %v608_v57 = vmax.f32 %v366_v39, 0.0 }
  0xfe   :  { %v611_v56 = vmax.f32 %v377_v43, 0.0 }
  0xff   :  { %v609_v61 = vmax.f32 %v369_v50, 0.0 }
 0x100   :  { %v671_v62 = vpack.c.bf16 %v611_v56, %v610_v51 }
 0x101   :  { %v6559_v3 = vpop.f32.mrb[8].mxu0  ;;  %v670_v4 = vpack.c.bf16 %v609_v61, %v608_v57 }
 0x102   :  { %v390_v6 = vadd.f32 %v6559_v3, %v8200_v63  ;;  %v381_v7 = vpop.f32.mrb[9].mxu0 }
 0x103   :  { %v382_v10 = vadd.f32 %v8200_v63, %v381_v7  ;;  %v6560_v13 = vpop.f32.mrb[10].mxu0  ;;  %6633 = vmatprep.mubr.bf16.mxu1 %v670_v4 }
 0x104   :  { %v393_v14 = vadd.f32 %v6560_v13, %v8200_v63  ;;  %v384_v15 = vpop.f32.mrb[11].mxu0  ;;  %6634 = vmatmul.mubr.bf16.gmra.mrb[4].mxu1 %v671_v62  ;;  %v614_v22 = vmax.f32 %v390_v6, 0.0 }
 0x105   :  { %v385_v21 = vadd.f32 %v8200_v63, %v384_v15  ;;  %v612_v26 = vmax.f32 %v382_v10, 0.0 }
 0x106   :  { %v615_v23 = vmax.f32 %v393_v14, 0.0 }
 0x107   :  { %v613_v29 = vmax.f32 %v385_v21, 0.0 }
 0x108   :  { %v673_v30 = vpack.c.bf16 %v615_v23, %v614_v22 }
 0x109   :  { %v6563_v31 = vpop.f32.mrb[12].mxu0  ;;  %v672_v32 = vpack.c.bf16 %v613_v29, %v612_v26 }
 0x10a   :  { %v406_v34 = vadd.f32 %v6563_v31, %v8200_v63  ;;  %v397_v38 = vpop.f32.mrb[13].mxu0 }
 0x10b   :  { %v398_v39 = vadd.f32 %v8200_v63, %v397_v38  ;;  %v6564_v40 = vpop.f32.mrb[14].mxu0  ;;  %6637 = vmatprep.mubr.bf16.mxu1 %v672_v32 }
 0x10c   :  { %v409_v43 = vadd.f32 %v6564_v40, %v8200_v63  ;;  %v400_v46 = vpop.f32.mrb[15].mxu0  ;;  %6638 = vmatmul.mubr.bf16.gmra.mrb[8].mxu1 %v673_v30  ;;  %v618_v50 = vmax.f32 %v406_v34, 0.0 }
 0x10d   :  { %v401_v49 = vadd.f32 %v8200_v63, %v400_v46  ;;  %v616_v56 = vmax.f32 %v398_v39, 0.0 }
 0x10e   :  { %v619_v51 = vmax.f32 %v409_v43, 0.0 }
 0x10f   :  { %v617_v57 = vmax.f32 %v401_v49, 0.0 }
 0x110   :  { %v675_v61 = vpack.c.bf16 %v619_v51, %v618_v50 }
 0x111   :  { %v6567_v62 = vpop.f32.mrb[16].mxu0  ;;  %v674_v0 = vpack.c.bf16 %v617_v57, %v616_v56 }
 0x112   :  { %v422_v3 = vadd.f32 %v6567_v62, %v8200_v63  ;;  %v413_v4 = vpop.f32.mrb[17].mxu0 }
 0x113   :  { %v414_v6 = vadd.f32 %v8200_v63, %v413_v4  ;;  %v6568_v7 = vpop.f32.mrb[18].mxu0  ;;  %6641 = vmatprep.mubr.bf16.mxu1 %v674_v0 }
 0x114   :  { %v425_v10 = vadd.f32 %v6568_v7, %v8200_v63  ;;  %v416_v13 = vpop.f32.mrb[19].mxu0  ;;  %6642 = vmatmul.mubr.bf16.gmra.mrb[12].mxu1 %v675_v61  ;;  %v622_v15 = vmax.f32 %v422_v3, 0.0 }
 0x115   :  { %v417_v14 = vadd.f32 %v8200_v63, %v416_v13  ;;  %v620_v21 = vmax.f32 %v414_v6, 0.0 }
 0x116   :  { %v623_v20 = vmax.f32 %v425_v10, 0.0 }
 0x117   :  { %v621_v22 = vmax.f32 %v417_v14, 0.0 }
 0x118   :  { %v677_v23 = vpack.c.bf16 %v623_v20, %v622_v15 }
 0x119   :  { %v6571_v26 = vpop.f32.mrb[20].mxu0  ;;  %v676_v29 = vpack.c.bf16 %v621_v22, %v620_v21 }
 0x11a   :  { %v438_v30 = vadd.f32 %v6571_v26, %v8200_v63  ;;  %v429_v31 = vpop.f32.mrb[21].mxu0 }
 0x11b   :  { %v430_v32 = vadd.f32 %v8200_v63, %v429_v31  ;;  %v6572_v34 = vpop.f32.mrb[22].mxu0  ;;  %6645 = vmatprep.mubr.bf16.mxu1 %v676_v29 }
 0x11c   :  { %v441_v38 = vadd.f32 %v6572_v34, %v8200_v63  ;;  %v432_v39 = vpop.f32.mrb[23].mxu0  ;;  %6646 = vmatmul.mubr.bf16.gmra.mrb[16].mxu1 %v677_v23  ;;  %v626_v43 = vmax.f32 %v438_v30, 0.0 }
 0x11d   :  { %v433_v40 = vadd.f32 %v8200_v63, %v432_v39  ;;  %v624_v49 = vmax.f32 %v430_v32, 0.0 }
 0x11e   :  { %v627_v46 = vmax.f32 %v441_v38, 0.0 }
 0x11f   :  { %v625_v50 = vmax.f32 %v433_v40, 0.0 }
 0x120   :  { %v679_v51 = vpack.c.bf16 %v627_v46, %v626_v43 }
 0x121   :  { %v6575_v56 = vpop.f32.mrb[24].mxu0  ;;  %v678_v57 = vpack.c.bf16 %v625_v50, %v624_v49 }
 0x122   :  { %v454_v61 = vadd.f32 %v6575_v56, %v8200_v63  ;;  %v445_v62 = vpop.f32.mrb[25].mxu0 }
 0x123   :  { %v446_v0 = vadd.f32 %v8200_v63, %v445_v62  ;;  %v6576_v3 = vpop.f32.mrb[26].mxu0  ;;  %6649 = vmatprep.mubr.bf16.mxu1 %v678_v57 }
 0x124   :  { %v457_v4 = vadd.f32 %v6576_v3, %v8200_v63  ;;  %v448_v6 = vpop.f32.mrb[27].mxu0  ;;  %6650 = vmatmul.mubr.bf16.gmra.mrb[20].mxu1 %v679_v51  ;;  %v630_v10 = vmax.f32 %v454_v61, 0.0 }
 0x125   :  { %v449_v7 = vadd.f32 %v8200_v63, %v448_v6  ;;  %v628_v14 = vmax.f32 %v446_v0, 0.0 }
 0x126   :  { %v631_v13 = vmax.f32 %v457_v4, 0.0 }
 0x127   :  { %v629_v15 = vmax.f32 %v449_v7, 0.0 }
 0x128   :  { %v681_v20 = vpack.c.bf16 %v631_v13, %v630_v10 }
 0x129   :  { %v6579_v21 = vpop.f32.mrb[28].mxu0  ;;  %v680_v22 = vpack.c.bf16 %v629_v15, %v628_v14 }
 0x12a   :  { %v470_v23 = vadd.f32 %v6579_v21, %v8200_v63  ;;  %v461_v26 = vpop.f32.mrb[29].mxu0 }
 0x12b   :  { %v462_v29 = vadd.f32 %v8200_v63, %v461_v26  ;;  %v6580_v30 = vpop.f32.mrb[30].mxu0  ;;  %6653 = vmatprep.mubr.bf16.mxu1 %v680_v22 }
 0x12c   :  { %v473_v31 = vadd.f32 %v6580_v30, %v8200_v63  ;;  %v464_v32 = vpop.f32.mrb[31].mxu0  ;;  %6654 = vmatmul.mubr.bf16.gmra.mrb[24].mxu1 %v681_v20  ;;  %v634_v38 = vmax.f32 %v470_v23, 0.0 }
 0x12d   :  { %v465_v34 = vadd.f32 %v8200_v63, %v464_v32  ;;  %v632_v40 = vmax.f32 %v462_v29, 0.0 }
 0x12e   :  { %v635_v39 = vmax.f32 %v473_v31, 0.0 }
 0x12f   :  { %v633_v43 = vmax.f32 %v465_v34, 0.0 }
 0x130   :  { %v683_v46 = vpack.c.bf16 %v635_v39, %v634_v38 }
 0x131   :  { %v6583_v49 = vpop.f32.mrb[32].mxu0  ;;  %v682_v50 = vpack.c.bf16 %v633_v43, %v632_v40 }
 0x132   :  { %v486_v51 = vadd.f32 %v6583_v49, %v8200_v63  ;;  %v477_v56 = vpop.f32.mrb[33].mxu0 }
 0x133   :  { %v478_v57 = vadd.f32 %v8200_v63, %v477_v56  ;;  %v6584_v61 = vpop.f32.mrb[34].mxu0  ;;  %6657 = vmatprep.mubr.bf16.mxu1 %v682_v50 }
 0x134   :  { %v489_v62 = vadd.f32 %v6584_v61, %v8200_v63  ;;  %v480_v0 = vpop.f32.mrb[35].mxu0  ;;  %6658 = vmatmul.mubr.bf16.gmra.mrb[28].mxu1 %v683_v46  ;;  %v638_v4 = vmax.f32 %v486_v51, 0.0 }
 0x135   :  { %v481_v3 = vadd.f32 %v8200_v63, %v480_v0  ;;  %v636_v7 = vmax.f32 %v478_v57, 0.0 }
 0x136   :  { %v639_v6 = vmax.f32 %v489_v62, 0.0 }
 0x137   :  { %v637_v10 = vmax.f32 %v481_v3, 0.0 }
 0x138   :  { %v685_v13 = vpack.c.bf16 %v639_v6, %v638_v4 }
 0x139   :  { %v6587_v14 = vpop.f32.mrb[36].mxu0  ;;  %v684_v15 = vpack.c.bf16 %v637_v10, %v636_v7 }
 0x13a   :  { %v502_v20 = vadd.f32 %v6587_v14, %v8200_v63  ;;  %v493_v21 = vpop.f32.mrb[37].mxu0 }
 0x13b   :  { %v494_v22 = vadd.f32 %v8200_v63, %v493_v21  ;;  %v6588_v23 = vpop.f32.mrb[38].mxu0  ;;  %6661 = vmatprep.mubr.bf16.mxu1 %v684_v15 }
 0x13c   :  { %v505_v26 = vadd.f32 %v6588_v23, %v8200_v63  ;;  %v496_v29 = vpop.f32.mrb[39].mxu0  ;;  %6662 = vmatmul.mubr.bf16.gmra.mrb[32].mxu1 %v685_v13  ;;  %v642_v31 = vmax.f32 %v502_v20, 0.0 }
 0x13d   :  { %v497_v30 = vadd.f32 %v8200_v63, %v496_v29  ;;  %v640_v34 = vmax.f32 %v494_v22, 0.0 }
 0x13e   :  { %v643_v32 = vmax.f32 %v505_v26, 0.0 }
 0x13f   :  { %v641_v38 = vmax.f32 %v497_v30, 0.0 }
 0x140   :  { %v687_v39 = vpack.c.bf16 %v643_v32, %v642_v31 }
 0x141   :  { %v6591_v40 = vpop.f32.mrb[40].mxu0  ;;  %v686_v43 = vpack.c.bf16 %v641_v38, %v640_v34 }
 0x142   :  { %v518_v46 = vadd.f32 %v6591_v40, %v8200_v63  ;;  %v509_v49 = vpop.f32.mrb[41].mxu0 }
 0x143   :  { %v510_v50 = vadd.f32 %v8200_v63, %v509_v49  ;;  %v6592_v51 = vpop.f32.mrb[42].mxu0  ;;  %6665 = vmatprep.mubr.bf16.mxu1 %v686_v43 }
 0x144   :  { %v521_v56 = vadd.f32 %v6592_v51, %v8200_v63  ;;  %v512_v57 = vpop.f32.mrb[43].mxu0  ;;  %6666 = vmatmul.mubr.bf16.gmra.mrb[36].mxu1 %v687_v39  ;;  %v646_v62 = vmax.f32 %v518_v46, 0.0 }
 0x145   :  { %v513_v61 = vadd.f32 %v8200_v63, %v512_v57  ;;  %v644_v3 = vmax.f32 %v510_v50, 0.0 }
 0x146   :  { %v647_v0 = vmax.f32 %v521_v56, 0.0 }
 0x147   :  { %v645_v4 = vmax.f32 %v513_v61, 0.0 }
 0x148   :  { %v689_v6 = vpack.c.bf16 %v647_v0, %v646_v62 }
 0x149   :  { %v6595_v7 = vpop.f32.mrb[44].mxu0  ;;  %v688_v10 = vpack.c.bf16 %v645_v4, %v644_v3 }
 0x14a   :  { %v534_v13 = vadd.f32 %v6595_v7, %v8200_v63  ;;  %v525_v14 = vpop.f32.mrb[45].mxu0 }
 0x14b   :  { %v526_v15 = vadd.f32 %v8200_v63, %v525_v14  ;;  %v6596_v20 = vpop.f32.mrb[46].mxu0  ;;  %6669 = vmatprep.mubr.bf16.mxu1 %v688_v10 }
 0x14c   :  { %v537_v21 = vadd.f32 %v6596_v20, %v8200_v63  ;;  %v528_v22 = vpop.f32.mrb[47].mxu0  ;;  %6670 = vmatmul.mubr.bf16.gmra.mrb[40].mxu1 %v689_v6  ;;  %v650_v26 = vmax.f32 %v534_v13, 0.0 }
 0x14d   :  { %v529_v23 = vadd.f32 %v8200_v63, %v528_v22  ;;  %v648_v30 = vmax.f32 %v526_v15, 0.0 }
 0x14e   :  { %v651_v29 = vmax.f32 %v537_v21, 0.0 }
 0x14f   :  { %v649_v31 = vmax.f32 %v529_v23, 0.0 }
 0x150   :  { %v691_v32 = vpack.c.bf16 %v651_v29, %v650_v26 }
 0x151   :  { %v6599_v34 = vpop.f32.mrb[48].mxu0  ;;  %v690_v38 = vpack.c.bf16 %v649_v31, %v648_v30 }
 0x152   :  { %v550_v39 = vadd.f32 %v6599_v34, %v8200_v63  ;;  %v541_v40 = vpop.f32.mrb[49].mxu0 }
 0x153   :  { %v542_v43 = vadd.f32 %v8200_v63, %v541_v40  ;;  %v6600_v46 = vpop.f32.mrb[50].mxu0  ;;  %6673 = vmatprep.mubr.bf16.mxu1 %v690_v38 }
 0x154   :  { %v553_v49 = vadd.f32 %v6600_v46, %v8200_v63  ;;  %v544_v50 = vpop.f32.mrb[51].mxu0  ;;  %6674 = vmatmul.mubr.bf16.gmra.mrb[44].mxu1 %v691_v32  ;;  %v654_v56 = vmax.f32 %v550_v39, 0.0 }
 0x155   :  { %v545_v51 = vadd.f32 %v8200_v63, %v544_v50  ;;  %v652_v61 = vmax.f32 %v542_v43, 0.0 }
 0x156   :  { %v655_v57 = vmax.f32 %v553_v49, 0.0 }
 0x157   :  { %v653_v62 = vmax.f32 %v545_v51, 0.0 }
 0x158   :  { %v693_v0 = vpack.c.bf16 %v655_v57, %v654_v56 }
 0x159   :  { %v6603_v3 = vpop.f32.mrb[52].mxu0  ;;  %v692_v4 = vpack.c.bf16 %v653_v62, %v652_v61 }
 0x15a   :  { %v566_v6 = vadd.f32 %v6603_v3, %v8200_v63  ;;  %v557_v7 = vpop.f32.mrb[53].mxu0 }
 0x15b   :  { %v558_v10 = vadd.f32 %v8200_v63, %v557_v7  ;;  %v6604_v13 = vpop.f32.mrb[54].mxu0  ;;  %6677 = vmatprep.mubr.bf16.mxu1 %v692_v4 }
 0x15c   :  { %v569_v14 = vadd.f32 %v6604_v13, %v8200_v63  ;;  %v560_v15 = vpop.f32.mrb[55].mxu0  ;;  %6678 = vmatmul.mubr.bf16.gmra.mrb[48].mxu1 %v693_v0  ;;  %v658_v21 = vmax.f32 %v566_v6, 0.0 }
 0x15d   :  { %v561_v20 = vadd.f32 %v8200_v63, %v560_v15  ;;  %v656_v23 = vmax.f32 %v558_v10, 0.0 }
 0x15e   :  { %v659_v22 = vmax.f32 %v569_v14, 0.0 }
 0x15f   :  { %v657_v26 = vmax.f32 %v561_v20, 0.0 }
 0x160   :  { %v695_v29 = vpack.c.bf16 %v659_v22, %v658_v21 }
 0x161   :  { %v6607_v30 = vpop.f32.mrb[56].mxu0  ;;  %v694_v31 = vpack.c.bf16 %v657_v26, %v656_v23  ;;  %v7641_v26 = vld [vmem:[%s9935_s1] sm:$0xff]  }
 0x162   :  { %v582_v32 = vadd.f32 %v6607_v30, %v8200_v63  ;;  %v573_v34 = vpop.f32.mrb[57].mxu0  ;;  %6773 = vmatprep.subr.bf16.mxu1 %v7641_v26 }
 0x163   :  { %v574_v38 = vadd.f32 %v8200_v63, %v573_v34  ;;  %v6608_v39 = vpop.f32.mrb[58].mxu0  ;;  %6681 = vmatprep.mubr.bf16.mxu1 %v694_v31  ;;  %6774 = vmatpush3.bf16.msra.mxu1 %v7641_v26 }
 0x164   :  { %v585_v40 = vadd.f32 %v6608_v39, %v8200_v63  ;;  %v576_v43 = vpop.f32.mrb[59].mxu0  ;;  %6682 = vmatmul.mubr.bf16.gmra.mrb[52].mxu1 %v695_v29  ;;  %v662_v49 = vmax.f32 %v582_v32, 0.0  ;;  %v7642_v29 = vld [vmem:[%s9935_s1 + $0x8] sm:$0xff]  }
 0x165   :  { %v577_v46 = vadd.f32 %v8200_v63, %v576_v43  ;;  %v660_v51 = vmax.f32 %v574_v38, 0.0  ;;  %6775 = vmatprep.subr.bf16.mxu1 %v7642_v29  ;;  %v7643_v43 = vld [vmem:[%s9935_s1 + $0x10] sm:$0xff]  }
 0x166   :  { %v663_v50 = vmax.f32 %v585_v40, 0.0 }
 0x167   :  { %v661_v56 = vmax.f32 %v577_v46, 0.0  ;;  %6776 = vmatpush3.bf16.msra.mxu1 %v7642_v29  ;;  %v7644_v46 = vld [vmem:[%s9935_s1 + $0x18] sm:$0xff]  }
 0x168   :  { %v697_v57 = vpack.c.bf16 %v663_v50, %v662_v49  ;;  %6777 = vmatprep.subr.bf16.mxu1 %v7643_v43 }
 0x169   :  { %v6611_v61 = vpop.f32.mrb[60].mxu0  ;;  %v696_v62 = vpack.c.bf16 %v661_v56, %v660_v51  ;;  %v7645_v56 = vld [vmem:[%s9935_s1 + $0x20] sm:$0xff]  }
 0x16a   :  { %v598_v0 = vadd.f32 %v6611_v61, %v8200_v63  ;;  %v589_v3 = vpop.f32.mrb[61].mxu0 }
 0x16b   :  { %v590_v4 = vadd.f32 %v8200_v63, %v589_v3  ;;  %v6612_v6 = vpop.f32.mrb[62].mxu0  ;;  %6685 = vmatprep.mubr.bf16.mxu1 %v696_v62  ;;  %6778 = vmatpush3.bf16.msra.mxu1 %v7643_v43 }
 0x16c   :  { %v601_v7 = vadd.f32 %v6612_v6, %v8200_v63  ;;  %v592_v10 = vpop.f32.mrb[63].mxu0  ;;  %6686 = vmatmul.mubr.bf16.gmra.mrb[56].mxu1 %v697_v57  ;;  %v666_v14 = vmax.f32 %v598_v0, 0.0  ;;  %v7647_v57 = vld [vmem:[%s9937_s2] sm:$0xff]   ;;  %6779 = vmatprep.subr.bf16.mxu1 %v7644_v46 }
 0x16d   :  { %v593_v13 = vadd.f32 %v8200_v63, %v592_v10  ;;  %v664_v20 = vmax.f32 %v590_v4, 0.0  ;;  %v8293_v63 = vld [vmem:[%s9936_s10] ss:$0 sm:$0xff]  ;;  %6853 = vmatprep.subr.bf16.mxu0 %v7647_v57  ;;  %s9939_s10 = sld [smem:[#allocation27_spill]] }
 0x16e   :  { %v667_v15 = vmax.f32 %v601_v7, 0.0 }
 0x16f   :  { %v665_v21 = vmax.f32 %v593_v13, 0.0  ;;  %6780 = vmatpush3.bf16.msra.mxu1 %v7644_v46 }
 0x170   :  { %v699_v22 = vpack.c.bf16 %v667_v15, %v666_v14  ;;  %6781 = vmatprep.subr.bf16.mxu1 %v7645_v56 }
 0x171   :  { %v698_v23 = vpack.c.bf16 %v665_v21, %v664_v20  ;;  %v7646_v20 = vld [vmem:[%s9935_s1 + $0x28] sm:$0xff]  }
 0x173   :  { %6689 = vmatprep.mubr.bf16.mxu1 %v698_v23  ;;  %6782 = vmatpush3.bf16.msra.mxu1 %v7645_v56 }
 0x174   :  { %6690 = vmatmul.mubr.bf16.gmra.mrb[60].mxu1 %v699_v22  ;;  %6783 = vmatprep.subr.bf16.mxu1 %v7646_v20 }
 0x177   :  { %6784 = vmatpush3.bf16.msra.mxu1 %v7646_v20 }
 0x1cf   :  { %v6631_v30 = vpop.f32.mrb[0].mxu1 }
 0x1d0   :  { %v814_v31 = vadd.f32 %v6631_v30, %v8293_v63  ;;  %v805_v32 = vpop.f32.mrb[1].mxu1 }
 0x1d1   :  { %v806_v34 = vadd.f32 %v8293_v63, %v805_v32  ;;  %v6632_v38 = vpop.f32.mrb[2].mxu1 }
 0x1d2   :  { %v817_v39 = vadd.f32 %v6632_v38, %v8293_v63  ;;  %v808_v40 = vpop.f32.mrb[3].mxu1  ;;  %v1062_v50 = vmax.f32 %v814_v31, 0.0  ;;  %v7648_v31 = vld [vmem:[%s9935_s1 + $0x30] sm:$0xff]  }
 0x1d3   :  { %v809_v49 = vadd.f32 %v8293_v63, %v808_v40  ;;  %v1060_v61 = vmax.f32 %v806_v34, 0.0  ;;  %6785 = vmatprep.subr.bf16.mxu1 %v7648_v31 }
 0x1d4   :  { %v1063_v51 = vmax.f32 %v817_v39, 0.0  ;;  %6786 = vmatpush3.bf16.msra.mxu1 %v7648_v31 }
 0x1d5   :  { %v1061_v62 = vmax.f32 %v809_v49, 0.0 }
 0x1d6   :  { %v1125_v0 = vpack.c.bf16 %v1063_v51, %v1062_v50  ;;  %v7649_v50 = vld [vmem:[%s9935_s1 + $0x38] sm:$0xff]  }
 0x1d7   :  { %v6635_v3 = vpop.f32.mrb[4].mxu1  ;;  %v1124_v4 = vpack.c.bf16 %v1061_v62, %v1060_v61  ;;  %6787 = vmatprep.subr.bf16.mxu1 %v7649_v50 }
 0x1d8   :  { %v830_v6 = vadd.f32 %v6635_v3, %v8293_v63  ;;  %v821_v7 = vpop.f32.mrb[5].mxu1  ;;  %6788 = vmatpush3.bf16.msra.mxu1 %v7649_v50 }
 0x1d9   :  { %v822_v10 = vadd.f32 %v8293_v63, %v821_v7  ;;  %v6636_v13 = vpop.f32.mrb[6].mxu1  ;;  %6709 = vmatprep.mubr.bf16.mxu0 %v1124_v4 }
 0x1da   :  { %v833_v14 = vadd.f32 %v6636_v13, %v8293_v63  ;;  %v824_v15 = vpop.f32.mrb[7].mxu1  ;;  %6710 = vmatmul.mubr.bf16.vlgmr.msra.gmra.mrb[64].mxu0 %v1125_v0  ;;  %v1066_v22 = vmax.f32 %v830_v6, 0.0 }
 0x1db   :  { %v825_v21 = vadd.f32 %v8293_v63, %v824_v15  ;;  %6854 = vmatpush3.bf16.msra.mxu0 %v7647_v57  ;;  %v1064_v26 = vmax.f32 %v822_v10, 0.0 }
 0x1dc   :  { %v1067_v23 = vmax.f32 %v833_v14, 0.0 }
 0x1dd   :  { %v1065_v29 = vmax.f32 %v825_v21, 0.0 }
 0x1de   :  { %v1127_v30 = vpack.c.bf16 %v1067_v23, %v1066_v22 }
 0x1df   :  { %v6639_v32 = vpop.f32.mrb[8].mxu1  ;;  %v1126_v34 = vpack.c.bf16 %v1065_v29, %v1064_v26 }
 0x1e0   :  { %v846_v38 = vadd.f32 %v6639_v32, %v8293_v63  ;;  %v837_v39 = vpop.f32.mrb[9].mxu1 }
 0x1e1   :  { %v838_v40 = vadd.f32 %v8293_v63, %v837_v39  ;;  %v6640_v43 = vpop.f32.mrb[10].mxu1  ;;  %6713 = vmatprep.mubr.bf16.mxu0 %v1126_v34 }
 0x1e2   :  { %v849_v46 = vadd.f32 %v6640_v43, %v8293_v63  ;;  %v840_v49 = vpop.f32.mrb[11].mxu1  ;;  %6714 = vmatmul.mubr.bf16.gmra.mrb[68].mxu0 %v1127_v30  ;;  %v1070_v56 = vmax.f32 %v846_v38, 0.0 }
 0x1e3   :  { %v841_v51 = vadd.f32 %v8293_v63, %v840_v49  ;;  %v1068_v61 = vmax.f32 %v838_v40, 0.0 }
 0x1e4   :  { %v1071_v57 = vmax.f32 %v849_v46, 0.0 }
 0x1e5   :  { %v1069_v62 = vmax.f32 %v841_v51, 0.0 }
 0x1e6   :  { %v1129_v0 = vpack.c.bf16 %v1071_v57, %v1070_v56 }
 0x1e7   :  { %v6643_v3 = vpop.f32.mrb[12].mxu1  ;;  %v1128_v4 = vpack.c.bf16 %v1069_v62, %v1068_v61 }
 0x1e8   :  { %v862_v6 = vadd.f32 %v6643_v3, %v8293_v63  ;;  %v853_v7 = vpop.f32.mrb[13].mxu1 }
 0x1e9   :  { %v854_v10 = vadd.f32 %v8293_v63, %v853_v7  ;;  %v6644_v13 = vpop.f32.mrb[14].mxu1  ;;  %6717 = vmatprep.mubr.bf16.mxu0 %v1128_v4 }
 0x1ea   :  { %v865_v14 = vadd.f32 %v6644_v13, %v8293_v63  ;;  %v856_v15 = vpop.f32.mrb[15].mxu1  ;;  %6718 = vmatmul.mubr.bf16.gmra.mrb[72].mxu0 %v1129_v0  ;;  %v1074_v21 = vmax.f32 %v862_v6, 0.0 }
 0x1eb   :  { %v857_v20 = vadd.f32 %v8293_v63, %v856_v15  ;;  %v1072_v23 = vmax.f32 %v854_v10, 0.0 }
 0x1ec   :  { %v1075_v22 = vmax.f32 %v865_v14, 0.0 }
 0x1ed   :  { %v1073_v26 = vmax.f32 %v857_v20, 0.0 }
 0x1ee   :  { %v1131_v29 = vpack.c.bf16 %v1075_v22, %v1074_v21 }
 0x1ef   :  { %v6647_v30 = vpop.f32.mrb[16].mxu1  ;;  %v1130_v31 = vpack.c.bf16 %v1073_v26, %v1072_v23 }
 0x1f0   :  { %v878_v32 = vadd.f32 %v6647_v30, %v8293_v63  ;;  %v869_v34 = vpop.f32.mrb[17].mxu1 }
 0x1f1   :  { %v870_v38 = vadd.f32 %v8293_v63, %v869_v34  ;;  %v6648_v39 = vpop.f32.mrb[18].mxu1  ;;  %6721 = vmatprep.mubr.bf16.mxu0 %v1130_v31 }
 0x1f2   :  { %v881_v40 = vadd.f32 %v6648_v39, %v8293_v63  ;;  %v872_v43 = vpop.f32.mrb[19].mxu1  ;;  %6722 = vmatmul.mubr.bf16.gmra.mrb[76].mxu0 %v1131_v29  ;;  %v1078_v49 = vmax.f32 %v878_v32, 0.0 }
 0x1f3   :  { %v873_v46 = vadd.f32 %v8293_v63, %v872_v43  ;;  %v1076_v51 = vmax.f32 %v870_v38, 0.0 }
 0x1f4   :  { %v1079_v50 = vmax.f32 %v881_v40, 0.0 }
 0x1f5   :  { %v1077_v56 = vmax.f32 %v873_v46, 0.0 }
 0x1f6   :  { %v1133_v57 = vpack.c.bf16 %v1079_v50, %v1078_v49 }
 0x1f7   :  { %v6651_v61 = vpop.f32.mrb[20].mxu1  ;;  %v1132_v62 = vpack.c.bf16 %v1077_v56, %v1076_v51 }
 0x1f8   :  { %v894_v0 = vadd.f32 %v6651_v61, %v8293_v63  ;;  %v885_v3 = vpop.f32.mrb[21].mxu1 }
 0x1f9   :  { %v886_v4 = vadd.f32 %v8293_v63, %v885_v3  ;;  %v6652_v6 = vpop.f32.mrb[22].mxu1  ;;  %6725 = vmatprep.mubr.bf16.mxu0 %v1132_v62 }
 0x1fa   :  { %v897_v7 = vadd.f32 %v6652_v6, %v8293_v63  ;;  %v888_v10 = vpop.f32.mrb[23].mxu1  ;;  %6726 = vmatmul.mubr.bf16.gmra.mrb[80].mxu0 %v1133_v57  ;;  %v1082_v14 = vmax.f32 %v894_v0, 0.0 }
 0x1fb   :  { %v889_v13 = vadd.f32 %v8293_v63, %v888_v10  ;;  %v1080_v20 = vmax.f32 %v886_v4, 0.0 }
 0x1fc   :  { %v1083_v15 = vmax.f32 %v897_v7, 0.0 }
 0x1fd   :  { %v1081_v21 = vmax.f32 %v889_v13, 0.0 }
 0x1fe   :  { %v1135_v22 = vpack.c.bf16 %v1083_v15, %v1082_v14 }
 0x1ff   :  { %v6655_v23 = vpop.f32.mrb[24].mxu1  ;;  %v1134_v26 = vpack.c.bf16 %v1081_v21, %v1080_v20 }
 0x200   :  { %v910_v29 = vadd.f32 %v6655_v23, %v8293_v63  ;;  %v901_v30 = vpop.f32.mrb[25].mxu1 }
 0x201   :  { %v902_v31 = vadd.f32 %v8293_v63, %v901_v30  ;;  %v6656_v32 = vpop.f32.mrb[26].mxu1  ;;  %6729 = vmatprep.mubr.bf16.mxu0 %v1134_v26 }
 0x202   :  { %v913_v34 = vadd.f32 %v6656_v32, %v8293_v63  ;;  %v904_v38 = vpop.f32.mrb[27].mxu1  ;;  %6730 = vmatmul.mubr.bf16.gmra.mrb[84].mxu0 %v1135_v22  ;;  %v1086_v40 = vmax.f32 %v910_v29, 0.0 }
 0x203   :  { %v905_v39 = vadd.f32 %v8293_v63, %v904_v38  ;;  %v1084_v46 = vmax.f32 %v902_v31, 0.0 }
 0x204   :  { %v1087_v43 = vmax.f32 %v913_v34, 0.0 }
 0x205   :  { %v1085_v49 = vmax.f32 %v905_v39, 0.0 }
 0x206   :  { %v1137_v50 = vpack.c.bf16 %v1087_v43, %v1086_v40 }
 0x207   :  { %v6659_v51 = vpop.f32.mrb[28].mxu1  ;;  %v1136_v56 = vpack.c.bf16 %v1085_v49, %v1084_v46 }
 0x208   :  { %v926_v57 = vadd.f32 %v6659_v51, %v8293_v63  ;;  %v917_v61 = vpop.f32.mrb[29].mxu1 }
 0x209   :  { %v918_v62 = vadd.f32 %v8293_v63, %v917_v61  ;;  %v6660_v0 = vpop.f32.mrb[30].mxu1  ;;  %6733 = vmatprep.mubr.bf16.mxu0 %v1136_v56 }
 0x20a   :  { %v929_v3 = vadd.f32 %v6660_v0, %v8293_v63  ;;  %v920_v4 = vpop.f32.mrb[31].mxu1  ;;  %6734 = vmatmul.mubr.bf16.gmra.mrb[88].mxu0 %v1137_v50  ;;  %v1090_v7 = vmax.f32 %v926_v57, 0.0 }
 0x20b   :  { %v921_v6 = vadd.f32 %v8293_v63, %v920_v4  ;;  %v1088_v13 = vmax.f32 %v918_v62, 0.0 }
 0x20c   :  { %v1091_v10 = vmax.f32 %v929_v3, 0.0 }
 0x20d   :  { %v1089_v14 = vmax.f32 %v921_v6, 0.0 }
 0x20e   :  { %v1139_v15 = vpack.c.bf16 %v1091_v10, %v1090_v7 }
 0x20f   :  { %v6663_v20 = vpop.f32.mrb[32].mxu1  ;;  %v1138_v21 = vpack.c.bf16 %v1089_v14, %v1088_v13 }
 0x210   :  { %v942_v22 = vadd.f32 %v6663_v20, %v8293_v63  ;;  %v933_v23 = vpop.f32.mrb[33].mxu1 }
 0x211   :  { %v934_v26 = vadd.f32 %v8293_v63, %v933_v23  ;;  %v6664_v29 = vpop.f32.mrb[34].mxu1  ;;  %6737 = vmatprep.mubr.bf16.mxu0 %v1138_v21 }
 0x212   :  { %v945_v30 = vadd.f32 %v6664_v29, %v8293_v63  ;;  %v936_v31 = vpop.f32.mrb[35].mxu1  ;;  %6738 = vmatmul.mubr.bf16.gmra.mrb[92].mxu0 %v1139_v15  ;;  %v1094_v34 = vmax.f32 %v942_v22, 0.0 }
 0x213   :  { %v937_v32 = vadd.f32 %v8293_v63, %v936_v31  ;;  %v1092_v39 = vmax.f32 %v934_v26, 0.0 }
 0x214   :  { %v1095_v38 = vmax.f32 %v945_v30, 0.0 }
 0x215   :  { %v1093_v40 = vmax.f32 %v937_v32, 0.0 }
 0x216   :  { %v1141_v43 = vpack.c.bf16 %v1095_v38, %v1094_v34 }
 0x217   :  { %v6667_v46 = vpop.f32.mrb[36].mxu1  ;;  %v1140_v49 = vpack.c.bf16 %v1093_v40, %v1092_v39 }
 0x218   :  { %v958_v50 = vadd.f32 %v6667_v46, %v8293_v63  ;;  %v949_v51 = vpop.f32.mrb[37].mxu1 }
 0x219   :  { %v950_v56 = vadd.f32 %v8293_v63, %v949_v51  ;;  %v6668_v57 = vpop.f32.mrb[38].mxu1  ;;  %6741 = vmatprep.mubr.bf16.mxu0 %v1140_v49 }
 0x21a   :  { %v961_v61 = vadd.f32 %v6668_v57, %v8293_v63  ;;  %v952_v62 = vpop.f32.mrb[39].mxu1  ;;  %6742 = vmatmul.mubr.bf16.gmra.mrb[96].mxu0 %v1141_v43  ;;  %v1098_v3 = vmax.f32 %v958_v50, 0.0 }
 0x21b   :  { %v953_v0 = vadd.f32 %v8293_v63, %v952_v62  ;;  %v1096_v6 = vmax.f32 %v950_v56, 0.0 }
 0x21c   :  { %v1099_v4 = vmax.f32 %v961_v61, 0.0 }
 0x21d   :  { %v1097_v7 = vmax.f32 %v953_v0, 0.0 }
 0x21e   :  { %v1143_v10 = vpack.c.bf16 %v1099_v4, %v1098_v3 }
 0x21f   :  { %v6671_v13 = vpop.f32.mrb[40].mxu1  ;;  %v1142_v14 = vpack.c.bf16 %v1097_v7, %v1096_v6 }
 0x220   :  { %v974_v15 = vadd.f32 %v6671_v13, %v8293_v63  ;;  %v965_v20 = vpop.f32.mrb[41].mxu1 }
 0x221   :  { %v966_v21 = vadd.f32 %v8293_v63, %v965_v20  ;;  %v6672_v22 = vpop.f32.mrb[42].mxu1  ;;  %6745 = vmatprep.mubr.bf16.mxu0 %v1142_v14 }
 0x222   :  { %v977_v23 = vadd.f32 %v6672_v22, %v8293_v63  ;;  %v968_v26 = vpop.f32.mrb[43].mxu1  ;;  %6746 = vmatmul.mubr.bf16.gmra.mrb[100].mxu0 %v1143_v10  ;;  %v1102_v30 = vmax.f32 %v974_v15, 0.0 }
 0x223   :  { %v969_v29 = vadd.f32 %v8293_v63, %v968_v26  ;;  %v1100_v32 = vmax.f32 %v966_v21, 0.0 }
 0x224   :  { %v1103_v31 = vmax.f32 %v977_v23, 0.0 }
 0x225   :  { %v1101_v34 = vmax.f32 %v969_v29, 0.0 }
 0x226   :  { %v1145_v38 = vpack.c.bf16 %v1103_v31, %v1102_v30 }
 0x227   :  { %v6675_v39 = vpop.f32.mrb[44].mxu1  ;;  %v1144_v40 = vpack.c.bf16 %v1101_v34, %v1100_v32 }
 0x228   :  { %v990_v43 = vadd.f32 %v6675_v39, %v8293_v63  ;;  %v981_v46 = vpop.f32.mrb[45].mxu1 }
 0x229   :  { %v982_v49 = vadd.f32 %v8293_v63, %v981_v46  ;;  %v6676_v50 = vpop.f32.mrb[46].mxu1  ;;  %6749 = vmatprep.mubr.bf16.mxu0 %v1144_v40  ;;  %v7650_v40 = vld [vmem:[%s9937_s2 + $0x8] sm:$0xff]  }
 0x22a   :  { %v993_v51 = vadd.f32 %v6676_v50, %v8293_v63  ;;  %v984_v56 = vpop.f32.mrb[47].mxu1  ;;  %6750 = vmatmul.mubr.bf16.gmra.mrb[104].mxu0 %v1145_v38  ;;  %v1106_v61 = vmax.f32 %v990_v43, 0.0  ;;  %6855 = vmatprep.subr.bf16.mxu0 %v7650_v40 }
 0x22b   :  { %v985_v57 = vadd.f32 %v8293_v63, %v984_v56  ;;  %v1104_v0 = vmax.f32 %v982_v49, 0.0  ;;  %6856 = vmatpush3.bf16.msra.mxu0 %v7650_v40 }
 0x22c   :  { %v1107_v62 = vmax.f32 %v993_v51, 0.0 }
 0x22d   :  { %v1105_v3 = vmax.f32 %v985_v57, 0.0 }
 0x22e   :  { %v1147_v4 = vpack.c.bf16 %v1107_v62, %v1106_v61 }
 0x22f   :  { %v6679_v6 = vpop.f32.mrb[48].mxu1  ;;  %v1146_v7 = vpack.c.bf16 %v1105_v3, %v1104_v0 }
 0x230   :  { %v1006_v10 = vadd.f32 %v6679_v6, %v8293_v63  ;;  %v997_v13 = vpop.f32.mrb[49].mxu1 }
 0x231   :  { %v998_v14 = vadd.f32 %v8293_v63, %v997_v13  ;;  %v6680_v15 = vpop.f32.mrb[50].mxu1  ;;  %6753 = vmatprep.mubr.bf16.mxu0 %v1146_v7 }
 0x232   :  { %v1009_v20 = vadd.f32 %v6680_v15, %v8293_v63  ;;  %v1000_v21 = vpop.f32.mrb[51].mxu1  ;;  %6754 = vmatmul.mubr.bf16.gmra.mrb[108].mxu0 %v1147_v4  ;;  %v1110_v23 = vmax.f32 %v1006_v10, 0.0 }
 0x233   :  { %v1001_v22 = vadd.f32 %v8293_v63, %v1000_v21  ;;  %v1108_v29 = vmax.f32 %v998_v14, 0.0 }
 0x234   :  { %v1111_v26 = vmax.f32 %v1009_v20, 0.0 }
 0x235   :  { %v1109_v30 = vmax.f32 %v1001_v22, 0.0 }
 0x236   :  { %v1149_v31 = vpack.c.bf16 %v1111_v26, %v1110_v23 }
 0x237   :  { %v6683_v32 = vpop.f32.mrb[52].mxu1  ;;  %v1148_v34 = vpack.c.bf16 %v1109_v30, %v1108_v29 }
 0x238   :  { %v1022_v38 = vadd.f32 %v6683_v32, %v8293_v63  ;;  %v1013_v39 = vpop.f32.mrb[53].mxu1 }
 0x239   :  { %v1014_v43 = vadd.f32 %v8293_v63, %v1013_v39  ;;  %v6684_v46 = vpop.f32.mrb[54].mxu1  ;;  %6757 = vmatprep.mubr.bf16.mxu0 %v1148_v34 }
 0x23a   :  { %v1025_v49 = vadd.f32 %v6684_v46, %v8293_v63  ;;  %v1016_v50 = vpop.f32.mrb[55].mxu1  ;;  %6758 = vmatmul.mubr.bf16.gmra.mrb[112].mxu0 %v1149_v31  ;;  %v1114_v56 = vmax.f32 %v1022_v38, 0.0 }
 0x23b   :  { %v1017_v51 = vadd.f32 %v8293_v63, %v1016_v50  ;;  %v1112_v61 = vmax.f32 %v1014_v43, 0.0 }
 0x23c   :  { %v1115_v57 = vmax.f32 %v1025_v49, 0.0 }
 0x23d   :  { %v1113_v62 = vmax.f32 %v1017_v51, 0.0 }
 0x23e   :  { %v1151_v0 = vpack.c.bf16 %v1115_v57, %v1114_v56 }
 0x23f   :  { %v6687_v3 = vpop.f32.mrb[56].mxu1  ;;  %v1150_v4 = vpack.c.bf16 %v1113_v62, %v1112_v61  ;;  %v7651_v62 = vld [vmem:[%s9937_s2 + $0x10] sm:$0xff]  }
 0x240   :  { %v1038_v6 = vadd.f32 %v6687_v3, %v8293_v63  ;;  %v1029_v7 = vpop.f32.mrb[57].mxu1  ;;  %6857 = vmatprep.subr.bf16.mxu0 %v7651_v62 }
 0x241   :  { %v1030_v10 = vadd.f32 %v8293_v63, %v1029_v7  ;;  %v6688_v13 = vpop.f32.mrb[58].mxu1  ;;  %6761 = vmatprep.mubr.bf16.mxu0 %v1150_v4  ;;  %6858 = vmatpush3.bf16.msra.mxu0 %v7651_v62  ;;  %v8424_v4 = vld [vmem:[%s9939_s10] ss:$0 sm:$0xff] }
 0x242   :  { %v1041_v14 = vadd.f32 %v6688_v13, %v8293_v63  ;;  %v1032_v15 = vpop.f32.mrb[59].mxu1  ;;  %6762 = vmatmul.mubr.bf16.gmra.mrb[116].mxu0 %v1151_v0  ;;  %v1118_v21 = vmax.f32 %v1038_v6, 0.0 }
 0x243   :  { %v1033_v20 = vadd.f32 %v8293_v63, %v1032_v15  ;;  %v1116_v23 = vmax.f32 %v1030_v10, 0.0 }
 0x244   :  { %v1119_v22 = vmax.f32 %v1041_v14, 0.0 }
 0x245   :  { %v1117_v26 = vmax.f32 %v1033_v20, 0.0 }
 0x246   :  { %v1153_v29 = vpack.c.bf16 %v1119_v22, %v1118_v21 }
 0x247   :  { %v6691_v30 = vpop.f32.mrb[60].mxu1  ;;  %v1152_v31 = vpack.c.bf16 %v1117_v26, %v1116_v23 }
 0x248   :  { %v1054_v32 = vadd.f32 %v6691_v30, %v8293_v63  ;;  %v1045_v34 = vpop.f32.mrb[61].mxu1 }
 0x249   :  { %v1046_v38 = vadd.f32 %v8293_v63, %v1045_v34  ;;  %v6692_v39 = vpop.f32.mrb[62].mxu1  ;;  %6765 = vmatprep.mubr.bf16.mxu0 %v1152_v31 }
 0x24a   :  { %v1057_v40 = vadd.f32 %v6692_v39, %v8293_v63  ;;  %v1048_v43 = vpop.f32.mrb[63].mxu1  ;;  %6766 = vmatmul.mubr.bf16.gmra.mrb[120].mxu0 %v1153_v29  ;;  %v1122_v49 = vmax.f32 %v1054_v32, 0.0 }
 0x24b   :  { %v1049_v46 = vadd.f32 %v8293_v63, %v1048_v43  ;;  %v1120_v51 = vmax.f32 %v1046_v38, 0.0  ;;  %v7652_v63 = vld [vmem:[%s9937_s2 + $0x18] sm:$0xff]   ;;  %s9938_s2 = sld [smem:[#allocation26_spill]] }
 0x24c   :  { %v1123_v50 = vmax.f32 %v1057_v40, 0.0  ;;  %6859 = vmatprep.subr.bf16.mxu0 %v7652_v63 }
 0x24d   :  { %v1121_v56 = vmax.f32 %v1049_v46, 0.0  ;;  %6860 = vmatpush3.bf16.msra.mxu0 %v7652_v63 }
 0x24e   :  { %v1155_v57 = vpack.c.bf16 %v1123_v50, %v1122_v49 }
 0x24f   :  { %v1154_v61 = vpack.c.bf16 %v1121_v56, %v1120_v51 }
 0x251   :  { %6769 = vmatprep.mubr.bf16.mxu0 %v1154_v61  ;;  %v7653_v0 = vld [vmem:[%s9938_s2] sm:$0xff]   ;;  %v7654_v3 = vld [vmem:[%s9938_s2 + $0x8] sm:$0xff]   ;;  %v7655_v21 = vld [vmem:[%s9938_s2 + $0x10] sm:$0xff]  }
 0x252   :  { %6770 = vmatmul.mubr.bf16.gmra.mrb[124].mxu0 %v1155_v57  ;;  %6925 = vmatprep.subr.bf16.mxu0 %v7653_v0  ;;  %v7656_v22 = vld [vmem:[%s9938_s2 + $0x18] sm:$0xff]   ;;  %v7657_v39 = vld [vmem:[%s9938_s2 + $0x20] sm:$0xff]   ;;  %v7658_v56 = vld [vmem:[%s9938_s2 + $0x28] sm:$0xff]  }
 0x253   :  { %6861 = vmatprep.mubr.msk.bf16.mxu0 %vm218_vm0, %v7850_v5 }
 0x25a   :  { %6862 = vmatmul.mubr.msk.bf16.vlgmr.msra.gmra.mrb[128].mxu0 %vm218_vm0, %v7869_v11 }
 0x25b   :  { %6865 = vmatprep.mubr.msk.bf16.mxu0 %vm218_vm0, %v7871_v12  ;;  %6926 = vmatpush3.bf16.msra.mxu0 %v7653_v0 }
 0x25c   :  { %6927 = vmatprep.subr.bf16.mxu0 %v7654_v3 }
 0x25f   :  { %6928 = vmatpush3.bf16.msra.mxu0 %v7654_v3 }
 0x260   :  { %6929 = vmatprep.subr.bf16.mxu0 %v7655_v21 }
 0x262   :  { %6866 = vmatmul.mubr.msk.bf16.gmra.mrb[132].mxu0 %vm218_vm0, %v7889_v17 }
 0x263   :  { %6869 = vmatprep.mubr.msk.bf16.mxu0 %vm218_vm0, %v7891_v18  ;;  %6930 = vmatpush3.bf16.msra.mxu0 %v7655_v21 }
 0x264   :  { %6931 = vmatprep.subr.bf16.mxu0 %v7656_v22 }
 0x267   :  { %6932 = vmatpush3.bf16.msra.mxu0 %v7656_v22 }
 0x268   :  { %6933 = vmatprep.subr.bf16.mxu0 %v7657_v39 }
 0x26a   :  { %6870 = vmatmul.mubr.msk.bf16.gmra.mrb[136].mxu0 %vm218_vm0, %v7915_v25 }
 0x26b   :  { %6873 = vmatprep.mubr.msk.bf16.mxu0 %vm218_vm0, %v7920_v27  ;;  %6934 = vmatpush3.bf16.msra.mxu0 %v7657_v39 }
 0x26c   :  { %6935 = vmatprep.subr.bf16.mxu0 %v7658_v56 }
 0x26f   :  { %6936 = vmatpush3.bf16.msra.mxu0 %v7658_v56 }
 0x272   :  { %6874 = vmatmul.mubr.msk.bf16.gmra.mrb[140].mxu0 %vm218_vm0, %v7941_v33 }
 0x273   :  { %6877 = vmatprep.mubr.msk.bf16.mxu0 %vm218_vm0, %v7946_v35 }
 0x27a   :  { %6878 = vmatmul.mubr.msk.bf16.gmra.mrb[144].mxu0 %vm218_vm0, %v7967_v41 }
 0x27b   :  { %6881 = vmatprep.mubr.msk.bf16.mxu0 %vm218_vm0, %v7969_v42 }
 0x282   :  { %6882 = vmatmul.mubr.msk.bf16.gmra.mrb[148].mxu0 %vm218_vm0, %v7987_v47 }
 0x283   :  { %6885 = vmatprep.mubr.msk.bf16.mxu0 %vm218_vm0, %v7989_v48 }
 0x28a   :  { %6886 = vmatmul.mubr.msk.bf16.gmra.mrb[152].mxu0 %vm218_vm0, %v8007_v53 }
 0x28b   :  { %6889 = vmatprep.mubr.msk.bf16.mxu0 %vm218_vm0, %v8009_v54 }
 0x292   :  { %6890 = vmatmul.mubr.msk.bf16.gmra.mrb[156].mxu0 %vm218_vm0, %v8027_v59 }
 0x293   :  { %6893 = vmatprep.mubr.msk.bf16.mxu0 %vm218_vm0, %v8029_v60 }
 0x29a   :  { %6894 = vmatmul.mubr.msk.bf16.gmra.mrb[160].mxu0 %vm218_vm0, %v8047_v1 }
 0x29b   :  { %6897 = vmatprep.mubr.msk.bf16.mxu0 %vm218_vm0, %v8049_v2 }
 0x2a2   :  { %6898 = vmatmul.mubr.msk.bf16.gmra.mrb[164].mxu0 %vm218_vm0, %v8067_v8 }
 0x2a3   :  { %6901 = vmatprep.mubr.msk.bf16.mxu0 %vm218_vm0, %v8069_v9 }
 0x2aa   :  { %6902 = vmatmul.mubr.msk.bf16.gmra.mrb[168].mxu0 %vm218_vm0, %v8087_v16 }
 0x2ab   :  { %6905 = vmatprep.mubr.msk.bf16.mxu0 %vm218_vm0, %v8089_v19 }
 0x2ad   :  { %v6711_v6 = vpop.f32.mrb[64].mxu0 }
 0x2ae   :  { %v1270_v7 = vadd.f32 %v6711_v6, %v8424_v4  ;;  %v1261_v10 = vpop.f32.mrb[65].mxu0 }
 0x2af   :  { %v1262_v13 = vadd.f32 %v8424_v4, %v1261_v10  ;;  %v6712_v14 = vpop.f32.mrb[66].mxu0  ;;  %v7659_v10 = vld [vmem:[%s9938_s2 + $0x30] sm:$0xff]  }
 0x2b0   :  { %v1273_v15 = vadd.f32 %v6712_v14, %v8424_v4  ;;  %v1264_v20 = vpop.f32.mrb[67].mxu0  ;;  %v1518_v26 = vmax.f32 %v1270_v7, 0.0  ;;  %6937 = vmatprep.subr.bf16.mxu0 %v7659_v10 }
 0x2b1   :  { %v1265_v23 = vadd.f32 %v8424_v4, %v1264_v20  ;;  %v1516_v30 = vmax.f32 %v1262_v13, 0.0  ;;  %6938 = vmatpush3.bf16.msra.mxu0 %v7659_v10 }
 0x2b2   :  { %v1519_v29 = vmax.f32 %v1273_v15, 0.0  ;;  %6906 = vmatmul.mubr.msk.bf16.gmra.mrb[172].mxu0 %vm218_vm0, %v8107_v24 }
 0x2b3   :  { %v1517_v31 = vmax.f32 %v1265_v23, 0.0  ;;  %6909 = vmatprep.mubr.msk.bf16.mxu0 %vm218_vm0, %v8112_v28 }
 0x2b4   :  { %v1581_v32 = vpack.c.bf16 %v1519_v29, %v1518_v26  ;;  %v7660_v26 = vld [vmem:[%s9938_s2 + $0x38] sm:$0xff]  }
 0x2b5   :  { %v1580_v34 = vpack.c.bf16 %v1517_v31, %v1516_v30  ;;  %v6715_v38 = vpop.f32.mrb[68].mxu0  ;;  %6939 = vmatprep.subr.bf16.mxu0 %v7660_v26 }
 0x2b6   :  { %v1286_v40 = vadd.f32 %v6715_v38, %v8424_v4  ;;  %v1277_v43 = vpop.f32.mrb[69].mxu0  ;;  %6940 = vmatpush3.bf16.msra.mxu0 %v7660_v26 }
 0x2b7   :  { %v1278_v46 = vadd.f32 %v8424_v4, %v1277_v43  ;;  %v6716_v49 = vpop.f32.mrb[70].mxu0  ;;  %6789 = vmatprep.mubr.bf16.mxu1 %v1580_v34 }
 0x2b8   :  { %v1289_v50 = vadd.f32 %v6716_v49, %v8424_v4  ;;  %v1280_v51 = vpop.f32.mrb[71].mxu0  ;;  %6790 = vmatmul.mubr.bf16.vlgmr.msra.gmra.mrb[64].mxu1 %v1581_v32  ;;  %v1522_v61 = vmax.f32 %v1286_v40, 0.0 }
 0x2b9   :  { %v1281_v57 = vadd.f32 %v8424_v4, %v1280_v51  ;;  %v1520_v63 = vmax.f32 %v1278_v46, 0.0 }
 0x2ba   :  { %v1523_v62 = vmax.f32 %v1289_v50, 0.0  ;;  %6910 = vmatmul.mubr.msk.bf16.gmra.mrb[176].mxu0 %vm218_vm0, %v8133_v36 }
 0x2bb   :  { %v1521_v0 = vmax.f32 %v1281_v57, 0.0  ;;  %6913 = vmatprep.mubr.msk.bf16.mxu0 %vm218_vm0, %v8135_v37 }
 0x2bc   :  { %v1583_v3 = vpack.c.bf16 %v1523_v62, %v1522_v61 }
 0x2bd   :  { %v1582_v6 = vpack.c.bf16 %v1521_v0, %v1520_v63  ;;  %v6719_v7 = vpop.f32.mrb[72].mxu0 }
 0x2be   :  { %v1302_v13 = vadd.f32 %v6719_v7, %v8424_v4  ;;  %v1293_v14 = vpop.f32.mrb[73].mxu0 }
 0x2bf   :  { %v1294_v15 = vadd.f32 %v8424_v4, %v1293_v14  ;;  %v6720_v20 = vpop.f32.mrb[74].mxu0  ;;  %6793 = vmatprep.mubr.bf16.mxu1 %v1582_v6 }
 0x2c0   :  { %v1305_v21 = vadd.f32 %v6720_v20, %v8424_v4  ;;  %v1296_v22 = vpop.f32.mrb[75].mxu0  ;;  %6794 = vmatmul.mubr.bf16.gmra.mrb[68].mxu1 %v1583_v3  ;;  %v1526_v29 = vmax.f32 %v1302_v13, 0.0 }
 0x2c1   :  { %v1297_v23 = vadd.f32 %v8424_v4, %v1296_v22  ;;  %v1524_v31 = vmax.f32 %v1294_v15, 0.0 }
 0x2c2   :  { %v1527_v30 = vmax.f32 %v1305_v21, 0.0  ;;  %6914 = vmatmul.mubr.msk.bf16.gmra.mrb[180].mxu0 %vm218_vm0, %v8153_v44 }
 0x2c3   :  { %v1525_v32 = vmax.f32 %v1297_v23, 0.0  ;;  %6917 = vmatprep.mubr.msk.bf16.mxu0 %vm218_vm0, %v8155_v45 }
 0x2c4   :  { %v1585_v34 = vpack.c.bf16 %v1527_v30, %v1526_v29 }
 0x2c5   :  { %v1584_v38 = vpack.c.bf16 %v1525_v32, %v1524_v31  ;;  %v6723_v39 = vpop.f32.mrb[76].mxu0 }
 0x2c6   :  { %v1318_v40 = vadd.f32 %v6723_v39, %v8424_v4  ;;  %v1309_v43 = vpop.f32.mrb[77].mxu0 }
 0x2c7   :  { %v1310_v46 = vadd.f32 %v8424_v4, %v1309_v43  ;;  %v6724_v49 = vpop.f32.mrb[78].mxu0  ;;  %6797 = vmatprep.mubr.bf16.mxu1 %v1584_v38 }
 0x2c8   :  { %v1321_v50 = vadd.f32 %v6724_v49, %v8424_v4  ;;  %v1312_v51 = vpop.f32.mrb[79].mxu0  ;;  %6798 = vmatmul.mubr.bf16.gmra.mrb[72].mxu1 %v1585_v34  ;;  %v1530_v57 = vmax.f32 %v1318_v40, 0.0 }
 0x2c9   :  { %v1313_v56 = vadd.f32 %v8424_v4, %v1312_v51  ;;  %v1528_v62 = vmax.f32 %v1310_v46, 0.0 }
 0x2ca   :  { %v1531_v61 = vmax.f32 %v1321_v50, 0.0  ;;  %6918 = vmatmul.mubr.msk.bf16.gmra.mrb[184].mxu0 %vm218_vm0, %v8173_v52 }
 0x2cb   :  { %v1529_v63 = vmax.f32 %v1313_v56, 0.0  ;;  %6921 = vmatprep.mubr.msk.bf16.mxu0 %vm218_vm0, %v8175_v55 }
 0x2cc   :  { %v1587_v0 = vpack.c.bf16 %v1531_v61, %v1530_v57 }
 0x2cd   :  { %v1586_v3 = vpack.c.bf16 %v1529_v63, %v1528_v62  ;;  %v6727_v6 = vpop.f32.mrb[80].mxu0 }
 0x2ce   :  { %v1334_v7 = vadd.f32 %v6727_v6, %v8424_v4  ;;  %v1325_v10 = vpop.f32.mrb[81].mxu0 }
 0x2cf   :  { %v1326_v13 = vadd.f32 %v8424_v4, %v1325_v10  ;;  %v6728_v14 = vpop.f32.mrb[82].mxu0  ;;  %6801 = vmatprep.mubr.bf16.mxu1 %v1586_v3 }
 0x2d0   :  { %v1337_v15 = vadd.f32 %v6728_v14, %v8424_v4  ;;  %v1328_v20 = vpop.f32.mrb[83].mxu0  ;;  %6802 = vmatmul.mubr.bf16.gmra.mrb[76].mxu1 %v1587_v0  ;;  %v1534_v22 = vmax.f32 %v1334_v7, 0.0 }
 0x2d1   :  { %v1329_v21 = vadd.f32 %v8424_v4, %v1328_v20  ;;  %v1532_v26 = vmax.f32 %v1326_v13, 0.0 }
 0x2d2   :  { %v1535_v23 = vmax.f32 %v1337_v15, 0.0  ;;  %6922 = vmatmul.mubr.msk.bf16.gmra.mrb[188].mxu0 %vm218_vm0, %v8187_v58 }
 0x2d3   :  { %v1533_v29 = vmax.f32 %v1329_v21, 0.0 }
 0x2d4   :  { %v1589_v30 = vpack.c.bf16 %v1535_v23, %v1534_v22 }
 0x2d5   :  { %v1588_v31 = vpack.c.bf16 %v1533_v29, %v1532_v26  ;;  %v6731_v32 = vpop.f32.mrb[84].mxu0 }
 0x2d6   :  { %v1350_v34 = vadd.f32 %v6731_v32, %v8424_v4  ;;  %v1341_v38 = vpop.f32.mrb[85].mxu0 }
 0x2d7   :  { %v1342_v39 = vadd.f32 %v8424_v4, %v1341_v38  ;;  %v6732_v40 = vpop.f32.mrb[86].mxu0  ;;  %6805 = vmatprep.mubr.bf16.mxu1 %v1588_v31 }
 0x2d8   :  { %v1353_v43 = vadd.f32 %v6732_v40, %v8424_v4  ;;  %v1344_v46 = vpop.f32.mrb[87].mxu0  ;;  %6806 = vmatmul.mubr.bf16.gmra.mrb[80].mxu1 %v1589_v30  ;;  %v1538_v50 = vmax.f32 %v1350_v34, 0.0 }
 0x2d9   :  { %v1345_v49 = vadd.f32 %v8424_v4, %v1344_v46  ;;  %v1536_v56 = vmax.f32 %v1342_v39, 0.0 }
 0x2da   :  { %v1539_v51 = vmax.f32 %v1353_v43, 0.0 }
 0x2db   :  { %v1537_v57 = vmax.f32 %v1345_v49, 0.0 }
 0x2dc   :  { %v1591_v61 = vpack.c.bf16 %v1539_v51, %v1538_v50 }
 0x2dd   :  { %v1590_v62 = vpack.c.bf16 %v1537_v57, %v1536_v56  ;;  %v6735_v63 = vpop.f32.mrb[88].mxu0 }
 0x2de   :  { %v1366_v0 = vadd.f32 %v6735_v63, %v8424_v4  ;;  %v1357_v3 = vpop.f32.mrb[89].mxu0 }
 0x2df   :  { %v1358_v6 = vadd.f32 %v8424_v4, %v1357_v3  ;;  %v6736_v7 = vpop.f32.mrb[90].mxu0  ;;  %6809 = vmatprep.mubr.bf16.mxu1 %v1590_v62 }
 0x2e0   :  { %v1369_v10 = vadd.f32 %v6736_v7, %v8424_v4  ;;  %v1360_v13 = vpop.f32.mrb[91].mxu0  ;;  %6810 = vmatmul.mubr.bf16.gmra.mrb[84].mxu1 %v1591_v61  ;;  %v1542_v15 = vmax.f32 %v1366_v0, 0.0 }
 0x2e1   :  { %v1361_v14 = vadd.f32 %v8424_v4, %v1360_v13  ;;  %v1540_v21 = vmax.f32 %v1358_v6, 0.0 }
 0x2e2   :  { %v1543_v20 = vmax.f32 %v1369_v10, 0.0 }
 0x2e3   :  { %v1541_v22 = vmax.f32 %v1361_v14, 0.0 }
 0x2e4   :  { %v1593_v23 = vpack.c.bf16 %v1543_v20, %v1542_v15 }
 0x2e5   :  { %v1592_v26 = vpack.c.bf16 %v1541_v22, %v1540_v21  ;;  %v6739_v29 = vpop.f32.mrb[92].mxu0 }
 0x2e6   :  { %v1382_v30 = vadd.f32 %v6739_v29, %v8424_v4  ;;  %v1373_v31 = vpop.f32.mrb[93].mxu0 }
 0x2e7   :  { %v1374_v32 = vadd.f32 %v8424_v4, %v1373_v31  ;;  %v6740_v34 = vpop.f32.mrb[94].mxu0  ;;  %6813 = vmatprep.mubr.bf16.mxu1 %v1592_v26 }
 0x2e8   :  { %v1385_v38 = vadd.f32 %v6740_v34, %v8424_v4  ;;  %v1376_v39 = vpop.f32.mrb[95].mxu0  ;;  %6814 = vmatmul.mubr.bf16.gmra.mrb[88].mxu1 %v1593_v23  ;;  %v1546_v43 = vmax.f32 %v1382_v30, 0.0 }
 0x2e9   :  { %v1377_v40 = vadd.f32 %v8424_v4, %v1376_v39  ;;  %v1544_v49 = vmax.f32 %v1374_v32, 0.0 }
 0x2ea   :  { %v1547_v46 = vmax.f32 %v1385_v38, 0.0 }
 0x2eb   :  { %v1545_v50 = vmax.f32 %v1377_v40, 0.0 }
 0x2ec   :  { %v1595_v51 = vpack.c.bf16 %v1547_v46, %v1546_v43 }
 0x2ed   :  { %v1594_v56 = vpack.c.bf16 %v1545_v50, %v1544_v49  ;;  %v6743_v57 = vpop.f32.mrb[96].mxu0 }
 0x2ee   :  { %v1398_v61 = vadd.f32 %v6743_v57, %v8424_v4  ;;  %v1389_v62 = vpop.f32.mrb[97].mxu0 }
 0x2ef   :  { %v1390_v63 = vadd.f32 %v8424_v4, %v1389_v62  ;;  %v6744_v0 = vpop.f32.mrb[98].mxu0  ;;  %6817 = vmatprep.mubr.bf16.mxu1 %v1594_v56 }
 0x2f0   :  { %v1401_v3 = vadd.f32 %v6744_v0, %v8424_v4  ;;  %v1392_v6 = vpop.f32.mrb[99].mxu0  ;;  %6818 = vmatmul.mubr.bf16.gmra.mrb[92].mxu1 %v1595_v51  ;;  %v1550_v10 = vmax.f32 %v1398_v61, 0.0 }
 0x2f1   :  { %v1393_v7 = vadd.f32 %v8424_v4, %v1392_v6  ;;  %v1548_v14 = vmax.f32 %v1390_v63, 0.0 }
 0x2f2   :  { %v1551_v13 = vmax.f32 %v1401_v3, 0.0 }
 0x2f3   :  { %v1549_v15 = vmax.f32 %v1393_v7, 0.0 }
 0x2f4   :  { %v1597_v20 = vpack.c.bf16 %v1551_v13, %v1550_v10 }
 0x2f5   :  { %v1596_v21 = vpack.c.bf16 %v1549_v15, %v1548_v14  ;;  %v6747_v22 = vpop.f32.mrb[100].mxu0 }
 0x2f6   :  { %v1414_v23 = vadd.f32 %v6747_v22, %v8424_v4  ;;  %v1405_v26 = vpop.f32.mrb[101].mxu0 }
 0x2f7   :  { %v1406_v29 = vadd.f32 %v8424_v4, %v1405_v26  ;;  %v6748_v30 = vpop.f32.mrb[102].mxu0  ;;  %6821 = vmatprep.mubr.bf16.mxu1 %v1596_v21 }
 0x2f8   :  { %v1417_v31 = vadd.f32 %v6748_v30, %v8424_v4  ;;  %v1408_v32 = vpop.f32.mrb[103].mxu0  ;;  %6822 = vmatmul.mubr.bf16.gmra.mrb[96].mxu1 %v1597_v20  ;;  %v1554_v38 = vmax.f32 %v1414_v23, 0.0 }
 0x2f9   :  { %v1409_v34 = vadd.f32 %v8424_v4, %v1408_v32  ;;  %v1552_v40 = vmax.f32 %v1406_v29, 0.0 }
 0x2fa   :  { %v1555_v39 = vmax.f32 %v1417_v31, 0.0 }
 0x2fb   :  { %v1553_v43 = vmax.f32 %v1409_v34, 0.0 }
 0x2fc   :  { %v1599_v46 = vpack.c.bf16 %v1555_v39, %v1554_v38 }
 0x2fd   :  { %v1598_v49 = vpack.c.bf16 %v1553_v43, %v1552_v40  ;;  %v6751_v50 = vpop.f32.mrb[104].mxu0 }
 0x2fe   :  { %v1430_v51 = vadd.f32 %v6751_v50, %v8424_v4  ;;  %v1421_v56 = vpop.f32.mrb[105].mxu0 }
 0x2ff   :  { %v1422_v57 = vadd.f32 %v8424_v4, %v1421_v56  ;;  %v6752_v61 = vpop.f32.mrb[106].mxu0  ;;  %6825 = vmatprep.mubr.bf16.mxu1 %v1598_v49 }
 0x300   :  { %v1433_v62 = vadd.f32 %v6752_v61, %v8424_v4  ;;  %v1424_v63 = vpop.f32.mrb[107].mxu0  ;;  %6826 = vmatmul.mubr.bf16.gmra.mrb[100].mxu1 %v1599_v46  ;;  %v1558_v3 = vmax.f32 %v1430_v51, 0.0 }
 0x301   :  { %v1425_v0 = vadd.f32 %v8424_v4, %v1424_v63  ;;  %v1556_v7 = vmax.f32 %v1422_v57, 0.0 }
 0x302   :  { %v1559_v6 = vmax.f32 %v1433_v62, 0.0 }
 0x303   :  { %v1557_v10 = vmax.f32 %v1425_v0, 0.0 }
 0x304   :  { %v1601_v13 = vpack.c.bf16 %v1559_v6, %v1558_v3 }
 0x305   :  { %v1600_v14 = vpack.c.bf16 %v1557_v10, %v1556_v7  ;;  %v6755_v15 = vpop.f32.mrb[108].mxu0 }
 0x306   :  { %v1446_v20 = vadd.f32 %v6755_v15, %v8424_v4  ;;  %v1437_v21 = vpop.f32.mrb[109].mxu0 }
 0x307   :  { %v1438_v22 = vadd.f32 %v8424_v4, %v1437_v21  ;;  %v6756_v23 = vpop.f32.mrb[110].mxu0  ;;  %6829 = vmatprep.mubr.bf16.mxu1 %v1600_v14 }
 0x308   :  { %v1449_v26 = vadd.f32 %v6756_v23, %v8424_v4  ;;  %v1440_v29 = vpop.f32.mrb[111].mxu0  ;;  %6830 = vmatmul.mubr.bf16.gmra.mrb[104].mxu1 %v1601_v13  ;;  %v1562_v31 = vmax.f32 %v1446_v20, 0.0 }
 0x309   :  { %v1441_v30 = vadd.f32 %v8424_v4, %v1440_v29  ;;  %v1560_v34 = vmax.f32 %v1438_v22, 0.0 }
 0x30a   :  { %v1563_v32 = vmax.f32 %v1449_v26, 0.0 }
 0x30b   :  { %v1561_v38 = vmax.f32 %v1441_v30, 0.0 }
 0x30c   :  { %v1603_v39 = vpack.c.bf16 %v1563_v32, %v1562_v31 }
 0x30d   :  { %v1602_v40 = vpack.c.bf16 %v1561_v38, %v1560_v34  ;;  %v6759_v43 = vpop.f32.mrb[112].mxu0 }
 0x30e   :  { %v1462_v46 = vadd.f32 %v6759_v43, %v8424_v4  ;;  %v1453_v49 = vpop.f32.mrb[113].mxu0 }
 0x30f   :  { %v1454_v50 = vadd.f32 %v8424_v4, %v1453_v49  ;;  %v6760_v51 = vpop.f32.mrb[114].mxu0  ;;  %6833 = vmatprep.mubr.bf16.mxu1 %v1602_v40 }
 0x310   :  { %v1465_v56 = vadd.f32 %v6760_v51, %v8424_v4  ;;  %v1456_v57 = vpop.f32.mrb[115].mxu0  ;;  %6834 = vmatmul.mubr.bf16.gmra.mrb[108].mxu1 %v1603_v39  ;;  %v1566_v62 = vmax.f32 %v1462_v46, 0.0 }
 0x311   :  { %v1457_v61 = vadd.f32 %v8424_v4, %v1456_v57  ;;  %v1564_v0 = vmax.f32 %v1454_v50, 0.0 }
 0x312   :  { %v1567_v63 = vmax.f32 %v1465_v56, 0.0 }
 0x313   :  { %v1565_v3 = vmax.f32 %v1457_v61, 0.0 }
 0x314   :  { %v1605_v6 = vpack.c.bf16 %v1567_v63, %v1566_v62 }
 0x315   :  { %v1604_v7 = vpack.c.bf16 %v1565_v3, %v1564_v0  ;;  %v6763_v10 = vpop.f32.mrb[116].mxu0 }
 0x316   :  { %v1478_v13 = vadd.f32 %v6763_v10, %v8424_v4  ;;  %v1469_v14 = vpop.f32.mrb[117].mxu0 }
 0x317   :  { %v1470_v15 = vadd.f32 %v8424_v4, %v1469_v14  ;;  %v6764_v20 = vpop.f32.mrb[118].mxu0  ;;  %6837 = vmatprep.mubr.bf16.mxu1 %v1604_v7 }
 0x318   :  { %v1481_v21 = vadd.f32 %v6764_v20, %v8424_v4  ;;  %v1472_v22 = vpop.f32.mrb[119].mxu0  ;;  %6838 = vmatmul.mubr.bf16.gmra.mrb[112].mxu1 %v1605_v6  ;;  %v1570_v26 = vmax.f32 %v1478_v13, 0.0 }
 0x319   :  { %v1473_v23 = vadd.f32 %v8424_v4, %v1472_v22  ;;  %v1568_v30 = vmax.f32 %v1470_v15, 0.0 }
 0x31a   :  { %v1571_v29 = vmax.f32 %v1481_v21, 0.0 }
 0x31b   :  { %v1569_v31 = vmax.f32 %v1473_v23, 0.0 }
 0x31c   :  { %v1607_v32 = vpack.c.bf16 %v1571_v29, %v1570_v26 }
 0x31d   :  { %v1606_v34 = vpack.c.bf16 %v1569_v31, %v1568_v30  ;;  %v6767_v38 = vpop.f32.mrb[120].mxu0  ;;  %v7661_v31 = vld [vmem:[%s9897_s12] sm:$0xff]  }
 0x31e   :  { %v1494_v39 = vadd.f32 %v6767_v38, %v8424_v4  ;;  %v1485_v40 = vpop.f32.mrb[121].mxu0  ;;  %7005 = vmatprep.subr.bf16.mxu1 %v7661_v31 }
 0x31f   :  { %v1486_v43 = vadd.f32 %v8424_v4, %v1485_v40  ;;  %v6768_v46 = vpop.f32.mrb[122].mxu0  ;;  %6841 = vmatprep.mubr.bf16.mxu1 %v1606_v34  ;;  %7006 = vmatpush3.bf16.msra.mxu1 %v7661_v31 }
 0x320   :  { %v1497_v49 = vadd.f32 %v6768_v46, %v8424_v4  ;;  %v1488_v50 = vpop.f32.mrb[123].mxu0  ;;  %6842 = vmatmul.mubr.bf16.gmra.mrb[116].mxu1 %v1607_v32  ;;  %v1574_v56 = vmax.f32 %v1494_v39, 0.0  ;;  %v7662_v32 = vld [vmem:[%s9897_s12 + $0x8] sm:$0xff]  }
 0x321   :  { %v1489_v51 = vadd.f32 %v8424_v4, %v1488_v50  ;;  %v1572_v61 = vmax.f32 %v1486_v43, 0.0  ;;  %7007 = vmatprep.subr.bf16.mxu1 %v7662_v32  ;;  %v7663_v50 = vld [vmem:[%s9897_s12 + $0x10] sm:$0xff]  }
 0x322   :  { %v1575_v57 = vmax.f32 %v1497_v49, 0.0 }
 0x323   :  { %v1573_v62 = vmax.f32 %v1489_v51, 0.0  ;;  %7008 = vmatpush3.bf16.msra.mxu1 %v7662_v32  ;;  %v7664_v51 = vld [vmem:[%s9897_s12 + $0x18] sm:$0xff]  }
 0x324   :  { %v1609_v63 = vpack.c.bf16 %v1575_v57, %v1574_v56  ;;  %7009 = vmatprep.subr.bf16.mxu1 %v7663_v50 }
 0x325   :  { %v1608_v0 = vpack.c.bf16 %v1573_v62, %v1572_v61  ;;  %v6771_v3 = vpop.f32.mrb[124].mxu0 }
 0x326   :  { %v1510_v6 = vadd.f32 %v6771_v3, %v8424_v4  ;;  %v1501_v7 = vpop.f32.mrb[125].mxu0  ;;  %v7665_v3 = vld [vmem:[%s9897_s12 + $0x20] sm:$0xff]  }
 0x327   :  { %v1502_v10 = vadd.f32 %v8424_v4, %v1501_v7  ;;  %v6772_v13 = vpop.f32.mrb[126].mxu0  ;;  %6845 = vmatprep.mubr.bf16.mxu1 %v1608_v0  ;;  %7010 = vmatpush3.bf16.msra.mxu1 %v7663_v50 }
 0x328   :  { %v1513_v14 = vadd.f32 %v6772_v13, %v8424_v4  ;;  %v1504_v15 = vpop.f32.mrb[127].mxu0  ;;  %6846 = vmatmul.mubr.bf16.gmra.mrb[120].mxu1 %v1609_v63  ;;  %v1578_v21 = vmax.f32 %v1510_v6, 0.0  ;;  %7011 = vmatprep.subr.bf16.mxu1 %v7664_v51 }
 0x329   :  { %v1505_v20 = vadd.f32 %v8424_v4, %v1504_v15  ;;  %v1576_v23 = vmax.f32 %v1502_v10, 0.0  ;;  %v8555_v4 = vld [vmem:[%s9898_s8] ss:$0 sm:$0xff] }
 0x32a   :  { %v1579_v22 = vmax.f32 %v1513_v14, 0.0 }
 0x32b   :  { %v1577_v26 = vmax.f32 %v1505_v20, 0.0  ;;  %7012 = vmatpush3.bf16.msra.mxu1 %v7664_v51 }
 0x32c   :  { %v1611_v29 = vpack.c.bf16 %v1579_v22, %v1578_v21  ;;  %7013 = vmatprep.subr.bf16.mxu1 %v7665_v3  ;;  %v7666_v22 = vld [vmem:[%s9897_s12 + $0x28] sm:$0xff]  }
 0x32d   :  { %v1610_v30 = vpack.c.bf16 %v1577_v26, %v1576_v23 }
 0x32f   :  { %6849 = vmatprep.mubr.bf16.mxu1 %v1610_v30  ;;  %7014 = vmatpush3.bf16.msra.mxu1 %v7665_v3 }
 0x330   :  { %6850 = vmatmul.mubr.bf16.gmra.mrb[124].mxu1 %v1611_v29  ;;  %7015 = vmatprep.subr.bf16.mxu1 %v7666_v22 }
 0x333   :  { %7016 = vmatpush3.bf16.msra.mxu1 %v7666_v22 }
 0x38b   :  { %v6791_v34 = vpop.f32.mrb[64].mxu1 }
 0x38c   :  { %v1726_v38 = vadd.f32 %v6791_v34, %v8555_v4  ;;  %v1717_v39 = vpop.f32.mrb[65].mxu1  ;;  %v7667_v34 = vld [vmem:[%s9897_s12 + $0x30] sm:$0xff]  }
 0x38d   :  { %v1718_v40 = vadd.f32 %v8555_v4, %v1717_v39  ;;  %v6792_v43 = vpop.f32.mrb[66].mxu1  ;;  %7017 = vmatprep.subr.bf16.mxu1 %v7667_v34 }
 0x38e   :  { %v1729_v46 = vadd.f32 %v6792_v43, %v8555_v4  ;;  %v1720_v49 = vpop.f32.mrb[67].mxu1  ;;  %v1974_v57 = vmax.f32 %v1726_v38, 0.0  ;;  %7018 = vmatpush3.bf16.msra.mxu1 %v7667_v34 }
 0x38f   :  { %v1721_v56 = vadd.f32 %v8555_v4, %v1720_v49  ;;  %v1972_v62 = vmax.f32 %v1718_v40, 0.0 }
 0x390   :  { %v1975_v61 = vmax.f32 %v1729_v46, 0.0 }
 0x391   :  { %v1973_v63 = vmax.f32 %v1721_v56, 0.0  ;;  %v7668_v56 = vld [vmem:[%s9897_s12 + $0x38] sm:$0xff]  }
 0x392   :  { %v2037_v0 = vpack.c.bf16 %v1975_v61, %v1974_v57  ;;  %7019 = vmatprep.subr.bf16.mxu1 %v7668_v56 }
 0x393   :  { %v6795_v6 = vpop.f32.mrb[68].mxu1  ;;  %v2036_v7 = vpack.c.bf16 %v1973_v63, %v1972_v62  ;;  %7020 = vmatpush3.bf16.msra.mxu1 %v7668_v56 }
 0x394   :  { %v1742_v10 = vadd.f32 %v6795_v6, %v8555_v4  ;;  %v1733_v13 = vpop.f32.mrb[69].mxu1 }
 0x395   :  { %v1734_v14 = vadd.f32 %v8555_v4, %v1733_v13  ;;  %v6796_v15 = vpop.f32.mrb[70].mxu1  ;;  %6941 = vmatprep.mubr.bf16.mxu0 %v2036_v7 }
 0x396   :  { %v1745_v20 = vadd.f32 %v6796_v15, %v8555_v4  ;;  %v1736_v21 = vpop.f32.mrb[71].mxu1  ;;  %6942 = vmatmul.mubr.bf16.vlgmr.msra.gmra.mrb[128].mxu0 %v2037_v0  ;;  %v1978_v26 = vmax.f32 %v1742_v10, 0.0 }
 0x397   :  { %v1737_v23 = vadd.f32 %v8555_v4, %v1736_v21  ;;  %v1976_v30 = vmax.f32 %v1734_v14, 0.0 }
 0x398   :  { %v1979_v29 = vmax.f32 %v1745_v20, 0.0 }
 0x399   :  { %v1977_v31 = vmax.f32 %v1737_v23, 0.0 }
 0x39a   :  { %v2039_v32 = vpack.c.bf16 %v1979_v29, %v1978_v26 }
 0x39b   :  { %v6799_v38 = vpop.f32.mrb[72].mxu1  ;;  %v2038_v39 = vpack.c.bf16 %v1977_v31, %v1976_v30 }
 0x39c   :  { %v1758_v40 = vadd.f32 %v6799_v38, %v8555_v4  ;;  %v1749_v43 = vpop.f32.mrb[73].mxu1 }
 0x39d   :  { %v1750_v46 = vadd.f32 %v8555_v4, %v1749_v43  ;;  %v6800_v49 = vpop.f32.mrb[74].mxu1  ;;  %6945 = vmatprep.mubr.bf16.mxu0 %v2038_v39 }
 0x39e   :  { %v1761_v50 = vadd.f32 %v6800_v49, %v8555_v4  ;;  %v1752_v51 = vpop.f32.mrb[75].mxu1  ;;  %6946 = vmatmul.mubr.bf16.gmra.mrb[132].mxu0 %v2039_v32  ;;  %v1982_v61 = vmax.f32 %v1758_v40, 0.0 }
 0x39f   :  { %v1753_v57 = vadd.f32 %v8555_v4, %v1752_v51  ;;  %v1980_v63 = vmax.f32 %v1750_v46, 0.0 }
 0x3a0   :  { %v1983_v62 = vmax.f32 %v1761_v50, 0.0 }
 0x3a1   :  { %v1981_v0 = vmax.f32 %v1753_v57, 0.0 }
 0x3a2   :  { %v2041_v3 = vpack.c.bf16 %v1983_v62, %v1982_v61 }
 0x3a3   :  { %v6803_v6 = vpop.f32.mrb[76].mxu1  ;;  %v2040_v7 = vpack.c.bf16 %v1981_v0, %v1980_v63 }
 0x3a4   :  { %v1774_v10 = vadd.f32 %v6803_v6, %v8555_v4  ;;  %v1765_v13 = vpop.f32.mrb[77].mxu1 }
 0x3a5   :  { %v1766_v14 = vadd.f32 %v8555_v4, %v1765_v13  ;;  %v6804_v15 = vpop.f32.mrb[78].mxu1  ;;  %6949 = vmatprep.mubr.bf16.mxu0 %v2040_v7 }
 0x3a6   :  { %v1777_v20 = vadd.f32 %v6804_v15, %v8555_v4  ;;  %v1768_v21 = vpop.f32.mrb[79].mxu1  ;;  %6950 = vmatmul.mubr.bf16.gmra.mrb[136].mxu0 %v2041_v3  ;;  %v1986_v23 = vmax.f32 %v1774_v10, 0.0 }
 0x3a7   :  { %v1769_v22 = vadd.f32 %v8555_v4, %v1768_v21  ;;  %v1984_v29 = vmax.f32 %v1766_v14, 0.0 }
 0x3a8   :  { %v1987_v26 = vmax.f32 %v1777_v20, 0.0 }
 0x3a9   :  { %v1985_v30 = vmax.f32 %v1769_v22, 0.0 }
 0x3aa   :  { %v2043_v31 = vpack.c.bf16 %v1987_v26, %v1986_v23 }
 0x3ab   :  { %v6807_v32 = vpop.f32.mrb[80].mxu1  ;;  %v2042_v34 = vpack.c.bf16 %v1985_v30, %v1984_v29 }
 0x3ac   :  { %v1790_v38 = vadd.f32 %v6807_v32, %v8555_v4  ;;  %v1781_v39 = vpop.f32.mrb[81].mxu1 }
 0x3ad   :  { %v1782_v40 = vadd.f32 %v8555_v4, %v1781_v39  ;;  %v6808_v43 = vpop.f32.mrb[82].mxu1  ;;  %6953 = vmatprep.mubr.bf16.mxu0 %v2042_v34 }
 0x3ae   :  { %v1793_v46 = vadd.f32 %v6808_v43, %v8555_v4  ;;  %v1784_v49 = vpop.f32.mrb[83].mxu1  ;;  %6954 = vmatmul.mubr.bf16.gmra.mrb[140].mxu0 %v2043_v31  ;;  %v1990_v51 = vmax.f32 %v1790_v38, 0.0 }
 0x3af   :  { %v1785_v50 = vadd.f32 %v8555_v4, %v1784_v49  ;;  %v1988_v57 = vmax.f32 %v1782_v40, 0.0 }
 0x3b0   :  { %v1991_v56 = vmax.f32 %v1793_v46, 0.0 }
 0x3b1   :  { %v1989_v61 = vmax.f32 %v1785_v50, 0.0 }
 0x3b2   :  { %v2045_v62 = vpack.c.bf16 %v1991_v56, %v1990_v51 }
 0x3b3   :  { %v6811_v63 = vpop.f32.mrb[84].mxu1  ;;  %v2044_v0 = vpack.c.bf16 %v1989_v61, %v1988_v57 }
 0x3b4   :  { %v1806_v3 = vadd.f32 %v6811_v63, %v8555_v4  ;;  %v1797_v6 = vpop.f32.mrb[85].mxu1 }
 0x3b5   :  { %v1798_v7 = vadd.f32 %v8555_v4, %v1797_v6  ;;  %v6812_v10 = vpop.f32.mrb[86].mxu1  ;;  %6957 = vmatprep.mubr.bf16.mxu0 %v2044_v0 }
 0x3b6   :  { %v1809_v13 = vadd.f32 %v6812_v10, %v8555_v4  ;;  %v1800_v14 = vpop.f32.mrb[87].mxu1  ;;  %6958 = vmatmul.mubr.bf16.gmra.mrb[144].mxu0 %v2045_v62  ;;  %v1994_v20 = vmax.f32 %v1806_v3, 0.0 }
 0x3b7   :  { %v1801_v15 = vadd.f32 %v8555_v4, %v1800_v14  ;;  %v1992_v22 = vmax.f32 %v1798_v7, 0.0 }
 0x3b8   :  { %v1995_v21 = vmax.f32 %v1809_v13, 0.0 }
 0x3b9   :  { %v1993_v23 = vmax.f32 %v1801_v15, 0.0 }
 0x3ba   :  { %v2047_v26 = vpack.c.bf16 %v1995_v21, %v1994_v20 }
 0x3bb   :  { %v6815_v29 = vpop.f32.mrb[88].mxu1  ;;  %v2046_v30 = vpack.c.bf16 %v1993_v23, %v1992_v22 }
 0x3bc   :  { %v1822_v31 = vadd.f32 %v6815_v29, %v8555_v4  ;;  %v1813_v32 = vpop.f32.mrb[89].mxu1 }
 0x3bd   :  { %v1814_v34 = vadd.f32 %v8555_v4, %v1813_v32  ;;  %v6816_v38 = vpop.f32.mrb[90].mxu1  ;;  %6961 = vmatprep.mubr.bf16.mxu0 %v2046_v30 }
 0x3be   :  { %v1825_v39 = vadd.f32 %v6816_v38, %v8555_v4  ;;  %v1816_v40 = vpop.f32.mrb[91].mxu1  ;;  %6962 = vmatmul.mubr.bf16.gmra.mrb[148].mxu0 %v2047_v26  ;;  %v1998_v46 = vmax.f32 %v1822_v31, 0.0 }
 0x3bf   :  { %v1817_v43 = vadd.f32 %v8555_v4, %v1816_v40  ;;  %v1996_v50 = vmax.f32 %v1814_v34, 0.0 }
 0x3c0   :  { %v1999_v49 = vmax.f32 %v1825_v39, 0.0 }
 0x3c1   :  { %v1997_v51 = vmax.f32 %v1817_v43, 0.0 }
 0x3c2   :  { %v2049_v56 = vpack.c.bf16 %v1999_v49, %v1998_v46 }
 0x3c3   :  { %v6819_v57 = vpop.f32.mrb[92].mxu1  ;;  %v2048_v61 = vpack.c.bf16 %v1997_v51, %v1996_v50 }
 0x3c4   :  { %v1838_v62 = vadd.f32 %v6819_v57, %v8555_v4  ;;  %v1829_v63 = vpop.f32.mrb[93].mxu1 }
 0x3c5   :  { %v1830_v0 = vadd.f32 %v8555_v4, %v1829_v63  ;;  %v6820_v3 = vpop.f32.mrb[94].mxu1  ;;  %6965 = vmatprep.mubr.bf16.mxu0 %v2048_v61 }
 0x3c6   :  { %v1841_v6 = vadd.f32 %v6820_v3, %v8555_v4  ;;  %v1832_v7 = vpop.f32.mrb[95].mxu1  ;;  %6966 = vmatmul.mubr.bf16.gmra.mrb[152].mxu0 %v2049_v56  ;;  %v2002_v13 = vmax.f32 %v1838_v62, 0.0 }
 0x3c7   :  { %v1833_v10 = vadd.f32 %v8555_v4, %v1832_v7  ;;  %v2000_v15 = vmax.f32 %v1830_v0, 0.0 }
 0x3c8   :  { %v2003_v14 = vmax.f32 %v1841_v6, 0.0 }
 0x3c9   :  { %v2001_v20 = vmax.f32 %v1833_v10, 0.0 }
 0x3ca   :  { %v2051_v21 = vpack.c.bf16 %v2003_v14, %v2002_v13 }
 0x3cb   :  { %v6823_v22 = vpop.f32.mrb[96].mxu1  ;;  %v2050_v23 = vpack.c.bf16 %v2001_v20, %v2000_v15 }
 0x3cc   :  { %v1854_v26 = vadd.f32 %v6823_v22, %v8555_v4  ;;  %v1845_v29 = vpop.f32.mrb[97].mxu1 }
 0x3cd   :  { %v1846_v30 = vadd.f32 %v8555_v4, %v1845_v29  ;;  %v6824_v31 = vpop.f32.mrb[98].mxu1  ;;  %6969 = vmatprep.mubr.bf16.mxu0 %v2050_v23 }
 0x3ce   :  { %v1857_v32 = vadd.f32 %v6824_v31, %v8555_v4  ;;  %v1848_v34 = vpop.f32.mrb[99].mxu1  ;;  %6970 = vmatmul.mubr.bf16.gmra.mrb[156].mxu0 %v2051_v21  ;;  %v2006_v39 = vmax.f32 %v1854_v26, 0.0 }
 0x3cf   :  { %v1849_v38 = vadd.f32 %v8555_v4, %v1848_v34  ;;  %v2004_v43 = vmax.f32 %v1846_v30, 0.0 }
 0x3d0   :  { %v2007_v40 = vmax.f32 %v1857_v32, 0.0 }
 0x3d1   :  { %v2005_v46 = vmax.f32 %v1849_v38, 0.0 }
 0x3d2   :  { %v2053_v49 = vpack.c.bf16 %v2007_v40, %v2006_v39 }
 0x3d3   :  { %v6827_v50 = vpop.f32.mrb[100].mxu1  ;;  %v2052_v51 = vpack.c.bf16 %v2005_v46, %v2004_v43 }
 0x3d4   :  { %v1870_v56 = vadd.f32 %v6827_v50, %v8555_v4  ;;  %v1861_v57 = vpop.f32.mrb[101].mxu1 }
 0x3d5   :  { %v1862_v61 = vadd.f32 %v8555_v4, %v1861_v57  ;;  %v6828_v62 = vpop.f32.mrb[102].mxu1  ;;  %6973 = vmatprep.mubr.bf16.mxu0 %v2052_v51 }
 0x3d6   :  { %v1873_v63 = vadd.f32 %v6828_v62, %v8555_v4  ;;  %v1864_v0 = vpop.f32.mrb[103].mxu1  ;;  %6974 = vmatmul.mubr.bf16.gmra.mrb[160].mxu0 %v2053_v49  ;;  %v2010_v6 = vmax.f32 %v1870_v56, 0.0 }
 0x3d7   :  { %v1865_v3 = vadd.f32 %v8555_v4, %v1864_v0  ;;  %v2008_v10 = vmax.f32 %v1862_v61, 0.0 }
 0x3d8   :  { %v2011_v7 = vmax.f32 %v1873_v63, 0.0 }
 0x3d9   :  { %v2009_v13 = vmax.f32 %v1865_v3, 0.0 }
 0x3da   :  { %v2055_v14 = vpack.c.bf16 %v2011_v7, %v2010_v6 }
 0x3db   :  { %v6831_v15 = vpop.f32.mrb[104].mxu1  ;;  %v2054_v20 = vpack.c.bf16 %v2009_v13, %v2008_v10 }
 0x3dc   :  { %v1886_v21 = vadd.f32 %v6831_v15, %v8555_v4  ;;  %v1877_v22 = vpop.f32.mrb[105].mxu1 }
 0x3dd   :  { %v1878_v23 = vadd.f32 %v8555_v4, %v1877_v22  ;;  %v6832_v26 = vpop.f32.mrb[106].mxu1  ;;  %6977 = vmatprep.mubr.bf16.mxu0 %v2054_v20 }
 0x3de   :  { %v1889_v29 = vadd.f32 %v6832_v26, %v8555_v4  ;;  %v1880_v30 = vpop.f32.mrb[107].mxu1  ;;  %6978 = vmatmul.mubr.bf16.gmra.mrb[164].mxu0 %v2055_v14  ;;  %v2014_v32 = vmax.f32 %v1886_v21, 0.0 }
 0x3df   :  { %v1881_v31 = vadd.f32 %v8555_v4, %v1880_v30  ;;  %v2012_v38 = vmax.f32 %v1878_v23, 0.0 }
 0x3e0   :  { %v2015_v34 = vmax.f32 %v1889_v29, 0.0 }
 0x3e1   :  { %v2013_v39 = vmax.f32 %v1881_v31, 0.0 }
 0x3e2   :  { %v2057_v40 = vpack.c.bf16 %v2015_v34, %v2014_v32 }
 0x3e3   :  { %v6835_v43 = vpop.f32.mrb[108].mxu1  ;;  %v2056_v46 = vpack.c.bf16 %v2013_v39, %v2012_v38 }
 0x3e4   :  { %v1902_v49 = vadd.f32 %v6835_v43, %v8555_v4  ;;  %v1893_v50 = vpop.f32.mrb[109].mxu1 }
 0x3e5   :  { %v1894_v51 = vadd.f32 %v8555_v4, %v1893_v50  ;;  %v6836_v56 = vpop.f32.mrb[110].mxu1  ;;  %6981 = vmatprep.mubr.bf16.mxu0 %v2056_v46 }
 0x3e6   :  { %v1905_v57 = vadd.f32 %v6836_v56, %v8555_v4  ;;  %v1896_v61 = vpop.f32.mrb[111].mxu1  ;;  %6982 = vmatmul.mubr.bf16.gmra.mrb[168].mxu0 %v2057_v40  ;;  %v2018_v63 = vmax.f32 %v1902_v49, 0.0 }
 0x3e7   :  { %v1897_v62 = vadd.f32 %v8555_v4, %v1896_v61  ;;  %v2016_v3 = vmax.f32 %v1894_v51, 0.0 }
 0x3e8   :  { %v2019_v0 = vmax.f32 %v1905_v57, 0.0 }
 0x3e9   :  { %v2017_v6 = vmax.f32 %v1897_v62, 0.0 }
 0x3ea   :  { %v2059_v7 = vpack.c.bf16 %v2019_v0, %v2018_v63 }
 0x3eb   :  { %v6839_v10 = vpop.f32.mrb[112].mxu1  ;;  %v2058_v13 = vpack.c.bf16 %v2017_v6, %v2016_v3 }
 0x3ec   :  { %v1918_v14 = vadd.f32 %v6839_v10, %v8555_v4  ;;  %v1909_v15 = vpop.f32.mrb[113].mxu1 }
 0x3ed   :  { %v1910_v20 = vadd.f32 %v8555_v4, %v1909_v15  ;;  %v6840_v21 = vpop.f32.mrb[114].mxu1  ;;  %6985 = vmatprep.mubr.bf16.mxu0 %v2058_v13 }
 0x3ee   :  { %v1921_v22 = vadd.f32 %v6840_v21, %v8555_v4  ;;  %v1912_v23 = vpop.f32.mrb[115].mxu1  ;;  %6986 = vmatmul.mubr.bf16.gmra.mrb[172].mxu0 %v2059_v7  ;;  %v2022_v29 = vmax.f32 %v1918_v14, 0.0 }
 0x3ef   :  { %v1913_v26 = vadd.f32 %v8555_v4, %v1912_v23  ;;  %v2020_v31 = vmax.f32 %v1910_v20, 0.0 }
 0x3f0   :  { %v2023_v30 = vmax.f32 %v1921_v22, 0.0 }
 0x3f1   :  { %v2021_v32 = vmax.f32 %v1913_v26, 0.0 }
 0x3f2   :  { %v2061_v34 = vpack.c.bf16 %v2023_v30, %v2022_v29 }
 0x3f3   :  { %v6843_v38 = vpop.f32.mrb[116].mxu1  ;;  %v2060_v39 = vpack.c.bf16 %v2021_v32, %v2020_v31 }
 0x3f4   :  { %v1934_v40 = vadd.f32 %v6843_v38, %v8555_v4  ;;  %v1925_v43 = vpop.f32.mrb[117].mxu1 }
 0x3f5   :  { %v1926_v46 = vadd.f32 %v8555_v4, %v1925_v43  ;;  %v6844_v49 = vpop.f32.mrb[118].mxu1  ;;  %6989 = vmatprep.mubr.bf16.mxu0 %v2060_v39 }
 0x3f6   :  { %v1937_v50 = vadd.f32 %v6844_v49, %v8555_v4  ;;  %v1928_v51 = vpop.f32.mrb[119].mxu1  ;;  %6990 = vmatmul.mubr.bf16.gmra.mrb[176].mxu0 %v2061_v34  ;;  %v2026_v57 = vmax.f32 %v1934_v40, 0.0 }
 0x3f7   :  { %v1929_v56 = vadd.f32 %v8555_v4, %v1928_v51  ;;  %v2024_v62 = vmax.f32 %v1926_v46, 0.0 }
 0x3f8   :  { %v2027_v61 = vmax.f32 %v1937_v50, 0.0 }
 0x3f9   :  { %v2025_v63 = vmax.f32 %v1929_v56, 0.0 }
 0x3fa   :  { %v2063_v0 = vpack.c.bf16 %v2027_v61, %v2026_v57 }
 0x3fb   :  { %v6847_v3 = vpop.f32.mrb[120].mxu1  ;;  %v2062_v6 = vpack.c.bf16 %v2025_v63, %v2024_v62  ;;  %v7669_v63 = vld [vmem:[%s9899_s14] sm:$0xff]  }
 0x3fc   :  { %v1950_v7 = vadd.f32 %v6847_v3, %v8555_v4  ;;  %v1941_v10 = vpop.f32.mrb[121].mxu1  ;;  %7085 = vmatprep.subr.bf16.mxu1 %v7669_v63 }
 0x3fd   :  { %v1942_v13 = vadd.f32 %v8555_v4, %v1941_v10  ;;  %v6848_v14 = vpop.f32.mrb[122].mxu1  ;;  %6993 = vmatprep.mubr.bf16.mxu0 %v2062_v6 }
 0x3fe   :  { %v1953_v15 = vadd.f32 %v6848_v14, %v8555_v4  ;;  %v1944_v20 = vpop.f32.mrb[123].mxu1  ;;  %6994 = vmatmul.mubr.bf16.gmra.mrb[180].mxu0 %v2063_v0  ;;  %v2030_v22 = vmax.f32 %v1950_v7, 0.0  ;;  %v8645_v0 = vld [vmem:[%s9900_s11] ss:$0 sm:$0xff] }
 0x3ff   :  { %v1945_v21 = vadd.f32 %v8555_v4, %v1944_v20  ;;  %v2028_v26 = vmax.f32 %v1942_v13, 0.0 }
 0x400   :  { %v2031_v23 = vmax.f32 %v1953_v15, 0.0 }
 0x401   :  { %v2029_v29 = vmax.f32 %v1945_v21, 0.0 }
 0x402   :  { %v2065_v30 = vpack.c.bf16 %v2031_v23, %v2030_v22 }
 0x403   :  { %v6851_v31 = vpop.f32.mrb[124].mxu1  ;;  %v2064_v32 = vpack.c.bf16 %v2029_v29, %v2028_v26 }
 0x404   :  { %v1966_v34 = vadd.f32 %v6851_v31, %v8555_v4  ;;  %v1957_v38 = vpop.f32.mrb[125].mxu1 }
 0x405   :  { %v1958_v39 = vadd.f32 %v8555_v4, %v1957_v38  ;;  %v6852_v40 = vpop.f32.mrb[126].mxu1  ;;  %6997 = vmatprep.mubr.bf16.mxu0 %v2064_v32 }
 0x406   :  { %v1969_v43 = vadd.f32 %v6852_v40, %v8555_v4  ;;  %v1960_v46 = vpop.f32.mrb[127].mxu1  ;;  %6998 = vmatmul.mubr.bf16.gmra.mrb[184].mxu0 %v2065_v30  ;;  %v2034_v50 = vmax.f32 %v1966_v34, 0.0  ;;  %v7670_v34 = vld [vmem:[%s9899_s14 + $0x8] sm:$0xff]  }
 0x407   :  { %v1961_v49 = vadd.f32 %v8555_v4, %v1960_v46  ;;  %v2032_v56 = vmax.f32 %v1958_v39, 0.0 }
 0x408   :  { %v2035_v51 = vmax.f32 %v1969_v43, 0.0 }
 0x409   :  { %v2033_v57 = vmax.f32 %v1961_v49, 0.0 }
 0x40a   :  { %v2067_v61 = vpack.c.bf16 %v2035_v51, %v2034_v50  ;;  %v7671_v51 = vld [vmem:[%s9899_s14 + $0x10] sm:$0xff]  }
 0x40b   :  { %v2066_v62 = vpack.c.bf16 %v2033_v57, %v2032_v56 }
 0x40d   :  { %7001 = vmatprep.mubr.bf16.mxu0 %v2066_v62 }
 0x40e   :  { %7002 = vmatmul.mubr.bf16.gmra.mrb[188].mxu0 %v2067_v61 }
 0x469   :  { %v6943_v3 = vpop.f32.mrb[128].mxu0 }
 0x46a   :  { %v2751_v4 = vadd.f32 %v6943_v3, %v8645_v0  ;;  %v2487_v6 = vpop.f32.mrb[129].mxu0 }
 0x46b   :  { %v2749_v7 = vadd.f32 %v8645_v0, %v2487_v6  ;;  %v6944_v10 = vpop.f32.mrb[130].mxu0 }
 0x46c   :  { %v2752_v13 = vadd.f32 %v6944_v10, %v8645_v0  ;;  %v2490_v14 = vpop.f32.mrb[131].mxu0  ;;  %v2815_v20 = vmax.f32 %v2751_v4, 0.0 }
 0x46d   :  { %v2750_v15 = vadd.f32 %v8645_v0, %v2490_v14  ;;  %v2813_v22 = vmax.f32 %v2749_v7, 0.0 }
 0x46e   :  { %v2816_v21 = vmax.f32 %v2752_v13, 0.0 }
 0x46f   :  { %v2814_v23 = vmax.f32 %v2750_v15, 0.0 }
 0x470   :  { %v2878_v26 = vpack.c.bf16 %v2816_v21, %v2815_v20 }
 0x471   :  { %v2877_v29 = vpack.c.bf16 %v2814_v23, %v2813_v22  ;;  %v6947_v30 = vpop.f32.mrb[132].mxu0  ;;  %v7673_v22 = vld [vmem:[%s9899_s14 + $0x20] sm:$0xff]  }
 0x472   :  { %v2755_v31 = vadd.f32 %v6947_v30, %v8645_v0  ;;  %v2503_v32 = vpop.f32.mrb[133].mxu0 }
 0x473   :  { %v2753_v38 = vadd.f32 %v8645_v0, %v2503_v32  ;;  %v6948_v39 = vpop.f32.mrb[134].mxu0  ;;  %7021 = vmatprep.mubr.bf16.mxu1 %v2877_v29 }
 0x474   :  { %v2756_v40 = vadd.f32 %v6948_v39, %v8645_v0  ;;  %v2506_v43 = vpop.f32.mrb[135].mxu0  ;;  %7022 = vmatmul.mubr.bf16.vlgmr.msra.gmra.mrb[128].mxu1 %v2878_v26  ;;  %v2819_v49 = vmax.f32 %v2755_v31, 0.0 }
 0x475   :  { %v2754_v46 = vadd.f32 %v8645_v0, %v2506_v43  ;;  %7086 = vmatpush3.bf16.msra.mxu1 %v7669_v63  ;;  %v2817_v56 = vmax.f32 %v2753_v38, 0.0  ;;  %v7672_v63 = vld [vmem:[%s9899_s14 + $0x18] sm:$0xff]   ;;  %v7674_v38 = vld [vmem:[%s9899_s14 + $0x28] sm:$0xff]  }
 0x476   :  { %v2820_v50 = vmax.f32 %v2756_v40, 0.0  ;;  %7087 = vmatprep.subr.bf16.mxu1 %v7670_v34 }
 0x477   :  { %v2818_v57 = vmax.f32 %v2754_v46, 0.0 }
 0x478   :  { %v2880_v61 = vpack.c.bf16 %v2820_v50, %v2819_v49 }
 0x479   :  { %v2879_v62 = vpack.c.bf16 %v2818_v57, %v2817_v56  ;;  %v6951_v3 = vpop.f32.mrb[136].mxu0  ;;  %7088 = vmatpush3.bf16.msra.mxu1 %v7670_v34  ;;  %v7675_v56 = vld [vmem:[%s9899_s14 + $0x30] sm:$0xff]  }
 0x47a   :  { %v2759_v4 = vadd.f32 %v6951_v3, %v8645_v0  ;;  %v2519_v6 = vpop.f32.mrb[137].mxu0  ;;  %7089 = vmatprep.subr.bf16.mxu1 %v7671_v51 }
 0x47b   :  { %v2757_v7 = vadd.f32 %v8645_v0, %v2519_v6  ;;  %v6952_v10 = vpop.f32.mrb[138].mxu0  ;;  %7025 = vmatprep.mubr.bf16.mxu1 %v2879_v62 }
 0x47c   :  { %v2760_v13 = vadd.f32 %v6952_v10, %v8645_v0  ;;  %v2522_v14 = vpop.f32.mrb[139].mxu0  ;;  %7026 = vmatmul.mubr.bf16.gmra.mrb[132].mxu1 %v2880_v61  ;;  %v2823_v20 = vmax.f32 %v2759_v4, 0.0 }
 0x47d   :  { %v2758_v15 = vadd.f32 %v8645_v0, %v2522_v14  ;;  %7090 = vmatpush3.bf16.msra.mxu1 %v7671_v51  ;;  %v2821_v23 = vmax.f32 %v2757_v7, 0.0  ;;  %v7676_v7 = vld [vmem:[%s9899_s14 + $0x38] sm:$0xff]  }
 0x47e   :  { %v2824_v21 = vmax.f32 %v2760_v13, 0.0  ;;  %7091 = vmatprep.subr.bf16.mxu1 %v7672_v63 }
 0x47f   :  { %v2822_v26 = vmax.f32 %v2758_v15, 0.0 }
 0x480   :  { %v2882_v29 = vpack.c.bf16 %v2824_v21, %v2823_v20 }
 0x481   :  { %v2881_v30 = vpack.c.bf16 %v2822_v26, %v2821_v23  ;;  %v6955_v31 = vpop.f32.mrb[140].mxu0  ;;  %7092 = vmatpush3.bf16.msra.mxu1 %v7672_v63 }
 0x482   :  { %v2763_v32 = vadd.f32 %v6955_v31, %v8645_v0  ;;  %v2535_v34 = vpop.f32.mrb[141].mxu0  ;;  %7093 = vmatprep.subr.bf16.mxu1 %v7673_v22 }
 0x483   :  { %v2761_v39 = vadd.f32 %v8645_v0, %v2535_v34  ;;  %v6956_v40 = vpop.f32.mrb[142].mxu0  ;;  %7029 = vmatprep.mubr.bf16.mxu1 %v2881_v30 }
 0x484   :  { %v2764_v43 = vadd.f32 %v6956_v40, %v8645_v0  ;;  %v2538_v46 = vpop.f32.mrb[143].mxu0  ;;  %7030 = vmatmul.mubr.bf16.gmra.mrb[136].mxu1 %v2882_v29  ;;  %v2827_v50 = vmax.f32 %v2763_v32, 0.0 }
 0x485   :  { %v2762_v49 = vadd.f32 %v8645_v0, %v2538_v46  ;;  %7094 = vmatpush3.bf16.msra.mxu1 %v7673_v22  ;;  %v2825_v57 = vmax.f32 %v2761_v39, 0.0 }
 0x486   :  { %v2828_v51 = vmax.f32 %v2764_v43, 0.0  ;;  %7095 = vmatprep.subr.bf16.mxu1 %v7674_v38 }
 0x487   :  { %v2826_v61 = vmax.f32 %v2762_v49, 0.0 }
 0x488   :  { %v2884_v62 = vpack.c.bf16 %v2828_v51, %v2827_v50 }
 0x489   :  { %v2883_v3 = vpack.c.bf16 %v2826_v61, %v2825_v57  ;;  %v6959_v4 = vpop.f32.mrb[144].mxu0  ;;  %7096 = vmatpush3.bf16.msra.mxu1 %v7674_v38 }
 0x48a   :  { %v2767_v6 = vadd.f32 %v6959_v4, %v8645_v0  ;;  %v2551_v63 = vpop.f32.mrb[145].mxu0  ;;  %7097 = vmatprep.subr.bf16.mxu1 %v7675_v56 }
 0x48b   :  { %v2765_v10 = vadd.f32 %v8645_v0, %v2551_v63  ;;  %v6960_v13 = vpop.f32.mrb[146].mxu0  ;;  %7033 = vmatprep.mubr.bf16.mxu1 %v2883_v3 }
 0x48c   :  { %v2768_v14 = vadd.f32 %v6960_v13, %v8645_v0  ;;  %v2554_v15 = vpop.f32.mrb[147].mxu0  ;;  %7034 = vmatmul.mubr.bf16.gmra.mrb[140].mxu1 %v2884_v62  ;;  %v2831_v21 = vmax.f32 %v2767_v6, 0.0 }
 0x48d   :  { %v2766_v20 = vadd.f32 %v8645_v0, %v2554_v15  ;;  %7098 = vmatpush3.bf16.msra.mxu1 %v7675_v56  ;;  %v2829_v23 = vmax.f32 %v2765_v10, 0.0 }
 0x48e   :  { %v2832_v22 = vmax.f32 %v2768_v14, 0.0  ;;  %7099 = vmatprep.subr.bf16.mxu1 %v7676_v7 }
 0x48f   :  { %v2830_v26 = vmax.f32 %v2766_v20, 0.0 }
 0x490   :  { %v2886_v29 = vpack.c.bf16 %v2832_v22, %v2831_v21 }
 0x491   :  { %v2885_v30 = vpack.c.bf16 %v2830_v26, %v2829_v23  ;;  %v6963_v31 = vpop.f32.mrb[148].mxu0  ;;  %7100 = vmatpush3.bf16.msra.mxu1 %v7676_v7 }
 0x492   :  { %v2771_v32 = vadd.f32 %v6963_v31, %v8645_v0  ;;  %v2567_v34 = vpop.f32.mrb[149].mxu0 }
 0x493   :  { %v2769_v38 = vadd.f32 %v8645_v0, %v2567_v34  ;;  %v6964_v39 = vpop.f32.mrb[150].mxu0  ;;  %7037 = vmatprep.mubr.bf16.mxu1 %v2885_v30 }
 0x494   :  { %v2772_v40 = vadd.f32 %v6964_v39, %v8645_v0  ;;  %v2570_v43 = vpop.f32.mrb[151].mxu0  ;;  %7038 = vmatmul.mubr.bf16.gmra.mrb[144].mxu1 %v2886_v29  ;;  %v2835_v49 = vmax.f32 %v2771_v32, 0.0 }
 0x495   :  { %v2770_v46 = vadd.f32 %v8645_v0, %v2570_v43  ;;  %v2833_v51 = vmax.f32 %v2769_v38, 0.0 }
 0x496   :  { %v2836_v50 = vmax.f32 %v2772_v40, 0.0 }
 0x497   :  { %v2834_v56 = vmax.f32 %v2770_v46, 0.0 }
 0x498   :  { %v2888_v57 = vpack.c.bf16 %v2836_v50, %v2835_v49 }
 0x499   :  { %v2887_v61 = vpack.c.bf16 %v2834_v56, %v2833_v51  ;;  %v6967_v62 = vpop.f32.mrb[152].mxu0 }
 0x49a   :  { %v2775_v3 = vadd.f32 %v6967_v62, %v8645_v0  ;;  %v2583_v4 = vpop.f32.mrb[153].mxu0 }
 0x49b   :  { %v2773_v6 = vadd.f32 %v8645_v0, %v2583_v4  ;;  %v6968_v63 = vpop.f32.mrb[154].mxu0  ;;  %7041 = vmatprep.mubr.bf16.mxu1 %v2887_v61 }
 0x49c   :  { %v2776_v7 = vadd.f32 %v6968_v63, %v8645_v0  ;;  %v2586_v10 = vpop.f32.mrb[155].mxu0  ;;  %7042 = vmatmul.mubr.bf16.gmra.mrb[148].mxu1 %v2888_v57  ;;  %v2839_v14 = vmax.f32 %v2775_v3, 0.0 }
 0x49d   :  { %v2774_v13 = vadd.f32 %v8645_v0, %v2586_v10  ;;  %v2837_v20 = vmax.f32 %v2773_v6, 0.0 }
 0x49e   :  { %v2840_v15 = vmax.f32 %v2776_v7, 0.0 }
 0x49f   :  { %v2838_v21 = vmax.f32 %v2774_v13, 0.0 }
 0x4a0   :  { %v2890_v22 = vpack.c.bf16 %v2840_v15, %v2839_v14 }
 0x4a1   :  { %v2889_v23 = vpack.c.bf16 %v2838_v21, %v2837_v20  ;;  %v6971_v26 = vpop.f32.mrb[156].mxu0 }
 0x4a2   :  { %v2779_v29 = vadd.f32 %v6971_v26, %v8645_v0  ;;  %v2599_v30 = vpop.f32.mrb[157].mxu0 }
 0x4a3   :  { %v2777_v31 = vadd.f32 %v8645_v0, %v2599_v30  ;;  %v6972_v32 = vpop.f32.mrb[158].mxu0  ;;  %7045 = vmatprep.mubr.bf16.mxu1 %v2889_v23 }
 0x4a4   :  { %v2780_v34 = vadd.f32 %v6972_v32, %v8645_v0  ;;  %v2602_v38 = vpop.f32.mrb[159].mxu0  ;;  %7046 = vmatmul.mubr.bf16.gmra.mrb[152].mxu1 %v2890_v22  ;;  %v2843_v40 = vmax.f32 %v2779_v29, 0.0 }
 0x4a5   :  { %v2778_v39 = vadd.f32 %v8645_v0, %v2602_v38  ;;  %v2841_v46 = vmax.f32 %v2777_v31, 0.0 }
 0x4a6   :  { %v2844_v43 = vmax.f32 %v2780_v34, 0.0 }
 0x4a7   :  { %v2842_v49 = vmax.f32 %v2778_v39, 0.0 }
 0x4a8   :  { %v2892_v50 = vpack.c.bf16 %v2844_v43, %v2843_v40 }
 0x4a9   :  { %v2891_v51 = vpack.c.bf16 %v2842_v49, %v2841_v46  ;;  %v6975_v56 = vpop.f32.mrb[160].mxu0 }
 0x4aa   :  { %v2783_v57 = vadd.f32 %v6975_v56, %v8645_v0  ;;  %v2615_v61 = vpop.f32.mrb[161].mxu0 }
 0x4ab   :  { %v2781_v62 = vadd.f32 %v8645_v0, %v2615_v61  ;;  %v6976_v3 = vpop.f32.mrb[162].mxu0  ;;  %7049 = vmatprep.mubr.bf16.mxu1 %v2891_v51 }
 0x4ac   :  { %v2784_v4 = vadd.f32 %v6976_v3, %v8645_v0  ;;  %v2618_v6 = vpop.f32.mrb[163].mxu0  ;;  %7050 = vmatmul.mubr.bf16.gmra.mrb[156].mxu1 %v2892_v50  ;;  %v2847_v7 = vmax.f32 %v2783_v57, 0.0 }
 0x4ad   :  { %v2782_v63 = vadd.f32 %v8645_v0, %v2618_v6  ;;  %v2845_v13 = vmax.f32 %v2781_v62, 0.0 }
 0x4ae   :  { %v2848_v10 = vmax.f32 %v2784_v4, 0.0 }
 0x4af   :  { %v2846_v14 = vmax.f32 %v2782_v63, 0.0 }
 0x4b0   :  { %v2894_v15 = vpack.c.bf16 %v2848_v10, %v2847_v7 }
 0x4b1   :  { %v2893_v20 = vpack.c.bf16 %v2846_v14, %v2845_v13  ;;  %v6979_v21 = vpop.f32.mrb[164].mxu0 }
 0x4b2   :  { %v2787_v22 = vadd.f32 %v6979_v21, %v8645_v0  ;;  %v2631_v23 = vpop.f32.mrb[165].mxu0 }
 0x4b3   :  { %v2785_v26 = vadd.f32 %v8645_v0, %v2631_v23  ;;  %v6980_v29 = vpop.f32.mrb[166].mxu0  ;;  %7053 = vmatprep.mubr.bf16.mxu1 %v2893_v20 }
 0x4b4   :  { %v2788_v30 = vadd.f32 %v6980_v29, %v8645_v0  ;;  %v2634_v31 = vpop.f32.mrb[167].mxu0  ;;  %7054 = vmatmul.mubr.bf16.gmra.mrb[160].mxu1 %v2894_v15  ;;  %v2851_v34 = vmax.f32 %v2787_v22, 0.0 }
 0x4b5   :  { %v2786_v32 = vadd.f32 %v8645_v0, %v2634_v31  ;;  %v2849_v39 = vmax.f32 %v2785_v26, 0.0 }
 0x4b6   :  { %v2852_v38 = vmax.f32 %v2788_v30, 0.0 }
 0x4b7   :  { %v2850_v40 = vmax.f32 %v2786_v32, 0.0 }
 0x4b8   :  { %v2896_v43 = vpack.c.bf16 %v2852_v38, %v2851_v34 }
 0x4b9   :  { %v2895_v46 = vpack.c.bf16 %v2850_v40, %v2849_v39  ;;  %v6983_v49 = vpop.f32.mrb[168].mxu0 }
 0x4ba   :  { %v2791_v50 = vadd.f32 %v6983_v49, %v8645_v0  ;;  %v2647_v51 = vpop.f32.mrb[169].mxu0 }
 0x4bb   :  { %v2789_v56 = vadd.f32 %v8645_v0, %v2647_v51  ;;  %v6984_v57 = vpop.f32.mrb[170].mxu0  ;;  %7057 = vmatprep.mubr.bf16.mxu1 %v2895_v46 }
 0x4bc   :  { %v2792_v61 = vadd.f32 %v6984_v57, %v8645_v0  ;;  %v2650_v62 = vpop.f32.mrb[171].mxu0  ;;  %7058 = vmatmul.mubr.bf16.gmra.mrb[164].mxu1 %v2896_v43  ;;  %v2855_v4 = vmax.f32 %v2791_v50, 0.0 }
 0x4bd   :  { %v2790_v3 = vadd.f32 %v8645_v0, %v2650_v62  ;;  %v2853_v63 = vmax.f32 %v2789_v56, 0.0 }
 0x4be   :  { %v2856_v6 = vmax.f32 %v2792_v61, 0.0 }
 0x4bf   :  { %v2854_v7 = vmax.f32 %v2790_v3, 0.0 }
 0x4c0   :  { %v2898_v10 = vpack.c.bf16 %v2856_v6, %v2855_v4 }
 0x4c1   :  { %v2897_v13 = vpack.c.bf16 %v2854_v7, %v2853_v63  ;;  %v6987_v14 = vpop.f32.mrb[172].mxu0 }
 0x4c2   :  { %v2795_v15 = vadd.f32 %v6987_v14, %v8645_v0  ;;  %v2663_v20 = vpop.f32.mrb[173].mxu0 }
 0x4c3   :  { %v2793_v21 = vadd.f32 %v8645_v0, %v2663_v20  ;;  %v6988_v22 = vpop.f32.mrb[174].mxu0  ;;  %7061 = vmatprep.mubr.bf16.mxu1 %v2897_v13 }
 0x4c4   :  { %v2796_v23 = vadd.f32 %v6988_v22, %v8645_v0  ;;  %v2666_v26 = vpop.f32.mrb[175].mxu0  ;;  %7062 = vmatmul.mubr.bf16.gmra.mrb[168].mxu1 %v2898_v10  ;;  %v2859_v30 = vmax.f32 %v2795_v15, 0.0 }
 0x4c5   :  { %v2794_v29 = vadd.f32 %v8645_v0, %v2666_v26  ;;  %v2857_v32 = vmax.f32 %v2793_v21, 0.0 }
 0x4c6   :  { %v2860_v31 = vmax.f32 %v2796_v23, 0.0 }
 0x4c7   :  { %v2858_v34 = vmax.f32 %v2794_v29, 0.0 }
 0x4c8   :  { %v2900_v38 = vpack.c.bf16 %v2860_v31, %v2859_v30 }
 0x4c9   :  { %v2899_v39 = vpack.c.bf16 %v2858_v34, %v2857_v32  ;;  %v6991_v40 = vpop.f32.mrb[176].mxu0 }
 0x4ca   :  { %v2799_v43 = vadd.f32 %v6991_v40, %v8645_v0  ;;  %v2679_v46 = vpop.f32.mrb[177].mxu0 }
 0x4cb   :  { %v2797_v49 = vadd.f32 %v8645_v0, %v2679_v46  ;;  %v6992_v50 = vpop.f32.mrb[178].mxu0  ;;  %7065 = vmatprep.mubr.bf16.mxu1 %v2899_v39 }
 0x4cc   :  { %v2800_v51 = vadd.f32 %v6992_v50, %v8645_v0  ;;  %v2682_v56 = vpop.f32.mrb[179].mxu0  ;;  %7066 = vmatmul.mubr.bf16.gmra.mrb[172].mxu1 %v2900_v38  ;;  %v2863_v61 = vmax.f32 %v2799_v43, 0.0 }
 0x4cd   :  { %v2798_v57 = vadd.f32 %v8645_v0, %v2682_v56  ;;  %v2861_v3 = vmax.f32 %v2797_v49, 0.0 }
 0x4ce   :  { %v2864_v62 = vmax.f32 %v2800_v51, 0.0 }
 0x4cf   :  { %v2862_v4 = vmax.f32 %v2798_v57, 0.0 }
 0x4d0   :  { %v2902_v6 = vpack.c.bf16 %v2864_v62, %v2863_v61 }
 0x4d1   :  { %v2901_v63 = vpack.c.bf16 %v2862_v4, %v2861_v3  ;;  %v6995_v7 = vpop.f32.mrb[180].mxu0 }
 0x4d2   :  { %v2803_v10 = vadd.f32 %v6995_v7, %v8645_v0  ;;  %v2695_v13 = vpop.f32.mrb[181].mxu0 }
 0x4d3   :  { %v2801_v14 = vadd.f32 %v8645_v0, %v2695_v13  ;;  %v6996_v15 = vpop.f32.mrb[182].mxu0  ;;  %7069 = vmatprep.mubr.bf16.mxu1 %v2901_v63 }
 0x4d4   :  { %v2804_v20 = vadd.f32 %v6996_v15, %v8645_v0  ;;  %v2698_v21 = vpop.f32.mrb[183].mxu0  ;;  %7070 = vmatmul.mubr.bf16.gmra.mrb[176].mxu1 %v2902_v6  ;;  %v2867_v23 = vmax.f32 %v2803_v10, 0.0 }
 0x4d5   :  { %v2802_v22 = vadd.f32 %v8645_v0, %v2698_v21  ;;  %v2865_v29 = vmax.f32 %v2801_v14, 0.0 }
 0x4d6   :  { %v2868_v26 = vmax.f32 %v2804_v20, 0.0 }
 0x4d7   :  { %v2866_v30 = vmax.f32 %v2802_v22, 0.0 }
 0x4d8   :  { %v2904_v31 = vpack.c.bf16 %v2868_v26, %v2867_v23 }
 0x4d9   :  { %v2903_v32 = vpack.c.bf16 %v2866_v30, %v2865_v29  ;;  %v6999_v34 = vpop.f32.mrb[184].mxu0  ;;  %v7677_v30 = vld [vmem:[%s9901_s16] sm:$0xff]  }
 0x4da   :  { %v2807_v38 = vadd.f32 %v6999_v34, %v8645_v0  ;;  %v2711_v39 = vpop.f32.mrb[185].mxu0  ;;  %7165 = vmatprep.subr.bf16.mxu0 %v7677_v30 }
 0x4db   :  { %v2805_v40 = vadd.f32 %v8645_v0, %v2711_v39  ;;  %v7000_v43 = vpop.f32.mrb[186].mxu0  ;;  %7073 = vmatprep.mubr.bf16.mxu1 %v2903_v32  ;;  %7166 = vmatpush3.bf16.msra.mxu0 %v7677_v30 }
 0x4dc   :  { %v2808_v46 = vadd.f32 %v7000_v43, %v8645_v0  ;;  %v2714_v49 = vpop.f32.mrb[187].mxu0  ;;  %7074 = vmatmul.mubr.bf16.gmra.mrb[180].mxu1 %v2904_v31  ;;  %v2871_v51 = vmax.f32 %v2807_v38, 0.0  ;;  %v7678_v31 = vld [vmem:[%s9901_s16 + $0x8] sm:$0xff]  }
 0x4dd   :  { %v2806_v50 = vadd.f32 %v8645_v0, %v2714_v49  ;;  %v2869_v57 = vmax.f32 %v2805_v40, 0.0  ;;  %7167 = vmatprep.subr.bf16.mxu0 %v7678_v31  ;;  %v7679_v49 = vld [vmem:[%s9901_s16 + $0x10] sm:$0xff]  }
 0x4de   :  { %v2872_v56 = vmax.f32 %v2808_v46, 0.0 }
 0x4df   :  { %v2870_v61 = vmax.f32 %v2806_v50, 0.0  ;;  %7168 = vmatpush3.bf16.msra.mxu0 %v7678_v31  ;;  %v7680_v50 = vld [vmem:[%s9901_s16 + $0x18] sm:$0xff]  }
 0x4e0   :  { %v2906_v62 = vpack.c.bf16 %v2872_v56, %v2871_v51  ;;  %7169 = vmatprep.subr.bf16.mxu0 %v7679_v49 }
 0x4e1   :  { %v2905_v3 = vpack.c.bf16 %v2870_v61, %v2869_v57  ;;  %v7003_v4 = vpop.f32.mrb[188].mxu0 }
 0x4e2   :  { %v2811_v6 = vadd.f32 %v7003_v4, %v8645_v0  ;;  %v2727_v63 = vpop.f32.mrb[189].mxu0  ;;  %v7681_v4 = vld [vmem:[%s9901_s16 + $0x20] sm:$0xff]  }
 0x4e3   :  { %v2809_v7 = vadd.f32 %v8645_v0, %v2727_v63  ;;  %v7004_v10 = vpop.f32.mrb[190].mxu0  ;;  %7077 = vmatprep.mubr.bf16.mxu1 %v2905_v3  ;;  %7170 = vmatpush3.bf16.msra.mxu0 %v7679_v49 }
 0x4e4   :  { %v2812_v13 = vadd.f32 %v7004_v10, %v8645_v0  ;;  %v2730_v14 = vpop.f32.mrb[191].mxu0  ;;  %7078 = vmatmul.mubr.bf16.gmra.mrb[184].mxu1 %v2906_v62  ;;  %v2875_v20 = vmax.f32 %v2811_v6, 0.0  ;;  %7171 = vmatprep.subr.bf16.mxu0 %v7680_v50 }
 0x4e5   :  { %v2810_v15 = vadd.f32 %v8645_v0, %v2730_v14  ;;  %v2873_v22 = vmax.f32 %v2809_v7, 0.0  ;;  %v8741_v0 = vld [vmem:[%s9902_s13] ss:$0 sm:$0xff] }
 0x4e6   :  { %v2876_v21 = vmax.f32 %v2812_v13, 0.0 }
 0x4e7   :  { %v2874_v23 = vmax.f32 %v2810_v15, 0.0  ;;  %7172 = vmatpush3.bf16.msra.mxu0 %v7680_v50 }
 0x4e8   :  { %v2908_v26 = vpack.c.bf16 %v2876_v21, %v2875_v20  ;;  %7173 = vmatprep.subr.bf16.mxu0 %v7681_v4  ;;  %v7682_v21 = vld [vmem:[%s9901_s16 + $0x28] sm:$0xff]  }
 0x4e9   :  { %v2907_v29 = vpack.c.bf16 %v2874_v23, %v2873_v22 }
 0x4eb   :  { %7081 = vmatprep.mubr.bf16.mxu1 %v2907_v29  ;;  %7174 = vmatpush3.bf16.msra.mxu0 %v7681_v4 }
 0x4ec   :  { %7082 = vmatmul.mubr.bf16.gmra.mrb[188].mxu1 %v2908_v26  ;;  %7175 = vmatprep.subr.bf16.mxu0 %v7682_v21 }
 0x4ef   :  { %7176 = vmatpush3.bf16.msra.mxu0 %v7682_v21 }
 0x547   :  { %v7023_v32 = vpop.f32.mrb[128].mxu1 }
 0x548   :  { %v3023_v34 = vadd.f32 %v7023_v32, %v8741_v0  ;;  %v3014_v38 = vpop.f32.mrb[129].mxu1  ;;  %v7683_v32 = vld [vmem:[%s9901_s16 + $0x30] sm:$0xff]  }
 0x549   :  { %v3015_v39 = vadd.f32 %v8741_v0, %v3014_v38  ;;  %v7024_v40 = vpop.f32.mrb[130].mxu1  ;;  %7177 = vmatprep.subr.bf16.mxu0 %v7683_v32 }
 0x54a   :  { %v3026_v43 = vadd.f32 %v7024_v40, %v8741_v0  ;;  %v3017_v46 = vpop.f32.mrb[131].mxu1  ;;  %v3271_v56 = vmax.f32 %v3023_v34, 0.0  ;;  %7178 = vmatpush3.bf16.msra.mxu0 %v7683_v32 }
 0x54b   :  { %v3018_v51 = vadd.f32 %v8741_v0, %v3017_v46  ;;  %v3269_v61 = vmax.f32 %v3015_v39, 0.0 }
 0x54c   :  { %v3272_v57 = vmax.f32 %v3026_v43, 0.0 }
 0x54d   :  { %v3270_v62 = vmax.f32 %v3018_v51, 0.0  ;;  %v7684_v51 = vld [vmem:[%s9901_s16 + $0x38] sm:$0xff]  }
 0x54e   :  { %v3334_v3 = vpack.c.bf16 %v3272_v57, %v3271_v56  ;;  %7179 = vmatprep.subr.bf16.mxu0 %v7684_v51 }
 0x54f   :  { %v3333_v6 = vpack.c.bf16 %v3270_v62, %v3269_v61  ;;  %v7027_v63 = vpop.f32.mrb[132].mxu1  ;;  %7180 = vmatpush3.bf16.msra.mxu0 %v7684_v51 }
 0x550   :  { %v3039_v7 = vadd.f32 %v7027_v63, %v8741_v0  ;;  %v3030_v10 = vpop.f32.mrb[133].mxu1 }
 0x551   :  { %v3031_v13 = vadd.f32 %v8741_v0, %v3030_v10  ;;  %v7028_v14 = vpop.f32.mrb[134].mxu1  ;;  %7101 = vmatprep.mubr.bf16.mxu1 %v3333_v6 }
 0x552   :  { %v3042_v15 = vadd.f32 %v7028_v14, %v8741_v0  ;;  %v3033_v20 = vpop.f32.mrb[135].mxu1  ;;  %7102 = vmatmul.mubr.bf16.vlgmr.msra.gmra.mrb[192].mxu1 %v3334_v3  ;;  %v3275_v23 = vmax.f32 %v3039_v7, 0.0 }
 0x553   :  { %v3034_v22 = vadd.f32 %v8741_v0, %v3033_v20  ;;  %v3273_v29 = vmax.f32 %v3031_v13, 0.0 }
 0x554   :  { %v3276_v26 = vmax.f32 %v3042_v15, 0.0 }
 0x555   :  { %v3274_v30 = vmax.f32 %v3034_v22, 0.0 }
 0x556   :  { %v3336_v31 = vpack.c.bf16 %v3276_v26, %v3275_v23 }
 0x557   :  { %v3335_v34 = vpack.c.bf16 %v3274_v30, %v3273_v29  ;;  %v7031_v38 = vpop.f32.mrb[136].mxu1 }
 0x558   :  { %v3055_v39 = vadd.f32 %v7031_v38, %v8741_v0  ;;  %v3046_v40 = vpop.f32.mrb[137].mxu1 }
 0x559   :  { %v3047_v43 = vadd.f32 %v8741_v0, %v3046_v40  ;;  %v7032_v46 = vpop.f32.mrb[138].mxu1  ;;  %7105 = vmatprep.mubr.bf16.mxu1 %v3335_v34 }
 0x55a   :  { %v3058_v49 = vadd.f32 %v7032_v46, %v8741_v0  ;;  %v3049_v50 = vpop.f32.mrb[139].mxu1  ;;  %7106 = vmatmul.mubr.bf16.gmra.mrb[196].mxu1 %v3336_v31  ;;  %v3279_v57 = vmax.f32 %v3055_v39, 0.0 }
 0x55b   :  { %v3050_v56 = vadd.f32 %v8741_v0, %v3049_v50  ;;  %v3277_v62 = vmax.f32 %v3047_v43, 0.0 }
 0x55c   :  { %v3280_v61 = vmax.f32 %v3058_v49, 0.0 }
 0x55d   :  { %v3278_v3 = vmax.f32 %v3050_v56, 0.0 }
 0x55e   :  { %v3338_v4 = vpack.c.bf16 %v3280_v61, %v3279_v57 }
 0x55f   :  { %v3337_v6 = vpack.c.bf16 %v3278_v3, %v3277_v62  ;;  %v7035_v63 = vpop.f32.mrb[140].mxu1 }
 0x560   :  { %v3071_v7 = vadd.f32 %v7035_v63, %v8741_v0  ;;  %v3062_v10 = vpop.f32.mrb[141].mxu1 }
 0x561   :  { %v3063_v13 = vadd.f32 %v8741_v0, %v3062_v10  ;;  %v7036_v14 = vpop.f32.mrb[142].mxu1  ;;  %7109 = vmatprep.mubr.bf16.mxu1 %v3337_v6 }
 0x562   :  { %v3074_v15 = vadd.f32 %v7036_v14, %v8741_v0  ;;  %v3065_v20 = vpop.f32.mrb[143].mxu1  ;;  %7110 = vmatmul.mubr.bf16.gmra.mrb[200].mxu1 %v3338_v4  ;;  %v3283_v22 = vmax.f32 %v3071_v7, 0.0 }
 0x563   :  { %v3066_v21 = vadd.f32 %v8741_v0, %v3065_v20  ;;  %v3281_v26 = vmax.f32 %v3063_v13, 0.0 }
 0x564   :  { %v3284_v23 = vmax.f32 %v3074_v15, 0.0 }
 0x565   :  { %v3282_v29 = vmax.f32 %v3066_v21, 0.0 }
 0x566   :  { %v3340_v30 = vpack.c.bf16 %v3284_v23, %v3283_v22 }
 0x567   :  { %v3339_v31 = vpack.c.bf16 %v3282_v29, %v3281_v26  ;;  %v7039_v32 = vpop.f32.mrb[144].mxu1 }
 0x568   :  { %v3087_v34 = vadd.f32 %v7039_v32, %v8741_v0  ;;  %v3078_v38 = vpop.f32.mrb[145].mxu1 }
 0x569   :  { %v3079_v39 = vadd.f32 %v8741_v0, %v3078_v38  ;;  %v7040_v40 = vpop.f32.mrb[146].mxu1  ;;  %7113 = vmatprep.mubr.bf16.mxu1 %v3339_v31 }
 0x56a   :  { %v3090_v43 = vadd.f32 %v7040_v40, %v8741_v0  ;;  %v3081_v46 = vpop.f32.mrb[147].mxu1  ;;  %7114 = vmatmul.mubr.bf16.gmra.mrb[204].mxu1 %v3340_v30  ;;  %v3287_v50 = vmax.f32 %v3087_v34, 0.0 }
 0x56b   :  { %v3082_v49 = vadd.f32 %v8741_v0, %v3081_v46  ;;  %v3285_v56 = vmax.f32 %v3079_v39, 0.0 }
 0x56c   :  { %v3288_v51 = vmax.f32 %v3090_v43, 0.0 }
 0x56d   :  { %v3286_v57 = vmax.f32 %v3082_v49, 0.0 }
 0x56e   :  { %v3342_v61 = vpack.c.bf16 %v3288_v51, %v3287_v50 }
 0x56f   :  { %v3341_v62 = vpack.c.bf16 %v3286_v57, %v3285_v56  ;;  %v7043_v3 = vpop.f32.mrb[148].mxu1 }
 0x570   :  { %v3103_v4 = vadd.f32 %v7043_v3, %v8741_v0  ;;  %v3094_v6 = vpop.f32.mrb[149].mxu1 }
 0x571   :  { %v3095_v63 = vadd.f32 %v8741_v0, %v3094_v6  ;;  %v7044_v7 = vpop.f32.mrb[150].mxu1  ;;  %7117 = vmatprep.mubr.bf16.mxu1 %v3341_v62 }
 0x572   :  { %v3106_v10 = vadd.f32 %v7044_v7, %v8741_v0  ;;  %v3097_v13 = vpop.f32.mrb[151].mxu1  ;;  %7118 = vmatmul.mubr.bf16.gmra.mrb[208].mxu1 %v3342_v61  ;;  %v3291_v15 = vmax.f32 %v3103_v4, 0.0 }
 0x573   :  { %v3098_v14 = vadd.f32 %v8741_v0, %v3097_v13  ;;  %v3289_v21 = vmax.f32 %v3095_v63, 0.0 }
 0x574   :  { %v3292_v20 = vmax.f32 %v3106_v10, 0.0 }
 0x575   :  { %v3290_v22 = vmax.f32 %v3098_v14, 0.0 }
 0x576   :  { %v3344_v23 = vpack.c.bf16 %v3292_v20, %v3291_v15 }
 0x577   :  { %v3343_v26 = vpack.c.bf16 %v3290_v22, %v3289_v21  ;;  %v7047_v29 = vpop.f32.mrb[152].mxu1 }
 0x578   :  { %v3119_v30 = vadd.f32 %v7047_v29, %v8741_v0  ;;  %v3110_v31 = vpop.f32.mrb[153].mxu1 }
 0x579   :  { %v3111_v32 = vadd.f32 %v8741_v0, %v3110_v31  ;;  %v7048_v34 = vpop.f32.mrb[154].mxu1  ;;  %7121 = vmatprep.mubr.bf16.mxu1 %v3343_v26 }
 0x57a   :  { %v3122_v38 = vadd.f32 %v7048_v34, %v8741_v0  ;;  %v3113_v39 = vpop.f32.mrb[155].mxu1  ;;  %7122 = vmatmul.mubr.bf16.gmra.mrb[212].mxu1 %v3344_v23  ;;  %v3295_v43 = vmax.f32 %v3119_v30, 0.0 }
 0x57b   :  { %v3114_v40 = vadd.f32 %v8741_v0, %v3113_v39  ;;  %v3293_v49 = vmax.f32 %v3111_v32, 0.0 }
 0x57c   :  { %v3296_v46 = vmax.f32 %v3122_v38, 0.0 }
 0x57d   :  { %v3294_v50 = vmax.f32 %v3114_v40, 0.0 }
 0x57e   :  { %v3346_v51 = vpack.c.bf16 %v3296_v46, %v3295_v43 }
 0x57f   :  { %v3345_v56 = vpack.c.bf16 %v3294_v50, %v3293_v49  ;;  %v7051_v57 = vpop.f32.mrb[156].mxu1 }
 0x580   :  { %v3135_v61 = vadd.f32 %v7051_v57, %v8741_v0  ;;  %v3126_v62 = vpop.f32.mrb[157].mxu1 }
 0x581   :  { %v3127_v3 = vadd.f32 %v8741_v0, %v3126_v62  ;;  %v7052_v4 = vpop.f32.mrb[158].mxu1  ;;  %7125 = vmatprep.mubr.bf16.mxu1 %v3345_v56 }
 0x582   :  { %v3138_v6 = vadd.f32 %v7052_v4, %v8741_v0  ;;  %v3129_v63 = vpop.f32.mrb[159].mxu1  ;;  %7126 = vmatmul.mubr.bf16.gmra.mrb[216].mxu1 %v3346_v51  ;;  %v3299_v10 = vmax.f32 %v3135_v61, 0.0 }
 0x583   :  { %v3130_v7 = vadd.f32 %v8741_v0, %v3129_v63  ;;  %v3297_v14 = vmax.f32 %v3127_v3, 0.0 }
 0x584   :  { %v3300_v13 = vmax.f32 %v3138_v6, 0.0 }
 0x585   :  { %v3298_v15 = vmax.f32 %v3130_v7, 0.0 }
 0x586   :  { %v3348_v20 = vpack.c.bf16 %v3300_v13, %v3299_v10 }
 0x587   :  { %v3347_v21 = vpack.c.bf16 %v3298_v15, %v3297_v14  ;;  %v7055_v22 = vpop.f32.mrb[160].mxu1 }
 0x588   :  { %v3151_v23 = vadd.f32 %v7055_v22, %v8741_v0  ;;  %v3142_v26 = vpop.f32.mrb[161].mxu1 }
 0x589   :  { %v3143_v29 = vadd.f32 %v8741_v0, %v3142_v26  ;;  %v7056_v30 = vpop.f32.mrb[162].mxu1  ;;  %7129 = vmatprep.mubr.bf16.mxu1 %v3347_v21 }
 0x58a   :  { %v3154_v31 = vadd.f32 %v7056_v30, %v8741_v0  ;;  %v3145_v32 = vpop.f32.mrb[163].mxu1  ;;  %7130 = vmatmul.mubr.bf16.gmra.mrb[220].mxu1 %v3348_v20  ;;  %v3303_v38 = vmax.f32 %v3151_v23, 0.0 }
 0x58b   :  { %v3146_v34 = vadd.f32 %v8741_v0, %v3145_v32  ;;  %v3301_v40 = vmax.f32 %v3143_v29, 0.0 }
 0x58c   :  { %v3304_v39 = vmax.f32 %v3154_v31, 0.0 }
 0x58d   :  { %v3302_v43 = vmax.f32 %v3146_v34, 0.0 }
 0x58e   :  { %v3350_v46 = vpack.c.bf16 %v3304_v39, %v3303_v38 }
 0x58f   :  { %v3349_v49 = vpack.c.bf16 %v3302_v43, %v3301_v40  ;;  %v7059_v50 = vpop.f32.mrb[164].mxu1 }
 0x590   :  { %v3167_v51 = vadd.f32 %v7059_v50, %v8741_v0  ;;  %v3158_v56 = vpop.f32.mrb[165].mxu1 }
 0x591   :  { %v3159_v57 = vadd.f32 %v8741_v0, %v3158_v56  ;;  %v7060_v61 = vpop.f32.mrb[166].mxu1  ;;  %7133 = vmatprep.mubr.bf16.mxu1 %v3349_v49 }
 0x592   :  { %v3170_v62 = vadd.f32 %v7060_v61, %v8741_v0  ;;  %v3161_v3 = vpop.f32.mrb[167].mxu1  ;;  %7134 = vmatmul.mubr.bf16.gmra.mrb[224].mxu1 %v3350_v46  ;;  %v3307_v6 = vmax.f32 %v3167_v51, 0.0 }
 0x593   :  { %v3162_v4 = vadd.f32 %v8741_v0, %v3161_v3  ;;  %v3305_v7 = vmax.f32 %v3159_v57, 0.0 }
 0x594   :  { %v3308_v63 = vmax.f32 %v3170_v62, 0.0 }
 0x595   :  { %v3306_v10 = vmax.f32 %v3162_v4, 0.0 }
 0x596   :  { %v3352_v13 = vpack.c.bf16 %v3308_v63, %v3307_v6 }
 0x597   :  { %v3351_v14 = vpack.c.bf16 %v3306_v10, %v3305_v7  ;;  %v7063_v15 = vpop.f32.mrb[168].mxu1 }
 0x598   :  { %v3183_v20 = vadd.f32 %v7063_v15, %v8741_v0  ;;  %v3174_v21 = vpop.f32.mrb[169].mxu1 }
 0x599   :  { %v3175_v22 = vadd.f32 %v8741_v0, %v3174_v21  ;;  %v7064_v23 = vpop.f32.mrb[170].mxu1  ;;  %7137 = vmatprep.mubr.bf16.mxu1 %v3351_v14 }
 0x59a   :  { %v3186_v26 = vadd.f32 %v7064_v23, %v8741_v0  ;;  %v3177_v29 = vpop.f32.mrb[171].mxu1  ;;  %7138 = vmatmul.mubr.bf16.gmra.mrb[228].mxu1 %v3352_v13  ;;  %v3311_v31 = vmax.f32 %v3183_v20, 0.0 }
 0x59b   :  { %v3178_v30 = vadd.f32 %v8741_v0, %v3177_v29  ;;  %v3309_v34 = vmax.f32 %v3175_v22, 0.0 }
 0x59c   :  { %v3312_v32 = vmax.f32 %v3186_v26, 0.0 }
 0x59d   :  { %v3310_v38 = vmax.f32 %v3178_v30, 0.0 }
 0x59e   :  { %v3354_v39 = vpack.c.bf16 %v3312_v32, %v3311_v31 }
 0x59f   :  { %v3353_v40 = vpack.c.bf16 %v3310_v38, %v3309_v34  ;;  %v7067_v43 = vpop.f32.mrb[172].mxu1 }
 0x5a0   :  { %v3199_v46 = vadd.f32 %v7067_v43, %v8741_v0  ;;  %v3190_v49 = vpop.f32.mrb[173].mxu1 }
 0x5a1   :  { %v3191_v50 = vadd.f32 %v8741_v0, %v3190_v49  ;;  %v7068_v51 = vpop.f32.mrb[174].mxu1  ;;  %7141 = vmatprep.mubr.bf16.mxu1 %v3353_v40 }
 0x5a2   :  { %v3202_v56 = vadd.f32 %v7068_v51, %v8741_v0  ;;  %v3193_v57 = vpop.f32.mrb[175].mxu1  ;;  %7142 = vmatmul.mubr.bf16.gmra.mrb[232].mxu1 %v3354_v39  ;;  %v3315_v62 = vmax.f32 %v3199_v46, 0.0 }
 0x5a3   :  { %v3194_v61 = vadd.f32 %v8741_v0, %v3193_v57  ;;  %v3313_v4 = vmax.f32 %v3191_v50, 0.0 }
 0x5a4   :  { %v3316_v3 = vmax.f32 %v3202_v56, 0.0 }
 0x5a5   :  { %v3314_v6 = vmax.f32 %v3194_v61, 0.0 }
 0x5a6   :  { %v3356_v63 = vpack.c.bf16 %v3316_v3, %v3315_v62 }
 0x5a7   :  { %v3355_v7 = vpack.c.bf16 %v3314_v6, %v3313_v4  ;;  %v7071_v10 = vpop.f32.mrb[176].mxu1 }
 0x5a8   :  { %v3215_v13 = vadd.f32 %v7071_v10, %v8741_v0  ;;  %v3206_v14 = vpop.f32.mrb[177].mxu1 }
 0x5a9   :  { %v3207_v15 = vadd.f32 %v8741_v0, %v3206_v14  ;;  %v7072_v20 = vpop.f32.mrb[178].mxu1  ;;  %7145 = vmatprep.mubr.bf16.mxu1 %v3355_v7 }
 0x5aa   :  { %v3218_v21 = vadd.f32 %v7072_v20, %v8741_v0  ;;  %v3209_v22 = vpop.f32.mrb[179].mxu1  ;;  %7146 = vmatmul.mubr.bf16.gmra.mrb[236].mxu1 %v3356_v63  ;;  %v3319_v26 = vmax.f32 %v3215_v13, 0.0 }
 0x5ab   :  { %v3210_v23 = vadd.f32 %v8741_v0, %v3209_v22  ;;  %v3317_v30 = vmax.f32 %v3207_v15, 0.0 }
 0x5ac   :  { %v3320_v29 = vmax.f32 %v3218_v21, 0.0 }
 0x5ad   :  { %v3318_v31 = vmax.f32 %v3210_v23, 0.0 }
 0x5ae   :  { %v3358_v32 = vpack.c.bf16 %v3320_v29, %v3319_v26 }
 0x5af   :  { %v3357_v34 = vpack.c.bf16 %v3318_v31, %v3317_v30  ;;  %v7075_v38 = vpop.f32.mrb[180].mxu1 }
 0x5b0   :  { %v3231_v39 = vadd.f32 %v7075_v38, %v8741_v0  ;;  %v3222_v40 = vpop.f32.mrb[181].mxu1 }
 0x5b1   :  { %v3223_v43 = vadd.f32 %v8741_v0, %v3222_v40  ;;  %v7076_v46 = vpop.f32.mrb[182].mxu1  ;;  %7149 = vmatprep.mubr.bf16.mxu1 %v3357_v34 }
 0x5b2   :  { %v3234_v49 = vadd.f32 %v7076_v46, %v8741_v0  ;;  %v3225_v50 = vpop.f32.mrb[183].mxu1  ;;  %7150 = vmatmul.mubr.bf16.gmra.mrb[240].mxu1 %v3358_v32  ;;  %v3323_v56 = vmax.f32 %v3231_v39, 0.0 }
 0x5b3   :  { %v3226_v51 = vadd.f32 %v8741_v0, %v3225_v50  ;;  %v3321_v61 = vmax.f32 %v3223_v43, 0.0 }
 0x5b4   :  { %v3324_v57 = vmax.f32 %v3234_v49, 0.0 }
 0x5b5   :  { %v3322_v62 = vmax.f32 %v3226_v51, 0.0 }
 0x5b6   :  { %v3360_v3 = vpack.c.bf16 %v3324_v57, %v3323_v56 }
 0x5b7   :  { %v3359_v4 = vpack.c.bf16 %v3322_v62, %v3321_v61  ;;  %v7079_v6 = vpop.f32.mrb[184].mxu1  ;;  %v7685_v62 = vld [vmem:[%s9903_s18] sm:$0xff]  }
 0x5b8   :  { %v3247_v63 = vadd.f32 %v7079_v6, %v8741_v0  ;;  %v3238_v7 = vpop.f32.mrb[185].mxu1  ;;  %7245 = vmatprep.subr.bf16.mxu1 %v7685_v62 }
 0x5b9   :  { %v3239_v10 = vadd.f32 %v8741_v0, %v3238_v7  ;;  %v7080_v13 = vpop.f32.mrb[186].mxu1  ;;  %7153 = vmatprep.mubr.bf16.mxu1 %v3359_v4  ;;  %7246 = vmatpush3.bf16.msra.mxu1 %v7685_v62 }
 0x5ba   :  { %v3250_v14 = vadd.f32 %v7080_v13, %v8741_v0  ;;  %v3241_v15 = vpop.f32.mrb[187].mxu1  ;;  %7154 = vmatmul.mubr.bf16.gmra.mrb[244].mxu1 %v3360_v3  ;;  %v3327_v21 = vmax.f32 %v3247_v63, 0.0  ;;  %v7686_v3 = vld [vmem:[%s9903_s18 + $0x8] sm:$0xff]  }
 0x5bb   :  { %v3242_v20 = vadd.f32 %v8741_v0, %v3241_v15  ;;  %v3325_v23 = vmax.f32 %v3239_v10, 0.0  ;;  %7247 = vmatprep.subr.bf16.mxu1 %v7686_v3  ;;  %v7687_v15 = vld [vmem:[%s9903_s18 + $0x10] sm:$0xff]  }
 0x5bc   :  { %v3328_v22 = vmax.f32 %v3250_v14, 0.0 }
 0x5bd   :  { %v3326_v26 = vmax.f32 %v3242_v20, 0.0  ;;  %7248 = vmatpush3.bf16.msra.mxu1 %v7686_v3  ;;  %v7688_v20 = vld [vmem:[%s9903_s18 + $0x18] sm:$0xff]  }
 0x5be   :  { %v3362_v29 = vpack.c.bf16 %v3328_v22, %v3327_v21  ;;  %7249 = vmatprep.subr.bf16.mxu1 %v7687_v15 }
 0x5bf   :  { %v3361_v30 = vpack.c.bf16 %v3326_v26, %v3325_v23  ;;  %v7083_v31 = vpop.f32.mrb[188].mxu1  ;;  %v7689_v26 = vld [vmem:[%s9903_s18 + $0x20] sm:$0xff]  }
 0x5c0   :  { %v3263_v32 = vadd.f32 %v7083_v31, %v8741_v0  ;;  %v3254_v34 = vpop.f32.mrb[189].mxu1 }
 0x5c1   :  { %v3255_v38 = vadd.f32 %v8741_v0, %v3254_v34  ;;  %v7084_v39 = vpop.f32.mrb[190].mxu1  ;;  %7157 = vmatprep.mubr.bf16.mxu1 %v3361_v30  ;;  %7250 = vmatpush3.bf16.msra.mxu1 %v7687_v15 }
 0x5c2   :  { %v3266_v40 = vadd.f32 %v7084_v39, %v8741_v0  ;;  %v3257_v43 = vpop.f32.mrb[191].mxu1  ;;  %7158 = vmatmul.mubr.bf16.gmra.mrb[248].mxu1 %v3362_v29  ;;  %v3331_v49 = vmax.f32 %v3263_v32, 0.0  ;;  %v7692_v29 = vld [vmem:[%s9905_s21] sm:$0xff]   ;;  %7251 = vmatprep.subr.bf16.mxu1 %v7688_v20 }
 0x5c3   :  { %v3258_v46 = vadd.f32 %v8741_v0, %v3257_v43  ;;  %v3329_v51 = vmax.f32 %v3255_v38, 0.0  ;;  %v8834_v0 = vld [vmem:[%s9904_s15] ss:$0 sm:$0xff]  ;;  %7325 = vmatprep.subr.bf16.mxu0 %v7692_v29 }
 0x5c4   :  { %v3332_v50 = vmax.f32 %v3266_v40, 0.0 }
 0x5c5   :  { %v3330_v56 = vmax.f32 %v3258_v46, 0.0  ;;  %7252 = vmatpush3.bf16.msra.mxu1 %v7688_v20 }
 0x5c6   :  { %v3364_v57 = vpack.c.bf16 %v3332_v50, %v3331_v49  ;;  %7253 = vmatprep.subr.bf16.mxu1 %v7689_v26 }
 0x5c7   :  { %v3363_v61 = vpack.c.bf16 %v3330_v56, %v3329_v51  ;;  %v7690_v51 = vld [vmem:[%s9903_s18 + $0x28] sm:$0xff]  }
 0x5c9   :  { %7161 = vmatprep.mubr.bf16.mxu1 %v3363_v61  ;;  %7254 = vmatpush3.bf16.msra.mxu1 %v7689_v26 }
 0x5ca   :  { %7162 = vmatmul.mubr.bf16.gmra.mrb[252].mxu1 %v3364_v57  ;;  %7255 = vmatprep.subr.bf16.mxu1 %v7690_v51 }
 0x5cd   :  { %7256 = vmatpush3.bf16.msra.mxu1 %v7690_v51 }
 0x625   :  { %v7103_v4 = vpop.f32.mrb[192].mxu1 }
 0x626   :  { %v3479_v6 = vadd.f32 %v7103_v4, %v8834_v0  ;;  %v3470_v63 = vpop.f32.mrb[193].mxu1 }
 0x627   :  { %v3471_v7 = vadd.f32 %v8834_v0, %v3470_v63  ;;  %v7104_v10 = vpop.f32.mrb[194].mxu1 }
 0x628   :  { %v3482_v13 = vadd.f32 %v7104_v10, %v8834_v0  ;;  %v3473_v14 = vpop.f32.mrb[195].mxu1  ;;  %v3727_v22 = vmax.f32 %v3479_v6, 0.0  ;;  %v7691_v6 = vld [vmem:[%s9903_s18 + $0x30] sm:$0xff]  }
 0x629   :  { %v3474_v21 = vadd.f32 %v8834_v0, %v3473_v14  ;;  %v3725_v30 = vmax.f32 %v3471_v7, 0.0  ;;  %7257 = vmatprep.subr.bf16.mxu1 %v7691_v6 }
 0x62a   :  { %v3728_v23 = vmax.f32 %v3482_v13, 0.0  ;;  %7258 = vmatpush3.bf16.msra.mxu1 %v7691_v6 }
 0x62b   :  { %v3726_v31 = vmax.f32 %v3474_v21, 0.0 }
 0x62c   :  { %v3790_v32 = vpack.c.bf16 %v3728_v23, %v3727_v22  ;;  %v7693_v22 = vld [vmem:[%s9903_s18 + $0x38] sm:$0xff]  }
 0x62d   :  { %v3789_v34 = vpack.c.bf16 %v3726_v31, %v3725_v30  ;;  %v7107_v38 = vpop.f32.mrb[196].mxu1  ;;  %7259 = vmatprep.subr.bf16.mxu1 %v7693_v22 }
 0x62e   :  { %v3495_v39 = vadd.f32 %v7107_v38, %v8834_v0  ;;  %v3486_v40 = vpop.f32.mrb[197].mxu1  ;;  %7260 = vmatpush3.bf16.msra.mxu1 %v7693_v22 }
 0x62f   :  { %v3487_v43 = vadd.f32 %v8834_v0, %v3486_v40  ;;  %v7108_v46 = vpop.f32.mrb[198].mxu1  ;;  %7181 = vmatprep.mubr.bf16.mxu0 %v3789_v34 }
 0x630   :  { %v3498_v49 = vadd.f32 %v7108_v46, %v8834_v0  ;;  %v3489_v50 = vpop.f32.mrb[199].mxu1  ;;  %7182 = vmatmul.mubr.bf16.vlgmr.msra.gmra.mrb[192].mxu0 %v3790_v32  ;;  %v3731_v57 = vmax.f32 %v3495_v39, 0.0 }
 0x631   :  { %v3490_v56 = vadd.f32 %v8834_v0, %v3489_v50  ;;  %7326 = vmatpush3.bf16.msra.mxu0 %v7692_v29  ;;  %v3729_v62 = vmax.f32 %v3487_v43, 0.0 }
 0x632   :  { %v3732_v61 = vmax.f32 %v3498_v49, 0.0 }
 0x633   :  { %v3730_v3 = vmax.f32 %v3490_v56, 0.0 }
 0x634   :  { %v3792_v4 = vpack.c.bf16 %v3732_v61, %v3731_v57 }
 0x635   :  { %v3791_v63 = vpack.c.bf16 %v3730_v3, %v3729_v62  ;;  %v7111_v7 = vpop.f32.mrb[200].mxu1 }
 0x636   :  { %v3511_v10 = vadd.f32 %v7111_v7, %v8834_v0  ;;  %v3502_v13 = vpop.f32.mrb[201].mxu1 }
 0x637   :  { %v3503_v14 = vadd.f32 %v8834_v0, %v3502_v13  ;;  %v7112_v15 = vpop.f32.mrb[202].mxu1  ;;  %7185 = vmatprep.mubr.bf16.mxu0 %v3791_v63 }
 0x638   :  { %v3514_v20 = vadd.f32 %v7112_v15, %v8834_v0  ;;  %v3505_v21 = vpop.f32.mrb[203].mxu1  ;;  %7186 = vmatmul.mubr.bf16.gmra.mrb[196].mxu0 %v3792_v4  ;;  %v3735_v26 = vmax.f32 %v3511_v10, 0.0 }
 0x639   :  { %v3506_v23 = vadd.f32 %v8834_v0, %v3505_v21  ;;  %v3733_v30 = vmax.f32 %v3503_v14, 0.0 }
 0x63a   :  { %v3736_v29 = vmax.f32 %v3514_v20, 0.0 }
 0x63b   :  { %v3734_v31 = vmax.f32 %v3506_v23, 0.0 }
 0x63c   :  { %v3794_v32 = vpack.c.bf16 %v3736_v29, %v3735_v26 }
 0x63d   :  { %v3793_v34 = vpack.c.bf16 %v3734_v31, %v3733_v30  ;;  %v7115_v38 = vpop.f32.mrb[204].mxu1 }
 0x63e   :  { %v3527_v39 = vadd.f32 %v7115_v38, %v8834_v0  ;;  %v3518_v40 = vpop.f32.mrb[205].mxu1 }
 0x63f   :  { %v3519_v43 = vadd.f32 %v8834_v0, %v3518_v40  ;;  %v7116_v46 = vpop.f32.mrb[206].mxu1  ;;  %7189 = vmatprep.mubr.bf16.mxu0 %v3793_v34 }
 0x640   :  { %v3530_v49 = vadd.f32 %v7116_v46, %v8834_v0  ;;  %v3521_v50 = vpop.f32.mrb[207].mxu1  ;;  %7190 = vmatmul.mubr.bf16.gmra.mrb[200].mxu0 %v3794_v32  ;;  %v3739_v56 = vmax.f32 %v3527_v39, 0.0 }
 0x641   :  { %v3522_v51 = vadd.f32 %v8834_v0, %v3521_v50  ;;  %v3737_v61 = vmax.f32 %v3519_v43, 0.0 }
 0x642   :  { %v3740_v57 = vmax.f32 %v3530_v49, 0.0 }
 0x643   :  { %v3738_v62 = vmax.f32 %v3522_v51, 0.0 }
 0x644   :  { %v3796_v3 = vpack.c.bf16 %v3740_v57, %v3739_v56 }
 0x645   :  { %v3795_v4 = vpack.c.bf16 %v3738_v62, %v3737_v61  ;;  %v7119_v6 = vpop.f32.mrb[208].mxu1 }
 0x646   :  { %v3543_v63 = vadd.f32 %v7119_v6, %v8834_v0  ;;  %v3534_v7 = vpop.f32.mrb[209].mxu1 }
 0x647   :  { %v3535_v10 = vadd.f32 %v8834_v0, %v3534_v7  ;;  %v7120_v13 = vpop.f32.mrb[210].mxu1  ;;  %7193 = vmatprep.mubr.bf16.mxu0 %v3795_v4 }
 0x648   :  { %v3546_v14 = vadd.f32 %v7120_v13, %v8834_v0  ;;  %v3537_v15 = vpop.f32.mrb[211].mxu1  ;;  %7194 = vmatmul.mubr.bf16.gmra.mrb[204].mxu0 %v3796_v3  ;;  %v3743_v21 = vmax.f32 %v3543_v63, 0.0 }
 0x649   :  { %v3538_v20 = vadd.f32 %v8834_v0, %v3537_v15  ;;  %v3741_v23 = vmax.f32 %v3535_v10, 0.0 }
 0x64a   :  { %v3744_v22 = vmax.f32 %v3546_v14, 0.0 }
 0x64b   :  { %v3742_v26 = vmax.f32 %v3538_v20, 0.0 }
 0x64c   :  { %v3798_v29 = vpack.c.bf16 %v3744_v22, %v3743_v21 }
 0x64d   :  { %v3797_v30 = vpack.c.bf16 %v3742_v26, %v3741_v23  ;;  %v7123_v31 = vpop.f32.mrb[212].mxu1 }
 0x64e   :  { %v3559_v32 = vadd.f32 %v7123_v31, %v8834_v0  ;;  %v3550_v34 = vpop.f32.mrb[213].mxu1 }
 0x64f   :  { %v3551_v38 = vadd.f32 %v8834_v0, %v3550_v34  ;;  %v7124_v39 = vpop.f32.mrb[214].mxu1  ;;  %7197 = vmatprep.mubr.bf16.mxu0 %v3797_v30 }
 0x650   :  { %v3562_v40 = vadd.f32 %v7124_v39, %v8834_v0  ;;  %v3553_v43 = vpop.f32.mrb[215].mxu1  ;;  %7198 = vmatmul.mubr.bf16.gmra.mrb[208].mxu0 %v3798_v29  ;;  %v3747_v49 = vmax.f32 %v3559_v32, 0.0 }
 0x651   :  { %v3554_v46 = vadd.f32 %v8834_v0, %v3553_v43  ;;  %v3745_v51 = vmax.f32 %v3551_v38, 0.0 }
 0x652   :  { %v3748_v50 = vmax.f32 %v3562_v40, 0.0 }
 0x653   :  { %v3746_v56 = vmax.f32 %v3554_v46, 0.0 }
 0x654   :  { %v3800_v57 = vpack.c.bf16 %v3748_v50, %v3747_v49 }
 0x655   :  { %v3799_v61 = vpack.c.bf16 %v3746_v56, %v3745_v51  ;;  %v7127_v62 = vpop.f32.mrb[216].mxu1 }
 0x656   :  { %v3575_v3 = vadd.f32 %v7127_v62, %v8834_v0  ;;  %v3566_v4 = vpop.f32.mrb[217].mxu1 }
 0x657   :  { %v3567_v6 = vadd.f32 %v8834_v0, %v3566_v4  ;;  %v7128_v63 = vpop.f32.mrb[218].mxu1  ;;  %7201 = vmatprep.mubr.bf16.mxu0 %v3799_v61 }
 0x658   :  { %v3578_v7 = vadd.f32 %v7128_v63, %v8834_v0  ;;  %v3569_v10 = vpop.f32.mrb[219].mxu1  ;;  %7202 = vmatmul.mubr.bf16.gmra.mrb[212].mxu0 %v3800_v57  ;;  %v3751_v14 = vmax.f32 %v3575_v3, 0.0 }
 0x659   :  { %v3570_v13 = vadd.f32 %v8834_v0, %v3569_v10  ;;  %v3749_v20 = vmax.f32 %v3567_v6, 0.0 }
 0x65a   :  { %v3752_v15 = vmax.f32 %v3578_v7, 0.0 }
 0x65b   :  { %v3750_v21 = vmax.f32 %v3570_v13, 0.0 }
 0x65c   :  { %v3802_v22 = vpack.c.bf16 %v3752_v15, %v3751_v14 }
 0x65d   :  { %v3801_v23 = vpack.c.bf16 %v3750_v21, %v3749_v20  ;;  %v7131_v26 = vpop.f32.mrb[220].mxu1 }
 0x65e   :  { %v3591_v29 = vadd.f32 %v7131_v26, %v8834_v0  ;;  %v3582_v30 = vpop.f32.mrb[221].mxu1 }
 0x65f   :  { %v3583_v31 = vadd.f32 %v8834_v0, %v3582_v30  ;;  %v7132_v32 = vpop.f32.mrb[222].mxu1  ;;  %7205 = vmatprep.mubr.bf16.mxu0 %v3801_v23 }
 0x660   :  { %v3594_v34 = vadd.f32 %v7132_v32, %v8834_v0  ;;  %v3585_v38 = vpop.f32.mrb[223].mxu1  ;;  %7206 = vmatmul.mubr.bf16.gmra.mrb[216].mxu0 %v3802_v22  ;;  %v3755_v40 = vmax.f32 %v3591_v29, 0.0 }
 0x661   :  { %v3586_v39 = vadd.f32 %v8834_v0, %v3585_v38  ;;  %v3753_v46 = vmax.f32 %v3583_v31, 0.0 }
 0x662   :  { %v3756_v43 = vmax.f32 %v3594_v34, 0.0 }
 0x663   :  { %v3754_v49 = vmax.f32 %v3586_v39, 0.0 }
 0x664   :  { %v3804_v50 = vpack.c.bf16 %v3756_v43, %v3755_v40 }
 0x665   :  { %v3803_v51 = vpack.c.bf16 %v3754_v49, %v3753_v46  ;;  %v7135_v56 = vpop.f32.mrb[224].mxu1 }
 0x666   :  { %v3607_v57 = vadd.f32 %v7135_v56, %v8834_v0  ;;  %v3598_v61 = vpop.f32.mrb[225].mxu1 }
 0x667   :  { %v3599_v62 = vadd.f32 %v8834_v0, %v3598_v61  ;;  %v7136_v3 = vpop.f32.mrb[226].mxu1  ;;  %7209 = vmatprep.mubr.bf16.mxu0 %v3803_v51 }
 0x668   :  { %v3610_v4 = vadd.f32 %v7136_v3, %v8834_v0  ;;  %v3601_v6 = vpop.f32.mrb[227].mxu1  ;;  %7210 = vmatmul.mubr.bf16.gmra.mrb[220].mxu0 %v3804_v50  ;;  %v3759_v7 = vmax.f32 %v3607_v57, 0.0 }
 0x669   :  { %v3602_v63 = vadd.f32 %v8834_v0, %v3601_v6  ;;  %v3757_v13 = vmax.f32 %v3599_v62, 0.0 }
 0x66a   :  { %v3760_v10 = vmax.f32 %v3610_v4, 0.0 }
 0x66b   :  { %v3758_v14 = vmax.f32 %v3602_v63, 0.0 }
 0x66c   :  { %v3806_v15 = vpack.c.bf16 %v3760_v10, %v3759_v7 }
 0x66d   :  { %v3805_v20 = vpack.c.bf16 %v3758_v14, %v3757_v13  ;;  %v7139_v21 = vpop.f32.mrb[228].mxu1 }
 0x66e   :  { %v3623_v22 = vadd.f32 %v7139_v21, %v8834_v0  ;;  %v3614_v23 = vpop.f32.mrb[229].mxu1 }
 0x66f   :  { %v3615_v26 = vadd.f32 %v8834_v0, %v3614_v23  ;;  %v7140_v29 = vpop.f32.mrb[230].mxu1  ;;  %7213 = vmatprep.mubr.bf16.mxu0 %v3805_v20 }
 0x670   :  { %v3626_v30 = vadd.f32 %v7140_v29, %v8834_v0  ;;  %v3617_v31 = vpop.f32.mrb[231].mxu1  ;;  %7214 = vmatmul.mubr.bf16.gmra.mrb[224].mxu0 %v3806_v15  ;;  %v3763_v34 = vmax.f32 %v3623_v22, 0.0 }
 0x671   :  { %v3618_v32 = vadd.f32 %v8834_v0, %v3617_v31  ;;  %v3761_v39 = vmax.f32 %v3615_v26, 0.0 }
 0x672   :  { %v3764_v38 = vmax.f32 %v3626_v30, 0.0 }
 0x673   :  { %v3762_v40 = vmax.f32 %v3618_v32, 0.0 }
 0x674   :  { %v3808_v43 = vpack.c.bf16 %v3764_v38, %v3763_v34 }
 0x675   :  { %v3807_v46 = vpack.c.bf16 %v3762_v40, %v3761_v39  ;;  %v7143_v49 = vpop.f32.mrb[232].mxu1 }
 0x676   :  { %v3639_v50 = vadd.f32 %v7143_v49, %v8834_v0  ;;  %v3630_v51 = vpop.f32.mrb[233].mxu1 }
 0x677   :  { %v3631_v56 = vadd.f32 %v8834_v0, %v3630_v51  ;;  %v7144_v57 = vpop.f32.mrb[234].mxu1  ;;  %7217 = vmatprep.mubr.bf16.mxu0 %v3807_v46 }
 0x678   :  { %v3642_v61 = vadd.f32 %v7144_v57, %v8834_v0  ;;  %v3633_v62 = vpop.f32.mrb[235].mxu1  ;;  %7218 = vmatmul.mubr.bf16.gmra.mrb[228].mxu0 %v3808_v43  ;;  %v3767_v4 = vmax.f32 %v3639_v50, 0.0 }
 0x679   :  { %v3634_v3 = vadd.f32 %v8834_v0, %v3633_v62  ;;  %v3765_v63 = vmax.f32 %v3631_v56, 0.0 }
 0x67a   :  { %v3768_v6 = vmax.f32 %v3642_v61, 0.0 }
 0x67b   :  { %v3766_v7 = vmax.f32 %v3634_v3, 0.0 }
 0x67c   :  { %v3810_v10 = vpack.c.bf16 %v3768_v6, %v3767_v4 }
 0x67d   :  { %v3809_v13 = vpack.c.bf16 %v3766_v7, %v3765_v63  ;;  %v7147_v14 = vpop.f32.mrb[236].mxu1 }
 0x67e   :  { %v3655_v15 = vadd.f32 %v7147_v14, %v8834_v0  ;;  %v3646_v20 = vpop.f32.mrb[237].mxu1 }
 0x67f   :  { %v3647_v21 = vadd.f32 %v8834_v0, %v3646_v20  ;;  %v7148_v22 = vpop.f32.mrb[238].mxu1  ;;  %7221 = vmatprep.mubr.bf16.mxu0 %v3809_v13 }
 0x680   :  { %v3658_v23 = vadd.f32 %v7148_v22, %v8834_v0  ;;  %v3649_v26 = vpop.f32.mrb[239].mxu1  ;;  %7222 = vmatmul.mubr.bf16.gmra.mrb[232].mxu0 %v3810_v10  ;;  %v3771_v30 = vmax.f32 %v3655_v15, 0.0 }
 0x681   :  { %v3650_v29 = vadd.f32 %v8834_v0, %v3649_v26  ;;  %v3769_v32 = vmax.f32 %v3647_v21, 0.0 }
 0x682   :  { %v3772_v31 = vmax.f32 %v3658_v23, 0.0 }
 0x683   :  { %v3770_v34 = vmax.f32 %v3650_v29, 0.0  ;;  %v7694_v29 = vld [vmem:[%s9905_s21 + $0x8] sm:$0xff]  }
 0x684   :  { %v3812_v38 = vpack.c.bf16 %v3772_v31, %v3771_v30  ;;  %7327 = vmatprep.subr.bf16.mxu0 %v7694_v29 }
 0x685   :  { %v3811_v39 = vpack.c.bf16 %v3770_v34, %v3769_v32  ;;  %v7151_v40 = vpop.f32.mrb[240].mxu1  ;;  %7328 = vmatpush3.bf16.msra.mxu0 %v7694_v29 }
 0x686   :  { %v3671_v43 = vadd.f32 %v7151_v40, %v8834_v0  ;;  %v3662_v46 = vpop.f32.mrb[241].mxu1 }
 0x687   :  { %v3663_v49 = vadd.f32 %v8834_v0, %v3662_v46  ;;  %v7152_v50 = vpop.f32.mrb[242].mxu1  ;;  %7225 = vmatprep.mubr.bf16.mxu0 %v3811_v39 }
 0x688   :  { %v3674_v51 = vadd.f32 %v7152_v50, %v8834_v0  ;;  %v3665_v56 = vpop.f32.mrb[243].mxu1  ;;  %7226 = vmatmul.mubr.bf16.gmra.mrb[236].mxu0 %v3812_v38  ;;  %v3775_v61 = vmax.f32 %v3671_v43, 0.0 }
 0x689   :  { %v3666_v57 = vadd.f32 %v8834_v0, %v3665_v56  ;;  %v3773_v3 = vmax.f32 %v3663_v49, 0.0 }
 0x68a   :  { %v3776_v62 = vmax.f32 %v3674_v51, 0.0 }
 0x68b   :  { %v3774_v4 = vmax.f32 %v3666_v57, 0.0 }
 0x68c   :  { %v3814_v6 = vpack.c.bf16 %v3776_v62, %v3775_v61 }
 0x68d   :  { %v3813_v63 = vpack.c.bf16 %v3774_v4, %v3773_v3  ;;  %v7155_v7 = vpop.f32.mrb[244].mxu1 }
 0x68e   :  { %v3687_v10 = vadd.f32 %v7155_v7, %v8834_v0  ;;  %v3678_v13 = vpop.f32.mrb[245].mxu1 }
 0x68f   :  { %v3679_v14 = vadd.f32 %v8834_v0, %v3678_v13  ;;  %v7156_v15 = vpop.f32.mrb[246].mxu1  ;;  %7229 = vmatprep.mubr.bf16.mxu0 %v3813_v63 }
 0x690   :  { %v3690_v20 = vadd.f32 %v7156_v15, %v8834_v0  ;;  %v3681_v21 = vpop.f32.mrb[247].mxu1  ;;  %7230 = vmatmul.mubr.bf16.gmra.mrb[240].mxu0 %v3814_v6  ;;  %v3779_v23 = vmax.f32 %v3687_v10, 0.0 }
 0x691   :  { %v3682_v22 = vadd.f32 %v8834_v0, %v3681_v21  ;;  %v3777_v30 = vmax.f32 %v3679_v14, 0.0 }
 0x692   :  { %v3780_v26 = vmax.f32 %v3690_v20, 0.0 }
 0x693   :  { %v3778_v31 = vmax.f32 %v3682_v22, 0.0 }
 0x694   :  { %v3816_v32 = vpack.c.bf16 %v3780_v26, %v3779_v23 }
 0x695   :  { %v3815_v34 = vpack.c.bf16 %v3778_v31, %v3777_v30  ;;  %v7159_v38 = vpop.f32.mrb[248].mxu1  ;;  %v7695_v31 = vld [vmem:[%s9905_s21 + $0x10] sm:$0xff]  }
 0x696   :  { %v3703_v39 = vadd.f32 %v7159_v38, %v8834_v0  ;;  %v3694_v40 = vpop.f32.mrb[249].mxu1  ;;  %7329 = vmatprep.subr.bf16.mxu0 %v7695_v31 }
 0x697   :  { %v3695_v43 = vadd.f32 %v8834_v0, %v3694_v40  ;;  %v7160_v46 = vpop.f32.mrb[250].mxu1  ;;  %7233 = vmatprep.mubr.bf16.mxu0 %v3815_v34  ;;  %7330 = vmatpush3.bf16.msra.mxu0 %v7695_v31 }
 0x698   :  { %v3706_v49 = vadd.f32 %v7160_v46, %v8834_v0  ;;  %v3697_v50 = vpop.f32.mrb[251].mxu1  ;;  %7234 = vmatmul.mubr.bf16.gmra.mrb[244].mxu0 %v3816_v32  ;;  %v3783_v56 = vmax.f32 %v3703_v39, 0.0 }
 0x699   :  { %v3698_v51 = vadd.f32 %v8834_v0, %v3697_v50  ;;  %v3781_v61 = vmax.f32 %v3695_v43, 0.0  ;;  %v8987_v43 = vld [vmem:[%s9906_s20 + $0x20] sm:$0xff]  }
 0x69a   :  { %v3784_v57 = vmax.f32 %v3706_v49, 0.0 }
 0x69b   :  { %v3782_v62 = vmax.f32 %v3698_v51, 0.0 }
 0x69c   :  { %v3818_v3 = vpack.c.bf16 %v3784_v57, %v3783_v56 }
 0x69d   :  { %v3817_v4 = vpack.c.bf16 %v3782_v62, %v3781_v61  ;;  %v7163_v6 = vpop.f32.mrb[252].mxu1  ;;  %v8997_v61 = vld [vmem:[%s9906_s20 + $0x28] sm:$0xff]  }
 0x69e   :  { %v3719_v63 = vadd.f32 %v7163_v6, %v8834_v0  ;;  %v3710_v7 = vpop.f32.mrb[253].mxu1 }
 0x69f   :  { %v3711_v10 = vadd.f32 %v8834_v0, %v3710_v7  ;;  %v7164_v13 = vpop.f32.mrb[254].mxu1  ;;  %7237 = vmatprep.mubr.bf16.mxu0 %v3817_v4 }
 0x6a0   :  { %v3722_v14 = vadd.f32 %v7164_v13, %v8834_v0  ;;  %v3713_v15 = vpop.f32.mrb[255].mxu1  ;;  %7238 = vmatmul.mubr.bf16.gmra.mrb[248].mxu0 %v3818_v3  ;;  %v3787_v21 = vmax.f32 %v3719_v63, 0.0 }
 0x6a1   :  { %v3714_v20 = vadd.f32 %v8834_v0, %v3713_v15  ;;  %v3785_v23 = vmax.f32 %v3711_v10, 0.0  ;;  %v7696_v0 = vld [vmem:[%s9905_s21 + $0x18] sm:$0xff]   ;;  %v9009_v10 = vld [vmem:[%s9906_s20 + $0x30] sm:$0xff]  }
 0x6a2   :  { %v3788_v22 = vmax.f32 %v3722_v14, 0.0  ;;  %7331 = vmatprep.subr.bf16.mxu0 %v7696_v0 }
 0x6a3   :  { %v3786_v26 = vmax.f32 %v3714_v20, 0.0  ;;  %7332 = vmatpush3.bf16.msra.mxu0 %v7696_v0 }
 0x6a4   :  { %v3820_v29 = vpack.c.bf16 %v3788_v22, %v3787_v21 }
 0x6a5   :  { %v3819_v30 = vpack.c.bf16 %v3786_v26, %v3785_v23  ;;  %v7704_v23 = vld [vmem:[%s9906_s20 + $0x38] sm:$0xff]  }
 0x6a7   :  { %7241 = vmatprep.mubr.bf16.mxu0 %v3819_v30 }
 0x6a8   :  { %7242 = vmatmul.mubr.bf16.gmra.mrb[252].mxu0 %v3820_v29 }
 0x6a9   :  { %7333 = vmatprep.mubr.msk.bf16.mxu0 %vm218_vm0, %v7850_v5  ;;  %v7697_v5 = vld [vmem:[%s9906_s20] sm:$0xff]  }
 0x6aa   :  { %7397 = vmatprep.subr.bf16.mxu0 %v7697_v5  ;;  %7477 = vmatprep.subr.bf16.mxu1 %v7697_v5 }
 0x6b0   :  { %7334 = vmatmul.mubr.msk.bf16.vlgmr.msra.gmra.mrb[0].mxu0 %vm218_vm0, %v7869_v11  ;;  %v8960_v11 = vld [vmem:[%s9907_s17] ss:$0 sm:$0xff] }
 0x6b1   :  { %7337 = vmatprep.mubr.msk.bf16.mxu0 %vm218_vm0, %v7871_v12  ;;  %7398 = vmatpush3.bf16.msra.mxu0 %v7697_v5  ;;  %v7698_v12 = vld [vmem:[%s9906_s20 + $0x8] sm:$0xff]  }
 0x6b2   :  { %7399 = vmatprep.subr.bf16.mxu0 %v7698_v12 }
 0x6b5   :  { %7400 = vmatpush3.bf16.msra.mxu0 %v7698_v12 }
 0x6b8   :  { %7338 = vmatmul.mubr.msk.bf16.gmra.mrb[4].mxu0 %vm218_vm0, %v7889_v17 }
 0x6b9   :  { %7341 = vmatprep.mubr.msk.bf16.mxu0 %vm218_vm0, %v7891_v18 }
 0x6c0   :  { %7342 = vmatmul.mubr.msk.bf16.gmra.mrb[8].mxu0 %vm218_vm0, %v7915_v25 }
 0x6c1   :  { %7345 = vmatprep.mubr.msk.bf16.mxu0 %vm218_vm0, %v7920_v27 }
 0x6c8   :  { %7346 = vmatmul.mubr.msk.bf16.gmra.mrb[12].mxu0 %vm218_vm0, %v7941_v33 }
 0x6c9   :  { %7349 = vmatprep.mubr.msk.bf16.mxu0 %vm218_vm0, %v7946_v35 }
 0x6d0   :  { %7350 = vmatmul.mubr.msk.bf16.gmra.mrb[16].mxu0 %vm218_vm0, %v7967_v41 }
 0x6d1   :  { %7353 = vmatprep.mubr.msk.bf16.mxu0 %vm218_vm0, %v7969_v42  ;;  %v7699_v42 = vld [vmem:[%s9906_s20 + $0x10] sm:$0xff]  }
 0x6d2   :  { %7401 = vmatprep.subr.bf16.mxu0 %v7699_v42 }
 0x6d3   :  { %7402 = vmatpush3.bf16.msra.mxu0 %v7699_v42 }
 0x6d8   :  { %7354 = vmatmul.mubr.msk.bf16.gmra.mrb[20].mxu0 %vm218_vm0, %v7987_v47  ;;  %v8976_v47 = vld [vmem:[%s9906_s20 + $0x18] sm:$0xff]  }
 0x6d9   :  { %7357 = vmatprep.mubr.msk.bf16.mxu0 %vm218_vm0, %v7989_v48  ;;  %7403 = vmatprep.subr.bf16.mxu0 %v8976_v47 }
 0x6da   :  { %7404 = vmatpush3.bf16.msra.mxu0 %v8976_v47 }
 0x6db   :  { %7405 = vmatprep.subr.bf16.mxu0 %v8987_v43 }
 0x6de   :  { %7406 = vmatpush3.bf16.msra.mxu0 %v8987_v43 }
 0x6df   :  { %7407 = vmatprep.subr.bf16.mxu0 %v8997_v61 }
 0x6e0   :  { %7358 = vmatmul.mubr.msk.bf16.gmra.mrb[24].mxu0 %vm218_vm0, %v8007_v53 }
 0x6e1   :  { %7361 = vmatprep.mubr.msk.bf16.mxu0 %vm218_vm0, %v8009_v54 }
 0x6e2   :  { %7408 = vmatpush3.bf16.msra.mxu0 %v8997_v61 }
 0x6e3   :  { %7409 = vmatprep.subr.bf16.mxu0 %v9009_v10 }
 0x6e6   :  { %7410 = vmatpush3.bf16.msra.mxu0 %v9009_v10 }
 0x6e7   :  { %7411 = vmatprep.subr.bf16.mxu0 %v7704_v23 }
 0x6e8   :  { %7362 = vmatmul.mubr.msk.bf16.gmra.mrb[28].mxu0 %vm218_vm0, %v8027_v59 }
 0x6e9   :  { %7365 = vmatprep.mubr.msk.bf16.mxu0 %vm218_vm0, %v8029_v60 }
 0x6ea   :  { %7412 = vmatpush3.bf16.msra.mxu0 %v7704_v23 }
 0x6f0   :  { %7366 = vmatmul.mubr.msk.bf16.gmra.mrb[32].mxu0 %vm218_vm0, %v8047_v1 }
 0x6f1   :  { %7369 = vmatprep.mubr.msk.bf16.mxu0 %vm218_vm0, %v8049_v2 }
 0x6f8   :  { %7370 = vmatmul.mubr.msk.bf16.gmra.mrb[36].mxu0 %vm218_vm0, %v8067_v8 }
 0x6f9   :  { %7373 = vmatprep.mubr.msk.bf16.mxu0 %vm218_vm0, %v8069_v9 }
 0x700   :  { %7374 = vmatmul.mubr.msk.bf16.gmra.mrb[40].mxu0 %vm218_vm0, %v8087_v16 }
 0x701   :  { %7377 = vmatprep.mubr.msk.bf16.mxu0 %vm218_vm0, %v8089_v19 }
 0x703   :  { %v7183_v17 = vpop.f32.mrb[192].mxu0 }
 0x704   :  { %v3935_v18 = vadd.f32 %v7183_v17, %v8960_v11  ;;  %v3926_v25 = vpop.f32.mrb[193].mxu0 }
 0x705   :  { %v3927_v27 = vadd.f32 %v8960_v11, %v3926_v25  ;;  %v7184_v33 = vpop.f32.mrb[194].mxu0 }
 0x706   :  { %v3938_v35 = vadd.f32 %v7184_v33, %v8960_v11  ;;  %v3929_v41 = vpop.f32.mrb[195].mxu0  ;;  %v4183_v32 = vmax.f32 %v3935_v18, 0.0 }
 0x707   :  { %v3930_v48 = vadd.f32 %v8960_v11, %v3929_v41  ;;  %v4181_v38 = vmax.f32 %v3927_v27, 0.0 }
 0x708   :  { %v4184_v34 = vmax.f32 %v3938_v35, 0.0  ;;  %7378 = vmatmul.mubr.msk.bf16.gmra.mrb[44].mxu0 %vm218_vm0, %v8107_v24 }
 0x709   :  { %v4182_v39 = vmax.f32 %v3930_v48, 0.0  ;;  %7381 = vmatprep.mubr.msk.bf16.mxu0 %vm218_vm0, %v8112_v28 }
 0x70a   :  { %v4246_v40 = vpack.c.bf16 %v4184_v34, %v4183_v32 }
 0x70b   :  { %v4245_v46 = vpack.c.bf16 %v4182_v39, %v4181_v38  ;;  %v7187_v49 = vpop.f32.mrb[196].mxu0 }
 0x70c   :  { %v3951_v50 = vadd.f32 %v7187_v49, %v8960_v11  ;;  %v3942_v51 = vpop.f32.mrb[197].mxu0 }
 0x70d   :  { %v3943_v53 = vadd.f32 %v8960_v11, %v3942_v51  ;;  %v7188_v56 = vpop.f32.mrb[198].mxu0  ;;  %7261 = vmatprep.mubr.bf16.mxu1 %v4245_v46 }
 0x70e   :  { %v3954_v54 = vadd.f32 %v7188_v56, %v8960_v11  ;;  %v3945_v57 = vpop.f32.mrb[199].mxu0  ;;  %7262 = vmatmul.mubr.bf16.vlgmr.msra.gmra.mrb[0].mxu1 %v4246_v40  ;;  %v4187_v3 = vmax.f32 %v3951_v50, 0.0 }
 0x70f   :  { %v3946_v62 = vadd.f32 %v8960_v11, %v3945_v57  ;;  %7485 = vmatpush3.bf16.msra.mxu1 %v7697_v5  ;;  %v4185_v6 = vmax.f32 %v3943_v53, 0.0 }
 0x710   :  { %v4188_v4 = vmax.f32 %v3954_v54, 0.0  ;;  %7478 = vmatprep.subr.bf16.mxu1 %v7698_v12  ;;  %7382 = vmatmul.mubr.msk.bf16.gmra.mrb[48].mxu0 %vm218_vm0, %v8133_v36 }
 0x711   :  { %v4186_v63 = vmax.f32 %v3946_v62, 0.0  ;;  %7385 = vmatprep.mubr.msk.bf16.mxu0 %vm218_vm0, %v8135_v37 }
 0x712   :  { %v4248_v7 = vpack.c.bf16 %v4188_v4, %v4187_v3 }
 0x713   :  { %v4247_v13 = vpack.c.bf16 %v4186_v63, %v4185_v6  ;;  %v7191_v14 = vpop.f32.mrb[200].mxu0  ;;  %7486 = vmatpush3.bf16.msra.mxu1 %v7698_v12 }
 0x714   :  { %v3967_v59 = vadd.f32 %v7191_v14, %v8960_v11  ;;  %v3958_v15 = vpop.f32.mrb[201].mxu0  ;;  %7479 = vmatprep.subr.bf16.mxu1 %v7699_v42 }
 0x715   :  { %v3959_v20 = vadd.f32 %v8960_v11, %v3958_v15  ;;  %v7192_v60 = vpop.f32.mrb[202].mxu0  ;;  %7265 = vmatprep.mubr.bf16.mxu1 %v4247_v13 }
 0x716   :  { %v3970_v21 = vadd.f32 %v7192_v60, %v8960_v11  ;;  %v3961_v22 = vpop.f32.mrb[203].mxu0  ;;  %7266 = vmatmul.mubr.bf16.gmra.mrb[4].mxu1 %v4248_v7  ;;  %v4191_v29 = vmax.f32 %v3967_v59, 0.0 }
 0x717   :  { %v3962_v26 = vadd.f32 %v8960_v11, %v3961_v22  ;;  %7487 = vmatpush3.bf16.msra.mxu1 %v7699_v42  ;;  %v4189_v31 = vmax.f32 %v3959_v20, 0.0 }
 0x718   :  { %v4192_v30 = vmax.f32 %v3970_v21, 0.0  ;;  %7480 = vmatprep.subr.bf16.mxu1 %v8976_v47  ;;  %7386 = vmatmul.mubr.msk.bf16.gmra.mrb[52].mxu0 %vm218_vm0, %v8153_v44 }
 0x719   :  { %v4190_v0 = vmax.f32 %v3962_v26, 0.0  ;;  %7389 = vmatprep.mubr.msk.bf16.mxu0 %vm218_vm0, %v8155_v45 }
 0x71a   :  { %v4250_v5 = vpack.c.bf16 %v4192_v30, %v4191_v29 }
 0x71b   :  { %v4249_v12 = vpack.c.bf16 %v4190_v0, %v4189_v31  ;;  %v7195_v17 = vpop.f32.mrb[204].mxu0  ;;  %7488 = vmatpush3.bf16.msra.mxu1 %v8976_v47 }
 0x71c   :  { %v3983_v18 = vadd.f32 %v7195_v17, %v8960_v11  ;;  %v3974_v25 = vpop.f32.mrb[205].mxu0  ;;  %7481 = vmatprep.subr.bf16.mxu1 %v8987_v43 }
 0x71d   :  { %v3975_v1 = vadd.f32 %v8960_v11, %v3974_v25  ;;  %v7196_v27 = vpop.f32.mrb[206].mxu0  ;;  %7269 = vmatprep.mubr.bf16.mxu1 %v4249_v12 }
 0x71e   :  { %v3986_v2 = vadd.f32 %v7196_v27, %v8960_v11  ;;  %v3977_v33 = vpop.f32.mrb[207].mxu0  ;;  %7270 = vmatmul.mubr.bf16.gmra.mrb[8].mxu1 %v4250_v5  ;;  %v4195_v41 = vmax.f32 %v3983_v18, 0.0 }
 0x71f   :  { %v3978_v35 = vadd.f32 %v8960_v11, %v3977_v33  ;;  %7489 = vmatpush3.bf16.msra.mxu1 %v8987_v43  ;;  %v4193_v47 = vmax.f32 %v3975_v1, 0.0 }
 0x720   :  { %v4196_v42 = vmax.f32 %v3986_v2, 0.0  ;;  %7482 = vmatprep.subr.bf16.mxu1 %v8997_v61  ;;  %7390 = vmatmul.mubr.msk.bf16.gmra.mrb[56].mxu0 %vm218_vm0, %v8173_v52 }
 0x721   :  { %v4194_v48 = vmax.f32 %v3978_v35, 0.0  ;;  %7393 = vmatprep.mubr.msk.bf16.mxu0 %vm218_vm0, %v8175_v55 }
 0x722   :  { %v4252_v32 = vpack.c.bf16 %v4196_v42, %v4195_v41 }
 0x723   :  { %v4251_v34 = vpack.c.bf16 %v4194_v48, %v4193_v47  ;;  %v7199_v38 = vpop.f32.mrb[208].mxu0  ;;  %7490 = vmatpush3.bf16.msra.mxu1 %v8997_v61 }
 0x724   :  { %v3999_v39 = vadd.f32 %v7199_v38, %v8960_v11  ;;  %v3990_v40 = vpop.f32.mrb[209].mxu0  ;;  %7483 = vmatprep.subr.bf16.mxu1 %v9009_v10 }
 0x725   :  { %v3991_v43 = vadd.f32 %v8960_v11, %v3990_v40  ;;  %v7200_v8 = vpop.f32.mrb[210].mxu0  ;;  %7273 = vmatprep.mubr.bf16.mxu1 %v4251_v34 }
 0x726   :  { %v4002_v46 = vadd.f32 %v7200_v8, %v8960_v11  ;;  %v3993_v49 = vpop.f32.mrb[211].mxu0  ;;  %7274 = vmatmul.mubr.bf16.gmra.mrb[12].mxu1 %v4252_v32  ;;  %v4199_v50 = vmax.f32 %v3999_v39, 0.0 }
 0x727   :  { %v3994_v9 = vadd.f32 %v8960_v11, %v3993_v49  ;;  %7491 = vmatpush3.bf16.msra.mxu1 %v9009_v10  ;;  %v4197_v53 = vmax.f32 %v3991_v43, 0.0 }
 0x728   :  { %v4200_v51 = vmax.f32 %v4002_v46, 0.0  ;;  %7484 = vmatprep.subr.bf16.mxu1 %v7704_v23  ;;  %7394 = vmatmul.mubr.msk.bf16.gmra.mrb[60].mxu0 %vm218_vm0, %v8187_v58 }
 0x729   :  { %v4198_v56 = vmax.f32 %v3994_v9, 0.0 }
 0x72a   :  { %v4254_v54 = vpack.c.bf16 %v4200_v51, %v4199_v50 }
 0x72b   :  { %v4253_v57 = vpack.c.bf16 %v4198_v56, %v4197_v53  ;;  %v7203_v61 = vpop.f32.mrb[212].mxu0  ;;  %7492 = vmatpush3.bf16.msra.mxu1 %v7704_v23 }
 0x72c   :  { %v4015_v62 = vadd.f32 %v7203_v61, %v8960_v11  ;;  %v4006_v3 = vpop.f32.mrb[213].mxu0 }
 0x72d   :  { %v4007_v4 = vadd.f32 %v8960_v11, %v4006_v3  ;;  %v7204_v6 = vpop.f32.mrb[214].mxu0  ;;  %7277 = vmatprep.mubr.bf16.mxu1 %v4253_v57 }
 0x72e   :  { %v4018_v63 = vadd.f32 %v7204_v6, %v8960_v11  ;;  %v4009_v16 = vpop.f32.mrb[215].mxu0  ;;  %7278 = vmatmul.mubr.bf16.gmra.mrb[16].mxu1 %v4254_v54  ;;  %v4203_v10 = vmax.f32 %v4015_v62, 0.0 }
 0x72f   :  { %v4010_v7 = vadd.f32 %v8960_v11, %v4009_v16  ;;  %v4201_v19 = vmax.f32 %v4007_v4, 0.0 }
 0x730   :  { %v4204_v13 = vmax.f32 %v4018_v63, 0.0 }
 0x731   :  { %v4202_v14 = vmax.f32 %v4010_v7, 0.0 }
 0x732   :  { %v4256_v59 = vpack.c.bf16 %v4204_v13, %v4203_v10 }
 0x733   :  { %v4255_v15 = vpack.c.bf16 %v4202_v14, %v4201_v19  ;;  %v7207_v20 = vpop.f32.mrb[216].mxu0 }
 0x734   :  { %v4031_v60 = vadd.f32 %v7207_v20, %v8960_v11  ;;  %v4022_v21 = vpop.f32.mrb[217].mxu0 }
 0x735   :  { %v4023_v22 = vadd.f32 %v8960_v11, %v4022_v21  ;;  %v7208_v23 = vpop.f32.mrb[218].mxu0  ;;  %7281 = vmatprep.mubr.bf16.mxu1 %v4255_v15 }
 0x736   :  { %v4034_v26 = vadd.f32 %v7208_v23, %v8960_v11  ;;  %v4025_v29 = vpop.f32.mrb[219].mxu0  ;;  %7282 = vmatmul.mubr.bf16.gmra.mrb[20].mxu1 %v4256_v59  ;;  %v4207_v30 = vmax.f32 %v4031_v60, 0.0 }
 0x737   :  { %v4026_v24 = vadd.f32 %v8960_v11, %v4025_v29  ;;  %v4205_v28 = vmax.f32 %v4023_v22, 0.0 }
 0x738   :  { %v4208_v31 = vmax.f32 %v4034_v26, 0.0 }
 0x739   :  { %v4206_v0 = vmax.f32 %v4026_v24, 0.0 }
 0x73a   :  { %v4258_v5 = vpack.c.bf16 %v4208_v31, %v4207_v30 }
 0x73b   :  { %v4257_v12 = vpack.c.bf16 %v4206_v0, %v4205_v28  ;;  %v7211_v17 = vpop.f32.mrb[220].mxu0 }
 0x73c   :  { %v4047_v18 = vadd.f32 %v7211_v17, %v8960_v11  ;;  %v4038_v25 = vpop.f32.mrb[221].mxu0 }
 0x73d   :  { %v4039_v1 = vadd.f32 %v8960_v11, %v4038_v25  ;;  %v7212_v27 = vpop.f32.mrb[222].mxu0  ;;  %7285 = vmatprep.mubr.bf16.mxu1 %v4257_v12 }
 0x73e   :  { %v4050_v2 = vadd.f32 %v7212_v27, %v8960_v11  ;;  %v4041_v33 = vpop.f32.mrb[223].mxu0  ;;  %7286 = vmatmul.mubr.bf16.gmra.mrb[24].mxu1 %v4258_v5  ;;  %v4211_v35 = vmax.f32 %v4047_v18, 0.0 }
 0x73f   :  { %v4042_v36 = vadd.f32 %v8960_v11, %v4041_v33  ;;  %v4209_v37 = vmax.f32 %v4039_v1, 0.0 }
 0x740   :  { %v4212_v41 = vmax.f32 %v4050_v2, 0.0 }
 0x741   :  { %v4210_v42 = vmax.f32 %v4042_v36, 0.0 }
 0x742   :  { %v4260_v47 = vpack.c.bf16 %v4212_v41, %v4211_v35 }
 0x743   :  { %v4259_v48 = vpack.c.bf16 %v4210_v42, %v4209_v37  ;;  %v7215_v32 = vpop.f32.mrb[224].mxu0 }
 0x744   :  { %v4063_v34 = vadd.f32 %v7215_v32, %v8960_v11  ;;  %v4054_v38 = vpop.f32.mrb[225].mxu0 }
 0x745   :  { %v4055_v39 = vadd.f32 %v8960_v11, %v4054_v38  ;;  %v7216_v40 = vpop.f32.mrb[226].mxu0  ;;  %7289 = vmatprep.mubr.bf16.mxu1 %v4259_v48 }
 0x746   :  { %v4066_v43 = vadd.f32 %v7216_v40, %v8960_v11  ;;  %v4057_v8 = vpop.f32.mrb[227].mxu0  ;;  %7290 = vmatmul.mubr.bf16.gmra.mrb[28].mxu1 %v4260_v47  ;;  %v4215_v46 = vmax.f32 %v4063_v34, 0.0 }
 0x747   :  { %v4058_v44 = vadd.f32 %v8960_v11, %v4057_v8  ;;  %v4213_v45 = vmax.f32 %v4055_v39, 0.0 }
 0x748   :  { %v4216_v49 = vmax.f32 %v4066_v43, 0.0 }
 0x749   :  { %v4214_v9 = vmax.f32 %v4058_v44, 0.0 }
 0x74a   :  { %v4262_v50 = vpack.c.bf16 %v4216_v49, %v4215_v46 }
 0x74b   :  { %v4261_v51 = vpack.c.bf16 %v4214_v9, %v4213_v45  ;;  %v7219_v53 = vpop.f32.mrb[228].mxu0 }
 0x74c   :  { %v4079_v56 = vadd.f32 %v7219_v53, %v8960_v11  ;;  %v4070_v54 = vpop.f32.mrb[229].mxu0 }
 0x74d   :  { %v4071_v57 = vadd.f32 %v8960_v11, %v4070_v54  ;;  %v7220_v61 = vpop.f32.mrb[230].mxu0  ;;  %7293 = vmatprep.mubr.bf16.mxu1 %v4261_v51 }
 0x74e   :  { %v4082_v62 = vadd.f32 %v7220_v61, %v8960_v11  ;;  %v4073_v3 = vpop.f32.mrb[231].mxu0  ;;  %7294 = vmatmul.mubr.bf16.gmra.mrb[32].mxu1 %v4262_v50  ;;  %v4219_v4 = vmax.f32 %v4079_v56, 0.0 }
 0x74f   :  { %v4074_v52 = vadd.f32 %v8960_v11, %v4073_v3  ;;  %v4217_v55 = vmax.f32 %v4071_v57, 0.0 }
 0x750   :  { %v4220_v6 = vmax.f32 %v4082_v62, 0.0 }
 0x751   :  { %v4218_v63 = vmax.f32 %v4074_v52, 0.0 }
 0x752   :  { %v4264_v16 = vpack.c.bf16 %v4220_v6, %v4219_v4 }
 0x753   :  { %v4263_v7 = vpack.c.bf16 %v4218_v63, %v4217_v55  ;;  %v7223_v10 = vpop.f32.mrb[232].mxu0 }
 0x754   :  { %v4095_v13 = vadd.f32 %v7223_v10, %v8960_v11  ;;  %v4086_v19 = vpop.f32.mrb[233].mxu0 }
 0x755   :  { %v4087_v14 = vadd.f32 %v8960_v11, %v4086_v19  ;;  %v7224_v59 = vpop.f32.mrb[234].mxu0  ;;  %7297 = vmatprep.mubr.bf16.mxu1 %v4263_v7 }
 0x756   :  { %v4098_v15 = vadd.f32 %v7224_v59, %v8960_v11  ;;  %v4089_v20 = vpop.f32.mrb[235].mxu0  ;;  %7298 = vmatmul.mubr.bf16.gmra.mrb[36].mxu1 %v4264_v16  ;;  %v4223_v21 = vmax.f32 %v4095_v13, 0.0 }
 0x757   :  { %v4090_v60 = vadd.f32 %v8960_v11, %v4089_v20  ;;  %v4221_v22 = vmax.f32 %v4087_v14, 0.0 }
 0x758   :  { %v4224_v58 = vmax.f32 %v4098_v15, 0.0 }
 0x759   :  { %v4222_v23 = vmax.f32 %v4090_v60, 0.0 }
 0x75a   :  { %v4266_v26 = vpack.c.bf16 %v4224_v58, %v4223_v21 }
 0x75b   :  { %v4265_v29 = vpack.c.bf16 %v4222_v23, %v4221_v22  ;;  %v7227_v24 = vpop.f32.mrb[236].mxu0 }
 0x75c   :  { %v4111_v30 = vadd.f32 %v7227_v24, %v8960_v11  ;;  %v4102_v31 = vpop.f32.mrb[237].mxu0 }
 0x75d   :  { %v4103_v28 = vadd.f32 %v8960_v11, %v4102_v31  ;;  %v7228_v0 = vpop.f32.mrb[238].mxu0  ;;  %7301 = vmatprep.mubr.bf16.mxu1 %v4265_v29 }
 0x75e   :  { %v4114_v5 = vadd.f32 %v7228_v0, %v8960_v11  ;;  %v4105_v12 = vpop.f32.mrb[239].mxu0  ;;  %7302 = vmatmul.mubr.bf16.gmra.mrb[40].mxu1 %v4266_v26  ;;  %v4227_v18 = vmax.f32 %v4111_v30, 0.0 }
 0x75f   :  { %v4106_v17 = vadd.f32 %v8960_v11, %v4105_v12  ;;  %v4225_v1 = vmax.f32 %v4103_v28, 0.0 }
 0x760   :  { %v4228_v25 = vmax.f32 %v4114_v5, 0.0 }
 0x761   :  { %v4226_v27 = vmax.f32 %v4106_v17, 0.0 }
 0x762   :  { %v4268_v2 = vpack.c.bf16 %v4228_v25, %v4227_v18 }
 0x763   :  { %v4267_v33 = vpack.c.bf16 %v4226_v27, %v4225_v1  ;;  %v7231_v36 = vpop.f32.mrb[240].mxu0 }
 0x764   :  { %v4127_v35 = vadd.f32 %v7231_v36, %v8960_v11  ;;  %v4118_v41 = vpop.f32.mrb[241].mxu0 }
 0x765   :  { %v4119_v37 = vadd.f32 %v8960_v11, %v4118_v41  ;;  %v7232_v42 = vpop.f32.mrb[242].mxu0  ;;  %7305 = vmatprep.mubr.bf16.mxu1 %v4267_v33 }
 0x766   :  { %v4130_v47 = vadd.f32 %v7232_v42, %v8960_v11  ;;  %v4121_v48 = vpop.f32.mrb[243].mxu0  ;;  %7306 = vmatmul.mubr.bf16.gmra.mrb[44].mxu1 %v4268_v2  ;;  %v4231_v34 = vmax.f32 %v4127_v35, 0.0 }
 0x767   :  { %v4122_v32 = vadd.f32 %v8960_v11, %v4121_v48  ;;  %v4229_v39 = vmax.f32 %v4119_v37, 0.0 }
 0x768   :  { %v4232_v38 = vmax.f32 %v4130_v47, 0.0 }
 0x769   :  { %v4230_v40 = vmax.f32 %v4122_v32, 0.0 }
 0x76a   :  { %v4270_v43 = vpack.c.bf16 %v4232_v38, %v4231_v34  ;;  %v9144_v34 = vld [vmem:[%s9908_s19] ss:$0 sm:$0xff] }
 0x76b   :  { %v4269_v8 = vpack.c.bf16 %v4230_v40, %v4229_v39  ;;  %v7235_v44 = vpop.f32.mrb[244].mxu0 }
 0x76c   :  { %v4143_v46 = vadd.f32 %v7235_v44, %v8960_v11  ;;  %v4134_v49 = vpop.f32.mrb[245].mxu0 }
 0x76d   :  { %v4135_v45 = vadd.f32 %v8960_v11, %v4134_v49  ;;  %v7236_v9 = vpop.f32.mrb[246].mxu0  ;;  %7309 = vmatprep.mubr.bf16.mxu1 %v4269_v8 }
 0x76e   :  { %v4146_v50 = vadd.f32 %v7236_v9, %v8960_v11  ;;  %v4137_v51 = vpop.f32.mrb[247].mxu0  ;;  %7310 = vmatmul.mubr.bf16.gmra.mrb[48].mxu1 %v4270_v43  ;;  %v4235_v56 = vmax.f32 %v4143_v46, 0.0 }
 0x76f   :  { %v4138_v53 = vadd.f32 %v8960_v11, %v4137_v51  ;;  %v4233_v57 = vmax.f32 %v4135_v45, 0.0 }
 0x770   :  { %v4236_v54 = vmax.f32 %v4146_v50, 0.0 }
 0x771   :  { %v4234_v61 = vmax.f32 %v4138_v53, 0.0 }
 0x772   :  { %v4272_v62 = vpack.c.bf16 %v4236_v54, %v4235_v56 }
 0x773   :  { %v4271_v3 = vpack.c.bf16 %v4234_v61, %v4233_v57  ;;  %v7239_v52 = vpop.f32.mrb[248].mxu0 }
 0x774   :  { %v4159_v4 = vadd.f32 %v7239_v52, %v8960_v11  ;;  %v4150_v6 = vpop.f32.mrb[249].mxu0 }
 0x775   :  { %v4151_v55 = vadd.f32 %v8960_v11, %v4150_v6  ;;  %v7240_v63 = vpop.f32.mrb[250].mxu0  ;;  %7313 = vmatprep.mubr.bf16.mxu1 %v4271_v3 }
 0x776   :  { %v4162_v16 = vadd.f32 %v7240_v63, %v8960_v11  ;;  %v4153_v7 = vpop.f32.mrb[251].mxu0  ;;  %7314 = vmatmul.mubr.bf16.gmra.mrb[52].mxu1 %v4272_v62  ;;  %v4239_v13 = vmax.f32 %v4159_v4, 0.0 }
 0x777   :  { %v4154_v10 = vadd.f32 %v8960_v11, %v4153_v7  ;;  %v4237_v14 = vmax.f32 %v4151_v55, 0.0 }
 0x778   :  { %v4240_v19 = vmax.f32 %v4162_v16, 0.0 }
 0x779   :  { %v4238_v59 = vmax.f32 %v4154_v10, 0.0 }
 0x77a   :  { %v4274_v15 = vpack.c.bf16 %v4240_v19, %v4239_v13 }
 0x77b   :  { %v4273_v20 = vpack.c.bf16 %v4238_v59, %v4237_v14  ;;  %v7243_v60 = vpop.f32.mrb[252].mxu0 }
 0x77c   :  { %v4175_v21 = vadd.f32 %v7243_v60, %v8960_v11  ;;  %v4166_v58 = vpop.f32.mrb[253].mxu0 }
 0x77d   :  { %v4167_v22 = vadd.f32 %v8960_v11, %v4166_v58  ;;  %v7244_v23 = vpop.f32.mrb[254].mxu0  ;;  %7317 = vmatprep.mubr.bf16.mxu1 %v4273_v20 }
 0x77e   :  { %v4178_v26 = vadd.f32 %v7244_v23, %v8960_v11  ;;  %v4169_v29 = vpop.f32.mrb[255].mxu0  ;;  %7318 = vmatmul.mubr.bf16.gmra.mrb[56].mxu1 %v4274_v15  ;;  %v4243_v30 = vmax.f32 %v4175_v21, 0.0 }
 0x77f   :  { %v4170_v24 = vadd.f32 %v8960_v11, %v4169_v29  ;;  %v4241_v28 = vmax.f32 %v4167_v22, 0.0 }
 0x780   :  { %v4244_v31 = vmax.f32 %v4178_v26, 0.0 }
 0x781   :  { %v4242_v0 = vmax.f32 %v4170_v24, 0.0 }
 0x782   :  { %v4276_v5 = vpack.c.bf16 %v4244_v31, %v4243_v30 }
 0x783   :  { %v4275_v12 = vpack.c.bf16 %v4242_v0, %v4241_v28 }
 0x785   :  { %7321 = vmatprep.mubr.bf16.mxu1 %v4275_v12 }
 0x786   :  { %7322 = vmatmul.mubr.bf16.gmra.mrb[60].mxu1 %v4276_v5 }
 0x78b   :  { %v9111_v17 = vpop.f32.mrb[4].mxu0 }
 0x78c   :  { %v9113_v18 = vpop.f32.mrb[5].mxu0 }
 0x78d   :  { %v9115_v25 = vpop.f32.mrb[6].mxu0 }
 0x78e   :  { %v9117_v1 = vpop.f32.mrb[7].mxu0 }
 0x793   :  { %v9119_v27 = vpop.f32.mrb[8].mxu0 }
 0x794   :  { %v9121_v2 = vpop.f32.mrb[9].mxu0 }
 0x795   :  { %v9123_v11 = vpop.f32.mrb[10].mxu0 }
 0x796   :  { %v9125_v33 = vpop.f32.mrb[11].mxu0 }
 0x79b   :  { %v9127_v36 = vpop.f32.mrb[12].mxu0 }
 0x79c   :  { %v9129_v35 = vpop.f32.mrb[13].mxu0 }
 0x79d   :  { %v9131_v41 = vpop.f32.mrb[14].mxu0 }
 0x79e   :  { %v9133_v37 = vpop.f32.mrb[15].mxu0 }
 0x7a3   :  { %v9135_v42 = vpop.f32.mrb[16].mxu0 }
 0x7a4   :  { %v9137_v47 = vpop.f32.mrb[17].mxu0 }
 0x7a5   :  { %v9139_v48 = vpop.f32.mrb[18].mxu0 }
 0x7a6   :  { %v9146_v38 = vpop.f32.mrb[19].mxu0 }
 0x7ab   :  { %v9148_v40 = vpop.f32.mrb[20].mxu0 }
 0x7ac   :  { %v9150_v8 = vpop.f32.mrb[21].mxu0 }
 0x7ad   :  { %v9154_v45 = vpop.f32.mrb[22].mxu0 }
 0x7ae   :  { %v9158_v51 = vpop.f32.mrb[23].mxu0 }
 0x7b3   :  { %v9160_v56 = vpop.f32.mrb[24].mxu0 }
 0x7b4   :  { %v9162_v57 = vpop.f32.mrb[25].mxu0 }
 0x7b5   :  { %v9164_v61 = vpop.f32.mrb[26].mxu0 }
 0x7b6   :  { %v9166_v3 = vpop.f32.mrb[27].mxu0 }
 0x7bb   :  { %v9168_v4 = vpop.f32.mrb[28].mxu0 }
 0x7bc   :  { %v9170_v55 = vpop.f32.mrb[29].mxu0 }
 0x7bd   :  { %v9174_v10 = vpop.f32.mrb[30].mxu0 }
 0x7be   :  { %v9178_v14 = vpop.f32.mrb[31].mxu0 }
 0x7c3   :  { %v9180_v15 = vpop.f32.mrb[32].mxu0 }
 0x7c4   :  { %v9182_v60 = vpop.f32.mrb[33].mxu0 }
 0x7c5   :  { %v9184_v21 = vpop.f32.mrb[34].mxu0 }
 0x7c6   :  { %v9186_v22 = vpop.f32.mrb[35].mxu0 }
 0x7cb   :  { %v9188_v29 = vpop.f32.mrb[36].mxu0 }
 0x7cc   :  { %v9192_v28 = vpop.f32.mrb[37].mxu0 }
 0x7cd   :  { %v9196_v12 = vpop.f32.mrb[38].mxu0 }
 0x7e1   :  { %v7263_v32 = vpop.f32.mrb[0].mxu1 }
 0x7e2   :  { %v4382_v39 = vpop.f32.mrb[1].mxu1  ;;  %v4391_v44 = vadd.f32 %v7263_v32, %v9144_v34 }
 0x7e3   :  { %v7264_v43 = vpop.f32.mrb[2].mxu1  ;;  %v4383_v9 = vadd.f32 %v9144_v34, %v4382_v39  ;;  %v9198_v39 = vpop.f32.mrb[39].mxu0 }
 0x7e4   :  { %v4394_v46 = vadd.f32 %v7264_v43, %v9144_v34  ;;  %v4385_v49 = vpop.f32.mrb[3].mxu1 }
 0x7e5   :  { %v4386_v50 = vadd.f32 %v9144_v34, %v4385_v49 }
 0x7e6   :  { %v4638_v53 = vpack.c.bf16 %v4394_v46, %v4391_v44 }
 0x7e7   :  { %v4637_v54 = vpack.c.bf16 %v4386_v50, %v4383_v9  ;;  %v9200_v9 = vpop.f32.mrb[40].mxu0 }
 0x7e9   :  { %v7267_v62 = vpop.f32.mrb[4].mxu1  ;;  %7413 = vmatprep.mubr.bf16.mxu0 %v4637_v54 }
 0x7ea   :  { %v4398_v52 = vpop.f32.mrb[5].mxu1  ;;  %7414 = vmatmul.mubr.bf16.vlgmr.msra.gmra.mrb[0].mxu0 %v4638_v53  ;;  %v4407_v63 = vadd.f32 %v7267_v62, %v9144_v34  ;;  %v9204_v62 = vpop.f32.mrb[41].mxu0 }
 0x7eb   :  { %v7268_v6 = vpop.f32.mrb[6].mxu1  ;;  %v4399_v13 = vadd.f32 %v9144_v34, %v4398_v52 }
 0x7ec   :  { %v4410_v16 = vadd.f32 %v7268_v6, %v9144_v34  ;;  %v4401_v7 = vpop.f32.mrb[7].mxu1 }
 0x7ed   :  { %v4402_v19 = vadd.f32 %v9144_v34, %v4401_v7 }
 0x7ee   :  { %v4640_v59 = vpack.c.bf16 %v4410_v16, %v4407_v63  ;;  %v9208_v63 = vpop.f32.mrb[42].mxu0 }
 0x7ef   :  { %v4639_v20 = vpack.c.bf16 %v4402_v19, %v4399_v13  ;;  %v9210_v7 = vpop.f32.mrb[43].mxu0 }
 0x7f1   :  { %v7271_v58 = vpop.f32.mrb[8].mxu1  ;;  %7417 = vmatprep.mubr.bf16.mxu1 %v4639_v20 }
 0x7f2   :  { %v4414_v23 = vpop.f32.mrb[9].mxu1  ;;  %7418 = vmatmul.mubr.bf16.vlgmr.msra.gmra.mrb[64].mxu1 %v4640_v59  ;;  %v4423_v24 = vadd.f32 %v7271_v58, %v9144_v34  ;;  %v9212_v58 = vpop.f32.mrb[44].mxu0 }
 0x7f3   :  { %v7272_v26 = vpop.f32.mrb[10].mxu1  ;;  %v4415_v0 = vadd.f32 %v9144_v34, %v4414_v23 }
 0x7f4   :  { %v4426_v30 = vadd.f32 %v7272_v26, %v9144_v34  ;;  %v4417_v31 = vpop.f32.mrb[11].mxu1 }
 0x7f5   :  { %v4418_v5 = vadd.f32 %v9144_v34, %v4417_v31 }
 0x7f6   :  { %v4642_v32 = vpack.c.bf16 %v4426_v30, %v4423_v24  ;;  %v9216_v30 = vpop.f32.mrb[45].mxu0 }
 0x7f7   :  { %v4641_v43 = vpack.c.bf16 %v4418_v5, %v4415_v0  ;;  %v9220_v5 = vpop.f32.mrb[46].mxu0 }
 0x7f9   :  { %v7275_v44 = vpop.f32.mrb[12].mxu1  ;;  %7421 = vmatprep.mubr.bf16.mxu1 %v4641_v43  ;;  %v9222_v43 = vpop.f32.mrb[47].mxu0 }
 0x7fa   :  { %v4430_v46 = vpop.f32.mrb[13].mxu1  ;;  %7422 = vmatmul.mubr.bf16.gmra.mrb[68].mxu1 %v4642_v32  ;;  %v4439_v50 = vadd.f32 %v7275_v44, %v9144_v34 }
 0x7fb   :  { %v7276_v49 = vpop.f32.mrb[14].mxu1  ;;  %v4431_v52 = vadd.f32 %v9144_v34, %v4430_v46 }
 0x7fc   :  { %v4442_v53 = vadd.f32 %v7276_v49, %v9144_v34  ;;  %v4433_v54 = vpop.f32.mrb[15].mxu1 }
 0x7fd   :  { %v4434_v6 = vadd.f32 %v9144_v34, %v4433_v54 }
 0x7fe   :  { %v4644_v16 = vpack.c.bf16 %v4442_v53, %v4439_v50  ;;  %v9224_v53 = vpop.f32.mrb[48].mxu0 }
 0x7ff   :  { %v4643_v13 = vpack.c.bf16 %v4434_v6, %v4431_v52 }
 0x801   :  { %v7279_v19 = vpop.f32.mrb[16].mxu1  ;;  %7425 = vmatprep.mubr.bf16.mxu1 %v4643_v13 }
 0x802   :  { %v4446_v59 = vpop.f32.mrb[17].mxu1  ;;  %7426 = vmatmul.mubr.bf16.gmra.mrb[72].mxu1 %v4644_v16  ;;  %v4455_v23 = vadd.f32 %v7279_v19, %v9144_v34  ;;  %v9228_v16 = vpop.f32.mrb[49].mxu0 }
 0x803   :  { %v7280_v20 = vpop.f32.mrb[18].mxu1  ;;  %v4447_v31 = vadd.f32 %v9144_v34, %v4446_v59  ;;  %9940 = vst [vmem:[#allocation3_spill] sm:$0xff] %v9228_v16  ;;  %v9232_v59 = vpop.f32.mrb[50].mxu0 }
 0x804   :  { %v4458_v26 = vadd.f32 %v7280_v20, %v9144_v34  ;;  %v4449_v24 = vpop.f32.mrb[19].mxu1  ;;  %9941 = vst [vmem:[#allocation4_spill] sm:$0xff] %v9232_v59 }
 0x805   :  { %v4450_v0 = vadd.f32 %v9144_v34, %v4449_v24 }
 0x806   :  { %v4646_v32 = vpack.c.bf16 %v4458_v26, %v4455_v23  ;;  %v9234_v23 = vpop.f32.mrb[51].mxu0 }
 0x807   :  { %v4645_v44 = vpack.c.bf16 %v4450_v0, %v4447_v31  ;;  %9942 = vst [vmem:[#allocation5_spill] sm:$0xff] %v9234_v23 }
 0x809   :  { %v7283_v46 = vpop.f32.mrb[20].mxu1  ;;  %7429 = vmatprep.mubr.bf16.mxu1 %v4645_v44 }
 0x80a   :  { %v4462_v49 = vpop.f32.mrb[21].mxu1  ;;  %7430 = vmatmul.mubr.bf16.gmra.mrb[76].mxu1 %v4646_v32  ;;  %v4471_v54 = vadd.f32 %v7283_v46, %v9144_v34  ;;  %v9236_v32 = vpop.f32.mrb[52].mxu0 }
 0x80b   :  { %v7284_v50 = vpop.f32.mrb[22].mxu1  ;;  %v4463_v13 = vadd.f32 %v9144_v34, %v4462_v49  ;;  %9943 = vst [vmem:[#allocation6_spill] sm:$0xff] %v9236_v32 }
 0x80c   :  { %v4474_v52 = vadd.f32 %v7284_v50, %v9144_v34  ;;  %v4465_v6 = vpop.f32.mrb[23].mxu1  ;;  %v9240_v50 = vpop.f32.mrb[53].mxu0 }
 0x80d   :  { %v4466_v19 = vadd.f32 %v9144_v34, %v4465_v6  ;;  %9944 = vst [vmem:[#allocation7_spill] sm:$0xff] %v9240_v50 }
 0x80e   :  { %v4648_v20 = vpack.c.bf16 %v4474_v52, %v4471_v54  ;;  %v9244_v52 = vpop.f32.mrb[54].mxu0 }
 0x80f   :  { %v4647_v26 = vpack.c.bf16 %v4466_v19, %v4463_v13  ;;  %9945 = vst [vmem:[#allocation8_spill] sm:$0xff] %v9244_v52  ;;  %v9246_v19 = vpop.f32.mrb[55].mxu0 }
 0x810   :  { %9946 = vst [vmem:[#allocation9_spill] sm:$0xff] %v9246_v19  ;;  %v9248_v23 = vpop.f32.mrb[56].mxu0 }
 0x811   :  { %v7287_v24 = vpop.f32.mrb[24].mxu1  ;;  %7433 = vmatprep.mubr.bf16.mxu1 %v4647_v26  ;;  %9947 = vst [vmem:[#allocation10_spill] sm:$0xff] %v9248_v23  ;;  %v9252_v59 = vpop.f32.mrb[57].mxu0 }
 0x812   :  { %v4478_v31 = vpop.f32.mrb[25].mxu1  ;;  %7434 = vmatmul.mubr.bf16.gmra.mrb[80].mxu1 %v4648_v20  ;;  %v4487_v44 = vadd.f32 %v7287_v24, %v9144_v34  ;;  %9948 = vst [vmem:[#allocation11_spill] sm:$0xff] %v9252_v59 }
 0x813   :  { %v7288_v0 = vpop.f32.mrb[26].mxu1  ;;  %v4479_v6 = vadd.f32 %v9144_v34, %v4478_v31 }
 0x814   :  { %v4490_v46 = vadd.f32 %v7288_v0, %v9144_v34  ;;  %v4481_v49 = vpop.f32.mrb[27].mxu1 }
 0x815   :  { %v4482_v54 = vadd.f32 %v9144_v34, %v4481_v49 }
 0x816   :  { %v4650_v13 = vpack.c.bf16 %v4490_v46, %v4487_v44  ;;  %v9256_v46 = vpop.f32.mrb[58].mxu0 }
 0x817   :  { %v4649_v20 = vpack.c.bf16 %v4482_v54, %v4479_v6  ;;  %9949 = vst [vmem:[#allocation12_spill] sm:$0xff] %v9256_v46  ;;  %v9258_v54 = vpop.f32.mrb[59].mxu0 }
 0x818   :  { %9950 = vst [vmem:[#allocation13_spill] sm:$0xff] %v9258_v54  ;;  %v9260_v19 = vpop.f32.mrb[60].mxu0 }
 0x819   :  { %v7291_v26 = vpop.f32.mrb[28].mxu1  ;;  %7437 = vmatprep.mubr.bf16.mxu1 %v4649_v20  ;;  %9951 = vst [vmem:[#allocation14_spill] sm:$0xff] %v9260_v19  ;;  %v9264_v52 = vpop.f32.mrb[61].mxu0 }
 0x81a   :  { %v4494_v32 = vpop.f32.mrb[29].mxu1  ;;  %7438 = vmatmul.mubr.bf16.gmra.mrb[84].mxu1 %v4650_v13  ;;  %v4503_v0 = vadd.f32 %v7291_v26, %v9144_v34  ;;  %9952 = vst [vmem:[#allocation15_spill] sm:$0xff] %v9264_v52 }
 0x81b   :  { %v7292_v24 = vpop.f32.mrb[30].mxu1  ;;  %v4495_v49 = vadd.f32 %v9144_v34, %v4494_v32 }
 0x81c   :  { %v4506_v50 = vadd.f32 %v7292_v24, %v9144_v34  ;;  %v4497_v31 = vpop.f32.mrb[31].mxu1 }
 0x81d   :  { %v4498_v44 = vadd.f32 %v9144_v34, %v4497_v31 }
 0x81e   :  { %v4652_v6 = vpack.c.bf16 %v4506_v50, %v4503_v0  ;;  %v9268_v0 = vpop.f32.mrb[62].mxu0 }
 0x81f   :  { %v4651_v13 = vpack.c.bf16 %v4498_v44, %v4495_v49  ;;  %9953 = vst [vmem:[#allocation16_spill] sm:$0xff] %v9268_v0  ;;  %v9270_v44 = vpop.f32.mrb[63].mxu0 }
 0x820   :  { %9954 = vst [vmem:[#allocation17_spill] sm:$0xff] %v9270_v44 }
 0x821   :  { %v7295_v20 = vpop.f32.mrb[32].mxu1  ;;  %7441 = vmatprep.mubr.bf16.mxu1 %v4651_v13 }
 0x822   :  { %v4510_v23 = vpop.f32.mrb[33].mxu1  ;;  %7442 = vmatmul.mubr.bf16.gmra.mrb[88].mxu1 %v4652_v6  ;;  %v4519_v24 = vadd.f32 %v7295_v20, %v9144_v34 }
 0x823   :  { %v7296_v26 = vpop.f32.mrb[34].mxu1  ;;  %v4511_v31 = vadd.f32 %v9144_v34, %v4510_v23 }
 0x824   :  { %v4522_v59 = vadd.f32 %v7296_v26, %v9144_v34  ;;  %v4513_v32 = vpop.f32.mrb[35].mxu1 }
 0x825   :  { %v4514_v50 = vadd.f32 %v9144_v34, %v4513_v32 }
 0x826   :  { %v4654_v49 = vpack.c.bf16 %v4522_v59, %v4519_v24 }
 0x827   :  { %v4653_v6 = vpack.c.bf16 %v4514_v50, %v4511_v31 }
 0x829   :  { %v7299_v13 = vpop.f32.mrb[36].mxu1  ;;  %7445 = vmatprep.mubr.bf16.mxu1 %v4653_v6 }
 0x82a   :  { %v4526_v19 = vpop.f32.mrb[37].mxu1  ;;  %7446 = vmatmul.mubr.bf16.gmra.mrb[92].mxu1 %v4654_v49  ;;  %v4535_v26 = vadd.f32 %v7299_v13, %v9144_v34 }
 0x82b   :  { %v7300_v20 = vpop.f32.mrb[38].mxu1  ;;  %v4527_v23 = vadd.f32 %v9144_v34, %v4526_v19 }
 0x82c   :  { %v4538_v54 = vadd.f32 %v7300_v20, %v9144_v34  ;;  %v4529_v52 = vpop.f32.mrb[39].mxu1 }
 0x82d   :  { %v4530_v32 = vadd.f32 %v9144_v34, %v4529_v52 }
 0x82e   :  { %v4656_v46 = vpack.c.bf16 %v4538_v54, %v4535_v26 }
 0x82f   :  { %v4655_v0 = vpack.c.bf16 %v4530_v32, %v4527_v23 }
 0x831   :  { %v7303_v59 = vpop.f32.mrb[40].mxu1  ;;  %7449 = vmatprep.mubr.bf16.mxu1 %v4655_v0 }
 0x832   :  { %v4542_v24 = vpop.f32.mrb[41].mxu1  ;;  %7450 = vmatmul.mubr.bf16.gmra.mrb[96].mxu1 %v4656_v46  ;;  %v4551_v50 = vadd.f32 %v7303_v59, %v9144_v34 }
 0x833   :  { %v7304_v31 = vpop.f32.mrb[42].mxu1  ;;  %v4543_v13 = vadd.f32 %v9144_v34, %v4542_v24 }
 0x834   :  { %v4554_v49 = vadd.f32 %v7304_v31, %v9144_v34  ;;  %v4545_v6 = vpop.f32.mrb[43].mxu1 }
 0x835   :  { %v4546_v20 = vadd.f32 %v9144_v34, %v4545_v6 }
 0x836   :  { %v4658_v44 = vpack.c.bf16 %v4554_v49, %v4551_v50 }
 0x837   :  { %v4657_v19 = vpack.c.bf16 %v4546_v20, %v4543_v13 }
 0x839   :  { %v7307_v16 = vpop.f32.mrb[44].mxu1  ;;  %7453 = vmatprep.mubr.bf16.mxu1 %v4657_v19 }
 0x83a   :  { %v4558_v52 = vpop.f32.mrb[45].mxu1  ;;  %7454 = vmatmul.mubr.bf16.gmra.mrb[100].mxu1 %v4658_v44  ;;  %v4567_v0 = vadd.f32 %v7307_v16, %v9144_v34 }
 0x83b   :  { %v7308_v54 = vpop.f32.mrb[46].mxu1  ;;  %v4559_v23 = vadd.f32 %v9144_v34, %v4558_v52 }
 0x83c   :  { %v4570_v46 = vadd.f32 %v7308_v54, %v9144_v34  ;;  %v4561_v26 = vpop.f32.mrb[47].mxu1 }
 0x83d   :  { %v4562_v32 = vadd.f32 %v9144_v34, %v4561_v26 }
 0x83e   :  { %v4660_v59 = vpack.c.bf16 %v4570_v46, %v4567_v0 }
 0x83f   :  { %v4659_v24 = vpack.c.bf16 %v4562_v32, %v4559_v23 }
 0x841   :  { %v7311_v31 = vpop.f32.mrb[48].mxu1  ;;  %7457 = vmatprep.mubr.bf16.mxu1 %v4659_v24 }
 0x842   :  { %v4574_v50 = vpop.f32.mrb[49].mxu1  ;;  %7458 = vmatmul.mubr.bf16.gmra.mrb[104].mxu1 %v4660_v59  ;;  %v4583_v6 = vadd.f32 %v7311_v31, %v9144_v34 }
 0x843   :  { %v7312_v49 = vpop.f32.mrb[50].mxu1  ;;  %v4575_v16 = vadd.f32 %v9144_v34, %v4574_v50 }
 0x844   :  { %v4586_v44 = vadd.f32 %v7312_v49, %v9144_v34  ;;  %v4577_v13 = vpop.f32.mrb[51].mxu1 }
 0x845   :  { %v4578_v20 = vadd.f32 %v9144_v34, %v4577_v13 }
 0x846   :  { %v4662_v19 = vpack.c.bf16 %v4586_v44, %v4583_v6 }
 0x847   :  { %v4661_v52 = vpack.c.bf16 %v4578_v20, %v4575_v16 }
 0x849   :  { %v7315_v54 = vpop.f32.mrb[52].mxu1  ;;  %7461 = vmatprep.mubr.bf16.mxu1 %v4661_v52 }
 0x84a   :  { %v4590_v0 = vpop.f32.mrb[53].mxu1  ;;  %7462 = vmatmul.mubr.bf16.gmra.mrb[108].mxu1 %v4662_v19  ;;  %v4599_v26 = vadd.f32 %v7315_v54, %v9144_v34 }
 0x84b   :  { %v7316_v46 = vpop.f32.mrb[54].mxu1  ;;  %v4591_v59 = vadd.f32 %v9144_v34, %v4590_v0 }
 0x84c   :  { %v4602_v23 = vadd.f32 %v7316_v46, %v9144_v34  ;;  %v4593_v32 = vpop.f32.mrb[55].mxu1 }
 0x84d   :  { %v4594_v24 = vadd.f32 %v9144_v34, %v4593_v32 }
 0x84e   :  { %v4664_v31 = vpack.c.bf16 %v4602_v23, %v4599_v26 }
 0x84f   :  { %v4663_v50 = vpack.c.bf16 %v4594_v24, %v4591_v59 }
 0x851   :  { %v7319_v49 = vpop.f32.mrb[56].mxu1  ;;  %7465 = vmatprep.mubr.bf16.mxu1 %v4663_v50 }
 0x852   :  { %v4606_v6 = vpop.f32.mrb[57].mxu1  ;;  %7466 = vmatmul.mubr.bf16.gmra.mrb[112].mxu1 %v4664_v31  ;;  %v4615_v13 = vadd.f32 %v7319_v49, %v9144_v34 }
 0x853   :  { %v7320_v44 = vpop.f32.mrb[58].mxu1  ;;  %v4607_v19 = vadd.f32 %v9144_v34, %v4606_v6 }
 0x854   :  { %v4618_v16 = vadd.f32 %v7320_v44, %v9144_v34  ;;  %v4609_v20 = vpop.f32.mrb[59].mxu1  ;;  %v9303_v44 = vld [vmem:[%s9909_s22] ss:$0 sm:$0xff] }
 0x855   :  { %v4610_v52 = vadd.f32 %v9144_v34, %v4609_v20 }
 0x856   :  { %v4666_v54 = vpack.c.bf16 %v4618_v16, %v4615_v13 }
 0x857   :  { %v4665_v0 = vpack.c.bf16 %v4610_v52, %v4607_v19 }
 0x859   :  { %v7323_v46 = vpop.f32.mrb[60].mxu1  ;;  %7469 = vmatprep.mubr.bf16.mxu1 %v4665_v0 }
 0x85a   :  { %v4622_v26 = vpop.f32.mrb[61].mxu1  ;;  %7470 = vmatmul.mubr.bf16.gmra.mrb[116].mxu1 %v4666_v54  ;;  %v4631_v32 = vadd.f32 %v7323_v46, %v9144_v34 }
 0x85b   :  { %v7324_v23 = vpop.f32.mrb[62].mxu1  ;;  %v4623_v31 = vadd.f32 %v9144_v34, %v4622_v26 }
 0x85c   :  { %v4634_v59 = vadd.f32 %v7324_v23, %v9144_v34  ;;  %v4625_v24 = vpop.f32.mrb[63].mxu1 }
 0x85d   :  { %v4626_v50 = vadd.f32 %v9144_v34, %v4625_v24  ;;  %v9310_v34 = vld [vmem:[%s9910_s23] ss:$0 sm:$0xff] }
 0x85e   :  { %v4668_v49 = vpack.c.bf16 %v4634_v59, %v4631_v32 }
 0x85f   :  { %v4667_v6 = vpack.c.bf16 %v4626_v50, %v4623_v31 }
 0x861   :  { %7473 = vmatprep.mubr.bf16.mxu1 %v4667_v6 }
 0x862   :  { %7474 = vmatmul.mubr.bf16.gmra.mrb[120].mxu1 %v4668_v49 }
 0x8bd   :  { %v7415_v13 = vpop.f32.mrb[0].mxu0 }
 0x8be   :  { %v5352_v16 = vadd.f32 %v7415_v13, %v9303_v44  ;;  %v5088_v20 = vpop.f32.mrb[1].mxu0 }
 0x8bf   :  { %v5350_v19 = vadd.f32 %v9303_v44, %v5088_v20  ;;  %v7416_v52 = vpop.f32.mrb[2].mxu0 }
 0x8c0   :  { %v5416_v54 = vmax.f32 %v5352_v16, 0.0  ;;  %v5353_v0 = vadd.f32 %v7416_v52, %v9303_v44  ;;  %v5091_v46 = vpop.f32.mrb[3].mxu0 }
 0x8c1   :  { %v5414_v26 = vmax.f32 %v5350_v19, 0.0  ;;  %v5351_v23 = vadd.f32 %v9303_v44, %v5091_v46 }
 0x8c2   :  { %v5417_v32 = vmax.f32 %v5353_v0, 0.0  ;;  %v5487_v59 = vmul.f32 %v9310_v34, %v5416_v54  ;;  %v30_v0 = vstv %s9911_s24 }
 0x8c3   :  { %v5415_v24 = vmax.f32 %v5351_v23, 0.0  ;;  %v5485_v31 = vmul.f32 %v9310_v34, %v5414_v26  ;;  %31 = vst [vmem:[#allocation2] sm:$0x1] %v30_v0 }
 0x8c4   :  { %v5555_v50 = vsel %vm218_vm0, %v5487_v59, 0.0  ;;  %v5488_v49 = vmul.f32 %v9310_v34, %v5417_v32 }
 0x8c5   :  { %5556 = vadd.xlane.f32.xlu1 %v5555_v50  ;;  %v7419_v6 = vpop.f32.mrb[64].mxu1  ;;  %v5549_v13 = vsel %vm218_vm0, %v5485_v31, 0.0  ;;  %v5486_v16 = vmul.f32 %v9310_v34, %v5415_v24 }
 0x8c6   :  { %v5113_v20 = vadd.f32 %v7419_v6, %v9111_v17  ;;  %5550 = vadd.xlane.f32.xlu0 %v5549_v13  ;;  %v5104_v19 = vpop.f32.mrb[65].mxu1  ;;  %v5558_v32 = vsel %vm218_vm0, %v5488_v49, 0.0 }
 0x8c7   :  { %v5105_v52 = vadd.f32 %v5104_v19, %v9113_v18  ;;  %v7420_v54 = vpop.f32.mrb[66].mxu1  ;;  %v5552_v18 = vsel %vm218_vm0, %v5486_v16, 0.0 }
 0x8c8   :  { %v5356_v46 = vadd.f32 %v9303_v44, %v5113_v20  ;;  %v5116_v26 = vadd.f32 %v7420_v54, %v9115_v25  ;;  %v5107_v23 = vpop.f32.mrb[67].mxu1 }
 0x8c9   :  { %v5354_v59 = vadd.f32 %v9303_v44, %v5105_v52  ;;  %v5108_v17 = vadd.f32 %v5107_v23, %v9117_v1  ;;  %5559 = vadd.xlane.f32.xlu1 %v5558_v32 }
 0x8ca   :  { %v5420_v24 = vmax.f32 %v5356_v46, 0.0  ;;  %v5357_v31 = vadd.f32 %v9303_v44, %v5116_v26  ;;  %5553 = vadd.xlane.f32.xlu0 %v5552_v18 }
 0x8cb   :  { %v5418_v50 = vmax.f32 %v5354_v59, 0.0  ;;  %v5355_v6 = vadd.f32 %v9303_v44, %v5108_v17 }
 0x8cc   :  { %v5421_v13 = vmax.f32 %v5357_v31, 0.0  ;;  %v5491_v25 = vmul.f32 %v9310_v34, %v5420_v24 }
 0x8cd   :  { %v5419_v20 = vmax.f32 %v5355_v6, 0.0  ;;  %v7423_v49 = vpop.f32.mrb[68].mxu1  ;;  %v5489_v16 = vmul.f32 %v9310_v34, %v5418_v50 }
 0x8ce   :  { %v5129_v19 = vadd.f32 %v7423_v49, %v9119_v27  ;;  %v5120_v52 = vpop.f32.mrb[69].mxu1  ;;  %v5567_v1 = vsel %vm218_vm0, %v5491_v25, 0.0  ;;  %v5492_v54 = vmul.f32 %v9310_v34, %v5421_v13 }
 0x8cf   :  { %v5121_v0 = vadd.f32 %v5120_v52, %v9121_v2  ;;  %5568 = vadd.xlane.f32.xlu0 %v5567_v1  ;;  %v7424_v46 = vpop.f32.mrb[70].mxu1  ;;  %v5490_v27 = vmul.f32 %v9310_v34, %v5419_v20  ;;  %v5561_v2 = vsel %vm218_vm0, %v5489_v16, 0.0 }
 0x8d0   :  { %v5360_v26 = vadd.f32 %v9303_v44, %v5129_v19  ;;  %v5132_v23 = vadd.f32 %v7424_v46, %v9123_v11  ;;  %v5123_v32 = vpop.f32.mrb[71].mxu1  ;;  %v5570_v59 = vsel %vm218_vm0, %v5492_v54, 0.0 }
 0x8d1   :  { %v5358_v17 = vadd.f32 %v9303_v44, %v5121_v0  ;;  %v5124_v18 = vadd.f32 %v5123_v32, %v9125_v33  ;;  %5571 = vadd.xlane.f32.xlu1 %v5570_v59  ;;  %v5564_v13 = vsel %vm218_vm0, %v5490_v27, 0.0 }
 0x8d2   :  { %v5424_v24 = vmax.f32 %v5360_v26, 0.0  ;;  %v5361_v31 = vadd.f32 %v9303_v44, %v5132_v23 }
 0x8d3   :  { %v5422_v50 = vmax.f32 %v5358_v17, 0.0  ;;  %v5359_v6 = vadd.f32 %v9303_v44, %v5124_v18  ;;  %5562 = vadd.xlane.f32.xlu0 %v5561_v2 }
 0x8d4   :  { %v5425_v11 = vmax.f32 %v5361_v31, 0.0  ;;  %v5495_v25 = vmul.f32 %v9310_v34, %v5424_v24 }
 0x8d5   :  { %v5423_v20 = vmax.f32 %v5359_v6, 0.0  ;;  %v7427_v49 = vpop.f32.mrb[72].mxu1  ;;  %5565 = vadd.xlane.f32.xlu1 %v5564_v13  ;;  %v5493_v54 = vmul.f32 %v9310_v34, %v5422_v50 }
 0x8d6   :  { %v5145_v33 = vadd.f32 %v7427_v49, %v9127_v36  ;;  %v5136_v19 = vpop.f32.mrb[73].mxu1  ;;  %v5579_v52 = vsel %vm218_vm0, %v5495_v25, 0.0  ;;  %v5496_v1 = vmul.f32 %v9310_v34, %v5425_v11 }
 0x8d7   :  { %v5137_v16 = vadd.f32 %v5136_v19, %v9129_v35  ;;  %v7428_v0 = vpop.f32.mrb[74].mxu1  ;;  %5580 = vadd.xlane.f32.xlu0 %v5579_v52  ;;  %v5494_v36 = vmul.f32 %v9310_v34, %v5423_v20  ;;  %v5573_v35 = vsel %vm218_vm0, %v5493_v54, 0.0 }
 0x8d8   :  { %v5364_v46 = vadd.f32 %v9303_v44, %v5145_v33  ;;  %v5148_v26 = vadd.f32 %v7428_v0, %v9131_v41  ;;  %v5139_v23 = vpop.f32.mrb[75].mxu1  ;;  %v5582_v32 = vsel %vm218_vm0, %v5496_v1, 0.0 }
 0x8d9   :  { %v5362_v59 = vadd.f32 %v9303_v44, %v5137_v16  ;;  %v5140_v27 = vadd.f32 %v5139_v23, %v9133_v37  ;;  %5583 = vadd.xlane.f32.xlu1 %v5582_v32  ;;  %v5576_v2 = vsel %vm218_vm0, %v5494_v36, 0.0 }
 0x8da   :  { %v5428_v17 = vmax.f32 %v5364_v46, 0.0  ;;  %v5365_v18 = vadd.f32 %v9303_v44, %v5148_v26 }
 0x8db   :  { %v5426_v24 = vmax.f32 %v5362_v59, 0.0  ;;  %v5363_v31 = vadd.f32 %v9303_v44, %v5140_v27  ;;  %5574 = vadd.xlane.f32.xlu0 %v5573_v35 }
 0x8dc   :  { %v5429_v41 = vmax.f32 %v5365_v18, 0.0  ;;  %v5499_v50 = vmul.f32 %v9310_v34, %v5428_v17 }
 0x8dd   :  { %v5427_v6 = vmax.f32 %v5363_v31, 0.0  ;;  %v7431_v11 = vpop.f32.mrb[76].mxu1  ;;  %5577 = vadd.xlane.f32.xlu1 %v5576_v2  ;;  %v5497_v49 = vmul.f32 %v9310_v34, %v5426_v24 }
 0x8de   :  { %v5161_v37 = vadd.f32 %v7431_v11, %v9135_v42  ;;  %v5152_v13 = vpop.f32.mrb[77].mxu1  ;;  %v5591_v25 = vsel %vm218_vm0, %v5499_v50, 0.0  ;;  %v5500_v20 = vmul.f32 %v9310_v34, %v5429_v41 }
 0x8df   :  { %v5153_v33 = vadd.f32 %v5152_v13, %v9137_v47  ;;  %v7432_v19 = vpop.f32.mrb[78].mxu1  ;;  %5592 = vadd.xlane.f32.xlu0 %v5591_v25  ;;  %v5498_v42 = vmul.f32 %v9310_v34, %v5427_v6  ;;  %v5585_v47 = vsel %vm218_vm0, %v5497_v49, 0.0 }
 0x8e0   :  { %v5368_v52 = vadd.f32 %v9303_v44, %v5161_v37  ;;  %v5164_v1 = vadd.f32 %v7432_v19, %v9139_v48  ;;  %v5155_v54 = vpop.f32.mrb[79].mxu1  ;;  %v5594_v16 = vsel %vm218_vm0, %v5500_v20, 0.0 }
 0x8e1   :  { %v5366_v0 = vadd.f32 %v9303_v44, %v5153_v33  ;;  %v5156_v46 = vadd.f32 %v5155_v54, %v9146_v38  ;;  %5595 = vadd.xlane.f32.xlu1 %v5594_v16  ;;  %v5588_v59 = vsel %vm218_vm0, %v5498_v42, 0.0 }
 0x8e2   :  { %v5432_v26 = vmax.f32 %v5368_v52, 0.0  ;;  %v5369_v23 = vadd.f32 %v9303_v44, %v5164_v1 }
 0x8e3   :  { %v5430_v32 = vmax.f32 %v5366_v0, 0.0  ;;  %v5367_v36 = vadd.f32 %v9303_v44, %v5156_v46  ;;  %5586 = vadd.xlane.f32.xlu0 %v5585_v47 }
 0x8e4   :  { %v5433_v48 = vmax.f32 %v5369_v23, 0.0  ;;  %v5503_v27 = vmul.f32 %v9310_v34, %v5432_v26 }
 0x8e5   :  { %v5431_v17 = vmax.f32 %v5367_v36, 0.0  ;;  %v7435_v18 = vpop.f32.mrb[80].mxu1  ;;  %5589 = vadd.xlane.f32.xlu1 %v5588_v59  ;;  %v5501_v41 = vmul.f32 %v9310_v34, %v5430_v32 }
 0x8e6   :  { %v5177_v38 = vadd.f32 %v7435_v18, %v9148_v40  ;;  %v5168_v35 = vpop.f32.mrb[81].mxu1  ;;  %v5603_v24 = vsel %vm218_vm0, %v5503_v27, 0.0  ;;  %v5504_v31 = vmul.f32 %v9310_v34, %v5433_v48 }
 0x8e7   :  { %v5169_v2 = vadd.f32 %v5168_v35, %v9150_v8  ;;  %v7436_v50 = vpop.f32.mrb[82].mxu1  ;;  %5604 = vadd.xlane.f32.xlu0 %v5603_v24  ;;  %v5502_v40 = vmul.f32 %v9310_v34, %v5431_v17  ;;  %v5597_v8 = vsel %vm218_vm0, %v5501_v41, 0.0 }
 0x8e8   :  { %v5372_v6 = vadd.f32 %v9303_v44, %v5177_v38  ;;  %v5180_v11 = vadd.f32 %v7436_v50, %v9154_v45  ;;  %v5171_v37 = vpop.f32.mrb[83].mxu1  ;;  %v5606_v13 = vsel %vm218_vm0, %v5504_v31, 0.0 }
 0x8e9   :  { %v5370_v25 = vadd.f32 %v9303_v44, %v5169_v2  ;;  %v5172_v20 = vadd.f32 %v5171_v37, %v9158_v51  ;;  %5607 = vadd.xlane.f32.xlu1 %v5606_v13  ;;  %v5600_v1 = vsel %vm218_vm0, %v5502_v40, 0.0 }
 0x8ea   :  { %v5436_v49 = vmax.f32 %v5372_v6, 0.0  ;;  %v5373_v33 = vadd.f32 %v9303_v44, %v5180_v11 }
 0x8eb   :  { %v5434_v19 = vmax.f32 %v5370_v25, 0.0  ;;  %v5371_v52 = vadd.f32 %v9303_v44, %v5172_v20  ;;  %5598 = vadd.xlane.f32.xlu0 %v5597_v8 }
 0x8ec   :  { %v5437_v45 = vmax.f32 %v5373_v33, 0.0  ;;  %v5507_v54 = vmul.f32 %v9310_v34, %v5436_v49 }
 0x8ed   :  { %v5435_v16 = vmax.f32 %v5371_v52, 0.0  ;;  %v7439_v42 = vpop.f32.mrb[84].mxu1  ;;  %5601 = vadd.xlane.f32.xlu1 %v5600_v1  ;;  %v5505_v23 = vmul.f32 %v9310_v34, %v5434_v19 }
 0x8ee   :  { %v5193_v51 = vadd.f32 %v7439_v42, %v9160_v56  ;;  %v5184_v0 = vpop.f32.mrb[85].mxu1  ;;  %v5615_v46 = vsel %vm218_vm0, %v5507_v54, 0.0  ;;  %v5508_v26 = vmul.f32 %v9310_v34, %v5437_v45 }
 0x8ef   :  { %v5185_v47 = vadd.f32 %v5184_v0, %v9162_v57  ;;  %v7440_v32 = vpop.f32.mrb[86].mxu1  ;;  %5616 = vadd.xlane.f32.xlu0 %v5615_v46  ;;  %v5506_v56 = vmul.f32 %v9310_v34, %v5435_v16  ;;  %v5609_v57 = vsel %vm218_vm0, %v5505_v23, 0.0 }
 0x8f0   :  { %v5376_v36 = vadd.f32 %v9303_v44, %v5193_v51  ;;  %v5196_v48 = vadd.f32 %v7440_v32, %v9164_v61  ;;  %v5187_v59 = vpop.f32.mrb[87].mxu1  ;;  %v5618_v27 = vsel %vm218_vm0, %v5508_v26, 0.0 }
 0x8f1   :  { %v5374_v17 = vadd.f32 %v9303_v44, %v5185_v47  ;;  %v5188_v18 = vadd.f32 %v5187_v59, %v9166_v3  ;;  %5619 = vadd.xlane.f32.xlu1 %v5618_v27  ;;  %v5612_v41 = vsel %vm218_vm0, %v5506_v56, 0.0 }
 0x8f2   :  { %v5440_v38 = vmax.f32 %v5376_v36, 0.0  ;;  %v5377_v35 = vadd.f32 %v9303_v44, %v5196_v48 }
 0x8f3   :  { %v5438_v24 = vmax.f32 %v5374_v17, 0.0  ;;  %v5375_v31 = vadd.f32 %v9303_v44, %v5188_v18  ;;  %5610 = vadd.xlane.f32.xlu0 %v5609_v57 }
 0x8f4   :  { %v5441_v61 = vmax.f32 %v5377_v35, 0.0  ;;  %v5511_v2 = vmul.f32 %v9310_v34, %v5440_v38 }
 0x8f5   :  { %v5439_v50 = vmax.f32 %v5375_v31, 0.0  ;;  %v7443_v6 = vpop.f32.mrb[88].mxu1  ;;  %5613 = vadd.xlane.f32.xlu1 %v5612_v41  ;;  %v5509_v40 = vmul.f32 %v9310_v34, %v5438_v24 }
 0x8f6   :  { %v5209_v3 = vadd.f32 %v7443_v6, %v9168_v4  ;;  %v5200_v11 = vpop.f32.mrb[89].mxu1  ;;  %v5627_v37 = vsel %vm218_vm0, %v5511_v2, 0.0  ;;  %v5512_v13 = vmul.f32 %v9310_v34, %v5441_v61 }
 0x8f7   :  { %v5201_v25 = vadd.f32 %v5200_v11, %v9170_v55  ;;  %v7444_v20 = vpop.f32.mrb[90].mxu1  ;;  %5628 = vadd.xlane.f32.xlu0 %v5627_v37  ;;  %v5510_v4 = vmul.f32 %v9310_v34, %v5439_v50  ;;  %v5621_v55 = vsel %vm218_vm0, %v5509_v40, 0.0 }
 0x8f8   :  { %v5380_v49 = vadd.f32 %v9303_v44, %v5209_v3  ;;  %v5212_v33 = vadd.f32 %v7444_v20, %v9174_v10  ;;  %v5203_v8 = vpop.f32.mrb[91].mxu1  ;;  %v5630_v19 = vsel %vm218_vm0, %v5512_v13, 0.0 }
 0x8f9   :  { %v5378_v52 = vadd.f32 %v9303_v44, %v5201_v25  ;;  %v5204_v45 = vadd.f32 %v5203_v8, %v9178_v14  ;;  %5631 = vadd.xlane.f32.xlu1 %v5630_v19  ;;  %v5624_v51 = vsel %vm218_vm0, %v5510_v4, 0.0 }
 0x8fa   :  { %v5444_v1 = vmax.f32 %v5380_v49, 0.0  ;;  %v5381_v54 = vadd.f32 %v9303_v44, %v5212_v33 }
 0x8fb   :  { %v5442_v16 = vmax.f32 %v5378_v52, 0.0  ;;  %v5379_v42 = vadd.f32 %v9303_v44, %v5204_v45  ;;  %5622 = vadd.xlane.f32.xlu0 %v5621_v55 }
 0x8fc   :  { %v5445_v10 = vmax.f32 %v5381_v54, 0.0  ;;  %v5515_v0 = vmul.f32 %v9310_v34, %v5444_v1 }
 0x8fd   :  { %v5443_v46 = vmax.f32 %v5379_v42, 0.0  ;;  %v7447_v26 = vpop.f32.mrb[92].mxu1  ;;  %5625 = vadd.xlane.f32.xlu1 %v5624_v51  ;;  %v5513_v36 = vmul.f32 %v9310_v34, %v5442_v16 }
 0x8fe   :  { %v5225_v14 = vadd.f32 %v7447_v26, %v9180_v15  ;;  %v5216_v23 = vpop.f32.mrb[93].mxu1  ;;  %v5639_v47 = vsel %vm218_vm0, %v5515_v0, 0.0  ;;  %v5516_v32 = vmul.f32 %v9310_v34, %v5445_v10 }
 0x8ff   :  { %v5217_v48 = vadd.f32 %v5216_v23, %v9182_v60  ;;  %v7448_v59 = vpop.f32.mrb[94].mxu1  ;;  %5640 = vadd.xlane.f32.xlu0 %v5639_v47  ;;  %v5514_v15 = vmul.f32 %v9310_v34, %v5443_v46  ;;  %v5633_v60 = vsel %vm218_vm0, %v5513_v36, 0.0 }
 0x900   :  { %v5384_v27 = vadd.f32 %v9303_v44, %v5225_v14  ;;  %v5228_v56 = vadd.f32 %v7448_v59, %v9184_v21  ;;  %v5219_v17 = vpop.f32.mrb[95].mxu1  ;;  %v5642_v18 = vsel %vm218_vm0, %v5516_v32, 0.0 }
 0x901   :  { %v5382_v38 = vadd.f32 %v9303_v44, %v5217_v48  ;;  %v5220_v35 = vadd.f32 %v5219_v17, %v9186_v22  ;;  %5643 = vadd.xlane.f32.xlu1 %v5642_v18  ;;  %v5636_v41 = vsel %vm218_vm0, %v5514_v15, 0.0 }
 0x902   :  { %v5448_v57 = vmax.f32 %v5384_v27, 0.0  ;;  %v5385_v24 = vadd.f32 %v9303_v44, %v5228_v56 }
 0x903   :  { %v5446_v31 = vmax.f32 %v5382_v38, 0.0  ;;  %v5383_v61 = vadd.f32 %v9303_v44, %v5220_v35  ;;  %5634 = vadd.xlane.f32.xlu0 %v5633_v60 }
 0x904   :  { %v5449_v21 = vmax.f32 %v5385_v24, 0.0  ;;  %v5519_v2 = vmul.f32 %v9310_v34, %v5448_v57 }
 0x905   :  { %v5447_v50 = vmax.f32 %v5383_v61, 0.0  ;;  %v7451_v6 = vpop.f32.mrb[96].mxu1  ;;  %5637 = vadd.xlane.f32.xlu1 %v5636_v41  ;;  %v5517_v13 = vmul.f32 %v9310_v34, %v5446_v31 }
 0x906   :  { %v5241_v22 = vadd.f32 %v7451_v6, %v9188_v29  ;;  %v5232_v3 = vpop.f32.mrb[97].mxu1  ;;  %v5651_v11 = vsel %vm218_vm0, %v5519_v2, 0.0  ;;  %v5520_v37 = vmul.f32 %v9310_v34, %v5449_v21 }
 0x907   :  { %v5233_v40 = vadd.f32 %v5232_v3, %v9192_v28  ;;  %v7452_v25 = vpop.f32.mrb[98].mxu1  ;;  %5652 = vadd.xlane.f32.xlu0 %v5651_v11  ;;  %v5518_v29 = vmul.f32 %v9310_v34, %v5447_v50  ;;  %v5645_v28 = vsel %vm218_vm0, %v5517_v13, 0.0 }
 0x908   :  { %v5388_v20 = vadd.f32 %v9303_v44, %v5241_v22  ;;  %v5244_v49 = vadd.f32 %v7452_v25, %v9196_v12  ;;  %v5235_v33 = vpop.f32.mrb[99].mxu1  ;;  %v5654_v8 = vsel %vm218_vm0, %v5520_v37, 0.0 }
 0x909   :  { %v5386_v19 = vadd.f32 %v9303_v44, %v5233_v40  ;;  %v5236_v4 = vadd.f32 %v5235_v33, %v9198_v39  ;;  %5655 = vadd.xlane.f32.xlu1 %v5654_v8  ;;  %v5648_v55 = vsel %vm218_vm0, %v5518_v29, 0.0 }
 0x90a   :  { %v5452_v52 = vmax.f32 %v5388_v20, 0.0  ;;  %v5389_v45 = vadd.f32 %v9303_v44, %v5244_v49 }
 0x90b   :  { %v5450_v1 = vmax.f32 %v5386_v19, 0.0  ;;  %v5387_v54 = vadd.f32 %v9303_v44, %v5236_v4  ;;  %5646 = vadd.xlane.f32.xlu0 %v5645_v28  ;;  %v9955_v28 = vld [vmem:[#allocation3_spill] sm:$0xff] }
 0x90c   :  { %v5453_v12 = vmax.f32 %v5389_v45, 0.0  ;;  %v5523_v16 = vmul.f32 %v9310_v34, %v5452_v52 }
 0x90d   :  { %v5451_v42 = vmax.f32 %v5387_v54, 0.0  ;;  %v7455_v10 = vpop.f32.mrb[100].mxu1  ;;  %5649 = vadd.xlane.f32.xlu1 %v5648_v55  ;;  %v5521_v26 = vmul.f32 %v9310_v34, %v5450_v1  ;;  %v9956_v55 = vld [vmem:[#allocation4_spill] sm:$0xff] }
 0x90e   :  { %v5257_v39 = vadd.f32 %v7455_v10, %v9200_v9  ;;  %v5248_v51 = vpop.f32.mrb[101].mxu1  ;;  %v5663_v0 = vsel %vm218_vm0, %v5523_v16, 0.0  ;;  %v5524_v46 = vmul.f32 %v9310_v34, %v5453_v12 }
 0x90f   :  { %v5249_v14 = vadd.f32 %v5248_v51, %v9204_v62  ;;  %v7456_v23 = vpop.f32.mrb[102].mxu1  ;;  %5664 = vadd.xlane.f32.xlu0 %v5663_v0  ;;  %v5522_v9 = vmul.f32 %v9310_v34, %v5451_v42  ;;  %v5657_v62 = vsel %vm218_vm0, %v5521_v26, 0.0  ;;  %v9957_v51 = vld [vmem:[#allocation5_spill] sm:$0xff] }
 0x910   :  { %v5392_v47 = vadd.f32 %v9303_v44, %v5257_v39  ;;  %v5260_v32 = vadd.f32 %v7456_v23, %v9208_v63  ;;  %v5251_v36 = vpop.f32.mrb[103].mxu1  ;;  %v5666_v48 = vsel %vm218_vm0, %v5524_v46, 0.0 }
 0x911   :  { %v5390_v59 = vadd.f32 %v9303_v44, %v5249_v14  ;;  %v5252_v27 = vadd.f32 %v5251_v36, %v9210_v7  ;;  %5667 = vadd.xlane.f32.xlu1 %v5666_v48  ;;  %v5660_v38 = vsel %vm218_vm0, %v5522_v9, 0.0 }
 0x912   :  { %v5456_v56 = vmax.f32 %v5392_v47, 0.0  ;;  %v5393_v17 = vadd.f32 %v9303_v44, %v5260_v32 }
 0x913   :  { %v5454_v18 = vmax.f32 %v5390_v59, 0.0  ;;  %v5391_v15 = vadd.f32 %v9303_v44, %v5252_v27  ;;  %5658 = vadd.xlane.f32.xlu0 %v5657_v62  ;;  %v9958_v27 = vld [vmem:[#allocation6_spill] sm:$0xff] }
 0x914   :  { %v5457_v63 = vmax.f32 %v5393_v17, 0.0  ;;  %v5527_v35 = vmul.f32 %v9310_v34, %v5456_v56 }
 0x915   :  { %v5455_v57 = vmax.f32 %v5391_v15, 0.0  ;;  %v7459_v24 = vpop.f32.mrb[104].mxu1  ;;  %5661 = vadd.xlane.f32.xlu1 %v5660_v38  ;;  %v5525_v21 = vmul.f32 %v9310_v34, %v5454_v18 }
 0x916   :  { %v5273_v7 = vadd.f32 %v7459_v24, %v9212_v58  ;;  %v5264_v60 = vpop.f32.mrb[105].mxu1  ;;  %v5675_v31 = vsel %vm218_vm0, %v5527_v35, 0.0  ;;  %v5528_v61 = vmul.f32 %v9310_v34, %v5457_v63  ;;  %v9959_v63 = vld [vmem:[#allocation7_spill] sm:$0xff]  ;;  %v9960_v24 = vld [vmem:[#allocation8_spill] sm:$0xff] }
 0x917   :  { %v5265_v41 = vadd.f32 %v5264_v60, %v9216_v30  ;;  %v7460_v2 = vpop.f32.mrb[106].mxu1  ;;  %5676 = vadd.xlane.f32.xlu0 %v5675_v31  ;;  %v5526_v58 = vmul.f32 %v9310_v34, %v5455_v57  ;;  %v5669_v30 = vsel %vm218_vm0, %v5525_v21, 0.0 }
 0x918   :  { %v5396_v50 = vadd.f32 %v9303_v44, %v5273_v7  ;;  %v5276_v6 = vadd.f32 %v7460_v2, %v9220_v5  ;;  %v5267_v22 = vpop.f32.mrb[107].mxu1  ;;  %v5678_v3 = vsel %vm218_vm0, %v5528_v61, 0.0 }
 0x919   :  { %v5394_v11 = vadd.f32 %v9303_v44, %v5265_v41  ;;  %v5268_v37 = vadd.f32 %v5267_v22, %v9222_v43  ;;  %5679 = vadd.xlane.f32.xlu1 %v5678_v3  ;;  %v5672_v49 = vsel %vm218_vm0, %v5526_v58, 0.0  ;;  %v9961_v41 = vld [vmem:[#allocation9_spill] sm:$0xff] }
 0x91a   :  { %v5460_v13 = vmax.f32 %v5396_v50, 0.0  ;;  %v5397_v40 = vadd.f32 %v9303_v44, %v5276_v6 }
 0x91b   :  { %v5458_v25 = vmax.f32 %v5394_v11, 0.0  ;;  %v5395_v20 = vadd.f32 %v9303_v44, %v5268_v37  ;;  %5670 = vadd.xlane.f32.xlu0 %v5669_v30 }
 0x91c   :  { %v5461_v5 = vmax.f32 %v5397_v40, 0.0  ;;  %v5531_v33 = vmul.f32 %v9310_v34, %v5460_v13 }
 0x91d   :  { %v5459_v8 = vmax.f32 %v5395_v20, 0.0  ;;  %v7463_v29 = vpop.f32.mrb[108].mxu1  ;;  %5673 = vadd.xlane.f32.xlu1 %v5672_v49  ;;  %v5529_v45 = vmul.f32 %v9310_v34, %v5458_v25  ;;  %v9962_v25 = vld [vmem:[#allocation10_spill] sm:$0xff] }
 0x91e   :  { %v5289_v43 = vadd.f32 %v7463_v29, %v9224_v53  ;;  %v5280_v19 = vpop.f32.mrb[109].mxu1  ;;  %v5687_v4 = vsel %vm218_vm0, %v5531_v33, 0.0  ;;  %v5532_v52 = vmul.f32 %v9310_v34, %v5461_v5  ;;  %v9963_v29 = vld [vmem:[#allocation11_spill] sm:$0xff] }
 0x91f   :  { %v5281_v1 = vadd.f32 %v5280_v19, %v9955_v28  ;;  %v7464_v54 = vpop.f32.mrb[110].mxu1  ;;  %5688 = vadd.xlane.f32.xlu0 %v5687_v4  ;;  %v5530_v53 = vmul.f32 %v9310_v34, %v5459_v8  ;;  %v5681_v14 = vsel %vm218_vm0, %v5529_v45, 0.0 }
 0x920   :  { %v5400_v12 = vadd.f32 %v9303_v44, %v5289_v43  ;;  %v5292_v16 = vadd.f32 %v7464_v54, %v9956_v55  ;;  %v5283_v42 = vpop.f32.mrb[111].mxu1  ;;  %v5690_v10 = vsel %vm218_vm0, %v5532_v52, 0.0  ;;  %v9964_v52 = vld [vmem:[#allocation12_spill] sm:$0xff]  ;;  %v9965_v55 = vld [vmem:[#allocation13_spill] sm:$0xff] }
 0x921   :  { %v5398_v39 = vadd.f32 %v9303_v44, %v5281_v1  ;;  %v5284_v0 = vadd.f32 %v5283_v42, %v9957_v51  ;;  %5691 = vadd.xlane.f32.xlu1 %v5690_v10  ;;  %v5684_v36 = vsel %vm218_vm0, %v5530_v53, 0.0 }
 0x922   :  { %v5464_v46 = vmax.f32 %v5400_v12, 0.0  ;;  %v5401_v26 = vadd.f32 %v9303_v44, %v5292_v16 }
 0x923   :  { %v5462_v23 = vmax.f32 %v5398_v39, 0.0  ;;  %v5399_v47 = vadd.f32 %v9303_v44, %v5284_v0  ;;  %5682 = vadd.xlane.f32.xlu0 %v5681_v14 }
 0x924   :  { %v5465_v32 = vmax.f32 %v5401_v26, 0.0  ;;  %v5535_v48 = vmul.f32 %v9310_v34, %v5464_v46 }
 0x925   :  { %v5463_v9 = vmax.f32 %v5399_v47, 0.0  ;;  %v7467_v59 = vpop.f32.mrb[112].mxu1  ;;  %5685 = vadd.xlane.f32.xlu1 %v5684_v36  ;;  %v5533_v15 = vmul.f32 %v9310_v34, %v5462_v23  ;;  %v9966_v47 = vld [vmem:[#allocation14_spill] sm:$0xff] }
 0x926   :  { %v5305_v56 = vadd.f32 %v7467_v59, %v9958_v27  ;;  %v5296_v17 = vpop.f32.mrb[113].mxu1  ;;  %v5699_v62 = vsel %vm218_vm0, %v5535_v48, 0.0  ;;  %v5536_v18 = vmul.f32 %v9310_v34, %v5465_v32  ;;  %v9967_v27 = vld [vmem:[#allocation15_spill] sm:$0xff] }
 0x927   :  { %v5297_v38 = vadd.f32 %v5296_v17, %v9959_v63  ;;  %v7468_v35 = vpop.f32.mrb[114].mxu1  ;;  %5700 = vadd.xlane.f32.xlu0 %v5699_v62  ;;  %v5534_v61 = vmul.f32 %v9310_v34, %v5463_v9  ;;  %v5693_v22 = vsel %vm218_vm0, %v5533_v15, 0.0 }
 0x928   :  { %v5404_v57 = vadd.f32 %v9303_v44, %v5305_v56  ;;  %v5308_v7 = vadd.f32 %v7468_v35, %v9960_v24  ;;  %v5299_v60 = vpop.f32.mrb[115].mxu1  ;;  %v5702_v31 = vsel %vm218_vm0, %v5536_v18, 0.0  ;;  %v9968_v18 = vld [vmem:[#allocation16_spill] sm:$0xff]  ;;  %v9969_v24 = vld [vmem:[#allocation17_spill] sm:$0xff] }
 0x929   :  { %v5402_v21 = vadd.f32 %v9303_v44, %v5297_v38  ;;  %v5300_v2 = vadd.f32 %v5299_v60, %v9961_v41  ;;  %5703 = vadd.xlane.f32.xlu1 %v5702_v31  ;;  %v5696_v37 = vsel %vm218_vm0, %v5534_v61, 0.0 }
 0x92a   :  { %v5468_v50 = vmax.f32 %v5404_v57, 0.0  ;;  %v5405_v6 = vadd.f32 %v9303_v44, %v5308_v7 }
 0x92b   :  { %v5466_v3 = vmax.f32 %v5402_v21, 0.0  ;;  %v5403_v58 = vadd.f32 %v9303_v44, %v5300_v2  ;;  %5694 = vadd.xlane.f32.xlu0 %v5693_v22 }
 0x92c   :  { %v5469_v11 = vmax.f32 %v5405_v6, 0.0  ;;  %v5539_v13 = vmul.f32 %v9310_v34, %v5468_v50 }
 0x92d   :  { %v5467_v40 = vmax.f32 %v5403_v58, 0.0  ;;  %v7471_v30 = vpop.f32.mrb[116].mxu1  ;;  %5697 = vadd.xlane.f32.xlu1 %v5696_v37  ;;  %v5537_v8 = vmul.f32 %v9310_v34, %v5466_v3 }
 0x92e   :  { %v5321_v20 = vadd.f32 %v7471_v30, %v9962_v25  ;;  %v5312_v5 = vpop.f32.mrb[117].mxu1  ;;  %v5711_v49 = vsel %vm218_vm0, %v5539_v13, 0.0  ;;  %v5540_v33 = vmul.f32 %v9310_v34, %v5469_v11  ;;  %v9565_v30 = vld [vmem:[#allocation2] ss:$0 sm:$0xff] }
 0x92f   :  { %v5313_v43 = vadd.f32 %v5312_v5, %v9963_v29  ;;  %v7472_v19 = vpop.f32.mrb[118].mxu1  ;;  %5712 = vadd.xlane.f32.xlu0 %v5711_v49  ;;  %v5538_v54 = vmul.f32 %v9310_v34, %v5467_v40  ;;  %v5705_v53 = vsel %vm218_vm0, %v5537_v8, 0.0 }
 0x930   :  { %v5408_v4 = vadd.f32 %v9303_v44, %v5321_v20  ;;  %v5324_v45 = vadd.f32 %v7472_v19, %v9964_v52  ;;  %v5315_v28 = vpop.f32.mrb[119].mxu1  ;;  %v5714_v1 = vsel %vm218_vm0, %v5540_v33, 0.0 }
 0x931   :  { %v5406_v12 = vadd.f32 %v9303_v44, %v5313_v43  ;;  %v5316_v16 = vadd.f32 %v5315_v28, %v9965_v55  ;;  %5715 = vadd.xlane.f32.xlu1 %v5714_v1  ;;  %v5708_v46 = vsel %vm218_vm0, %v5538_v54, 0.0 }
 0x932   :  { %v5472_v42 = vmax.f32 %v5408_v4, 0.0  ;;  %v5409_v10 = vadd.f32 %v9303_v44, %v5324_v45 }
 0x933   :  { %v5470_v39 = vmax.f32 %v5406_v12, 0.0  ;;  %v5407_v51 = vadd.f32 %v9303_v44, %v5316_v16  ;;  %5706 = vadd.xlane.f32.xlu0 %v5705_v53 }
 0x934   :  { %v5473_v0 = vmax.f32 %v5409_v10, 0.0  ;;  %v5543_v26 = vmul.f32 %v9310_v34, %v5472_v42 }
 0x935   :  { %v5471_v14 = vmax.f32 %v5407_v51, 0.0  ;;  %5709 = vadd.xlane.f32.xlu1 %v5708_v46  ;;  %v7475_v23 = vpop.f32.mrb[120].mxu1  ;;  %v5541_v59 = vmul.f32 %v9310_v34, %v5470_v39 }
 0x936   :  { %v5337_v32 = vadd.f32 %v7475_v23, %v9966_v47  ;;  %v5328_v36 = vpop.f32.mrb[121].mxu1  ;;  %v5723_v48 = vsel %vm218_vm0, %v5543_v26, 0.0  ;;  %v5544_v9 = vmul.f32 %v9310_v34, %v5473_v0 }
 0x937   :  { %v5329_v56 = vadd.f32 %v5328_v36, %v9967_v27  ;;  %5724 = vadd.xlane.f32.xlu0 %v5723_v48  ;;  %v7476_v17 = vpop.f32.mrb[122].mxu1  ;;  %v5542_v35 = vmul.f32 %v9310_v34, %v5471_v14  ;;  %v5717_v31 = vsel %vm218_vm0, %v5541_v59, 0.0 }
 0x938   :  { %v5412_v62 = vadd.f32 %v9303_v44, %v5337_v32  ;;  %v5340_v15 = vadd.f32 %v7476_v17, %v9968_v18  ;;  %v5331_v63 = vpop.f32.mrb[123].mxu1  ;;  %v5726_v38 = vsel %vm218_vm0, %v5544_v9, 0.0 }
 0x939   :  { %v5410_v57 = vadd.f32 %v9303_v44, %v5329_v56  ;;  %v5332_v7 = vadd.f32 %v5331_v63, %v9969_v24  ;;  %5727 = vadd.xlane.f32.xlu1 %v5726_v38  ;;  %v5720_v2 = vsel %vm218_vm0, %v5542_v35, 0.0 }
 0x93a   :  { %v5413_v60 = vadd.f32 %v9303_v44, %v5340_v15  ;;  %v5476_v61 = vmax.f32 %v5412_v62, 0.0 }
 0x93b   :  { %v5474_v21 = vmax.f32 %v5410_v57, 0.0  ;;  %v5411_v41 = vadd.f32 %v9303_v44, %v5332_v7  ;;  %5718 = vadd.xlane.f32.xlu0 %v5717_v31 }
 0x93c   :  { %v5477_v50 = vmax.f32 %v5413_v60, 0.0  ;;  %v5547_v11 = vmul.f32 %v9310_v34, %v5476_v61 }
 0x93d   :  { %v5475_v6 = vmax.f32 %v5411_v41, 0.0  ;;  %5721 = vadd.xlane.f32.xlu1 %v5720_v2  ;;  %v5545_v22 = vmul.f32 %v9310_v34, %v5474_v21 }
 0x93e   :  { %v5548_v13 = vmul.f32 %v9310_v34, %v5477_v50  ;;  %v5735_v44 = vsel %vm218_vm0, %v5547_v11, 0.0 }
 0x93f   :  { %v5729_v3 = vsel %vm218_vm0, %v5545_v22, 0.0  ;;  %v5546_v58 = vmul.f32 %v9310_v34, %v5475_v6 }
 0x940   :  { %5730 = vadd.xlane.f32.xlu0 %v5729_v3  ;;  %v5738_v40 = vsel %vm218_vm0, %v5548_v13, 0.0 }
 0x941   :  { %v5732_v37 = vsel %vm218_vm0, %v5546_v58, 0.0 }
 0x942   :  { %5733 = vadd.xlane.f32.xlu1 %v5732_v37 }
 0x944   :  { %5736 = vadd.xlane.f32.xlu0 %v5735_v44 }
 0x946   :  { %5739 = vadd.xlane.f32.xlu1 %v5738_v40 }
 0x952   :  { %v5557_v25 = vpop.xlane.xlu1 %5556 }
 0x953   :  { %v5750_v20 = vadd.f32 %v9565_v30, %v5557_v25  ;;  %v5551_v5 = vpop.xlane.xlu0 %5550 }
 0x954   :  { %v5748_v49 = vadd.f32 %v9565_v30, %v5551_v5 }
 0x955   :  { %5815 = vst.msk [vmem:[%s9912_s25 + $0x10] sm:$0xff] %vm5812_vm1, %v5750_v20 }
 0x956   :  { %5813 = vst.msk [vmem:[%s9912_s25] sm:$0xff] %vm5812_vm1, %v5748_v49  ;;  %v5560_v34 = vpop.xlane.xlu1 %5559 }
 0x957   :  { %v5751_v33 = vadd.f32 %v9565_v30, %v5560_v34  ;;  %v5554_v8 = vpop.xlane.xlu0 %5553 }
 0x958   :  { %v5749_v29 = vadd.f32 %v9565_v30, %v5554_v8 }
 0x959   :  { %5816 = vst.msk [vmem:[%s9912_s25 + $0x18] sm:$0xff] %vm5812_vm1, %v5751_v33 }
 0x95a   :  { %5814 = vst.msk [vmem:[%s9912_s25 + $0x8] sm:$0xff] %vm5812_vm1, %v5749_v29 }
 0x95c   :  { %v5569_v43 = vpop.xlane.xlu0 %5568 }
 0x95d   :  { %v5754_v19 = vadd.f32 %v9565_v30, %v5569_v43 }
 0x95e   :  { %v5572_v4 = vpop.xlane.xlu1 %5571 }
 0x95f   :  { %5819 = vst.msk [vmem:[%s9912_s25 + $0x30] sm:$0xff] %vm5812_vm1, %v5754_v19  ;;  %v5755_v52 = vadd.f32 %v9565_v30, %v5572_v4 }
 0x960   :  { %v5563_v45 = vpop.xlane.xlu0 %5562 }
 0x961   :  { %5820 = vst.msk [vmem:[%s9912_s25 + $0x38] sm:$0xff] %vm5812_vm1, %v5755_v52  ;;  %v5752_v28 = vadd.f32 %v9565_v30, %v5563_v45 }
 0x962   :  { %v5566_v1 = vpop.xlane.xlu1 %5565 }
 0x963   :  { %5817 = vst.msk [vmem:[%s9912_s25 + $0x20] sm:$0xff] %vm5812_vm1, %v5752_v28  ;;  %v5753_v54 = vadd.f32 %v9565_v30, %v5566_v1 }
 0x964   :  { %v5581_v12 = vpop.xlane.xlu0 %5580 }
 0x965   :  { %5818 = vst.msk [vmem:[%s9912_s25 + $0x28] sm:$0xff] %vm5812_vm1, %v5753_v54  ;;  %v5758_v55 = vadd.f32 %v9565_v30, %v5581_v12 }
 0x966   :  { %v5584_v16 = vpop.xlane.xlu1 %5583 }
 0x967   :  { %5823 = vst.msk [vmem:[%s9912_s25 + $0x50] sm:$0xff] %vm5812_vm1, %v5758_v55  ;;  %v5759_v42 = vadd.f32 %v9565_v30, %v5584_v16 }
 0x968   :  { %v5575_v10 = vpop.xlane.xlu0 %5574 }
 0x969   :  { %5824 = vst.msk [vmem:[%s9912_s25 + $0x58] sm:$0xff] %vm5812_vm1, %v5759_v42  ;;  %v5756_v53 = vadd.f32 %v9565_v30, %v5575_v10 }
 0x96a   :  { %v5578_v39 = vpop.xlane.xlu1 %5577 }
 0x96b   :  { %5821 = vst.msk [vmem:[%s9912_s25 + $0x40] sm:$0xff] %vm5812_vm1, %v5756_v53  ;;  %v5757_v51 = vadd.f32 %v9565_v30, %v5578_v39 }
 0x96c   :  { %v5593_v0 = vpop.xlane.xlu0 %5592 }
 0x96d   :  { %5822 = vst.msk [vmem:[%s9912_s25 + $0x48] sm:$0xff] %vm5812_vm1, %v5757_v51  ;;  %v5762_v46 = vadd.f32 %v9565_v30, %v5593_v0 }
 0x96e   :  { %v5596_v26 = vpop.xlane.xlu1 %5595 }
 0x96f   :  { %5827 = vst.msk [vmem:[%s9912_s25 + $0x70] sm:$0xff] %vm5812_vm1, %v5762_v46  ;;  %v5763_v14 = vadd.f32 %v9565_v30, %v5596_v26 }
 0x970   :  { %v5587_v23 = vpop.xlane.xlu0 %5586 }
 0x971   :  { %5828 = vst.msk [vmem:[%s9912_s25 + $0x78] sm:$0xff] %vm5812_vm1, %v5763_v14  ;;  %v5760_v47 = vadd.f32 %v9565_v30, %v5587_v23 }
 0x972   :  { %v5590_v32 = vpop.xlane.xlu1 %5589 }
 0x973   :  { %5825 = vst.msk [vmem:[%s9912_s25 + $0x60] sm:$0xff] %vm5812_vm1, %v5760_v47  ;;  %v5761_v36 = vadd.f32 %v9565_v30, %v5590_v32 }
 0x974   :  { %v5605_v48 = vpop.xlane.xlu0 %5604 }
 0x975   :  { %5826 = vst.msk [vmem:[%s9912_s25 + $0x68] sm:$0xff] %vm5812_vm1, %v5761_v36  ;;  %v5766_v9 = vadd.f32 %v9565_v30, %v5605_v48 }
 0x976   :  { %v5608_v59 = vpop.xlane.xlu1 %5607 }
 0x977   :  { %5831 = vst.msk [vmem:[%s9912_s25 + $0x90] sm:$0xff] %vm5812_vm1, %v5766_v9  ;;  %v5767_v27 = vadd.f32 %v9565_v30, %v5608_v59 }
 0x978   :  { %v5599_v56 = vpop.xlane.xlu0 %5598 }
 0x979   :  { %5832 = vst.msk [vmem:[%s9912_s25 + $0x98] sm:$0xff] %vm5812_vm1, %v5767_v27  ;;  %v5764_v17 = vadd.f32 %v9565_v30, %v5599_v56 }
 0x97a   :  { %v5602_v62 = vpop.xlane.xlu1 %5601 }
 0x97b   :  { %5829 = vst.msk [vmem:[%s9912_s25 + $0x80] sm:$0xff] %vm5812_vm1, %v5764_v17  ;;  %v5765_v18 = vadd.f32 %v9565_v30, %v5602_v62 }
 0x97c   :  { %v5617_v15 = vpop.xlane.xlu0 %5616 }
 0x97d   :  { %5830 = vst.msk [vmem:[%s9912_s25 + $0x88] sm:$0xff] %vm5812_vm1, %v5765_v18  ;;  %v5770_v63 = vadd.f32 %v9565_v30, %v5617_v15 }
 0x97e   :  { %v5620_v38 = vpop.xlane.xlu1 %5619 }
 0x97f   :  { %5835 = vst.msk [vmem:[%s9912_s25 + $0xb0] sm:$0xff] %vm5812_vm1, %v5770_v63  ;;  %v5771_v35 = vadd.f32 %v9565_v30, %v5620_v38 }
 0x980   :  { %v5611_v57 = vpop.xlane.xlu0 %5610 }
 0x981   :  { %5836 = vst.msk [vmem:[%s9912_s25 + $0xb8] sm:$0xff] %vm5812_vm1, %v5771_v35  ;;  %v5768_v24 = vadd.f32 %v9565_v30, %v5611_v57 }
 0x982   :  { %v5614_v7 = vpop.xlane.xlu1 %5613 }
 0x983   :  { %5833 = vst.msk [vmem:[%s9912_s25 + $0xa0] sm:$0xff] %vm5812_vm1, %v5768_v24  ;;  %v5769_v60 = vadd.f32 %v9565_v30, %v5614_v7 }
 0x984   :  { %v5629_v31 = vpop.xlane.xlu0 %5628 }
 0x985   :  { %5834 = vst.msk [vmem:[%s9912_s25 + $0xa8] sm:$0xff] %vm5812_vm1, %v5769_v60  ;;  %v5774_v61 = vadd.f32 %v9565_v30, %v5629_v31 }
 0x986   :  { %v5632_v21 = vpop.xlane.xlu1 %5631 }
 0x987   :  { %5839 = vst.msk [vmem:[%s9912_s25 + $0xd0] sm:$0xff] %vm5812_vm1, %v5774_v61  ;;  %v5775_v41 = vadd.f32 %v9565_v30, %v5632_v21 }
 0x988   :  { %v5623_v2 = vpop.xlane.xlu0 %5622 }
 0x989   :  { %5840 = vst.msk [vmem:[%s9912_s25 + $0xd8] sm:$0xff] %vm5812_vm1, %v5775_v41  ;;  %v5772_v50 = vadd.f32 %v9565_v30, %v5623_v2 }
 0x98a   :  { %v5626_v6 = vpop.xlane.xlu1 %5625 }
 0x98b   :  { %5837 = vst.msk [vmem:[%s9912_s25 + $0xc0] sm:$0xff] %vm5812_vm1, %v5772_v50  ;;  %v5773_v22 = vadd.f32 %v9565_v30, %v5626_v6 }
 0x98c   :  { %v5641_v3 = vpop.xlane.xlu0 %5640 }
 0x98d   :  { %5838 = vst.msk [vmem:[%s9912_s25 + $0xc8] sm:$0xff] %vm5812_vm1, %v5773_v22  ;;  %v5778_v58 = vadd.f32 %v9565_v30, %v5641_v3 }
 0x98e   :  { %v5644_v11 = vpop.xlane.xlu1 %5643 }
 0x98f   :  { %5843 = vst.msk [vmem:[%s9912_s25 + $0xf0] sm:$0xff] %vm5812_vm1, %v5778_v58  ;;  %v5779_v37 = vadd.f32 %v9565_v30, %v5644_v11 }
 0x990   :  { %v5635_v13 = vpop.xlane.xlu0 %5634 }
 0x991   :  { %5844 = vst.msk [vmem:[%s9912_s25 + $0xf8] sm:$0xff] %vm5812_vm1, %v5779_v37  ;;  %v5776_v44 = vadd.f32 %v9565_v30, %v5635_v13 }
 0x992   :  { %v5638_v40 = vpop.xlane.xlu1 %5637 }
 0x993   :  { %5841 = vst.msk [vmem:[%s9912_s25 + $0xe0] sm:$0xff] %vm5812_vm1, %v5776_v44  ;;  %v5777_v25 = vadd.f32 %v9565_v30, %v5638_v40 }
 0x994   :  { %v5653_v20 = vpop.xlane.xlu0 %5652 }
 0x995   :  { %5842 = vst.msk [vmem:[%s9912_s25 + $0xe8] sm:$0xff] %vm5812_vm1, %v5777_v25  ;;  %v5782_v5 = vadd.f32 %v9565_v30, %v5653_v20 }
 0x996   :  { %v5656_v49 = vpop.xlane.xlu1 %5655 }
 0x997   :  { %5847 = vst.msk [vmem:[%s9912_s25 + $0x110] sm:$0xff] %vm5812_vm1, %v5782_v5  ;;  %v5783_v34 = vadd.f32 %v9565_v30, %v5656_v49 }
 0x998   :  { %v5647_v33 = vpop.xlane.xlu0 %5646 }
 0x999   :  { %5848 = vst.msk [vmem:[%s9912_s25 + $0x118] sm:$0xff] %vm5812_vm1, %v5783_v34  ;;  %v5780_v8 = vadd.f32 %v9565_v30, %v5647_v33 }
 0x99a   :  { %v5650_v29 = vpop.xlane.xlu1 %5649 }
 0x99b   :  { %5845 = vst.msk [vmem:[%s9912_s25 + $0x100] sm:$0xff] %vm5812_vm1, %v5780_v8  ;;  %v5781_v43 = vadd.f32 %v9565_v30, %v5650_v29 }
 0x99c   :  { %v5665_v19 = vpop.xlane.xlu0 %5664 }
 0x99d   :  { %5846 = vst.msk [vmem:[%s9912_s25 + $0x108] sm:$0xff] %vm5812_vm1, %v5781_v43  ;;  %v5786_v4 = vadd.f32 %v9565_v30, %v5665_v19 }
 0x99e   :  { %v5668_v52 = vpop.xlane.xlu1 %5667 }
 0x99f   :  { %5851 = vst.msk [vmem:[%s9912_s25 + $0x130] sm:$0xff] %vm5812_vm1, %v5786_v4  ;;  %v5787_v45 = vadd.f32 %v9565_v30, %v5668_v52 }
 0x9a0   :  { %v5659_v28 = vpop.xlane.xlu0 %5658 }
 0x9a1   :  { %5852 = vst.msk [vmem:[%s9912_s25 + $0x138] sm:$0xff] %vm5812_vm1, %v5787_v45  ;;  %v5784_v1 = vadd.f32 %v9565_v30, %v5659_v28 }
 0x9a2   :  { %v5662_v54 = vpop.xlane.xlu1 %5661 }
 0x9a3   :  { %5849 = vst.msk [vmem:[%s9912_s25 + $0x120] sm:$0xff] %vm5812_vm1, %v5784_v1  ;;  %v5785_v12 = vadd.f32 %v9565_v30, %v5662_v54 }
 0x9a4   :  { %v5677_v55 = vpop.xlane.xlu0 %5676 }
 0x9a5   :  { %5850 = vst.msk [vmem:[%s9912_s25 + $0x128] sm:$0xff] %vm5812_vm1, %v5785_v12  ;;  %v5790_v16 = vadd.f32 %v9565_v30, %v5677_v55 }
 0x9a6   :  { %v5680_v42 = vpop.xlane.xlu1 %5679 }
 0x9a7   :  { %5855 = vst.msk [vmem:[%s9912_s25 + $0x150] sm:$0xff] %vm5812_vm1, %v5790_v16  ;;  %v5791_v10 = vadd.f32 %v9565_v30, %v5680_v42 }
 0x9a8   :  { %v5671_v53 = vpop.xlane.xlu0 %5670 }
 0x9a9   :  { %5856 = vst.msk [vmem:[%s9912_s25 + $0x158] sm:$0xff] %vm5812_vm1, %v5791_v10  ;;  %v5788_v39 = vadd.f32 %v9565_v30, %v5671_v53 }
 0x9aa   :  { %v5674_v51 = vpop.xlane.xlu1 %5673 }
 0x9ab   :  { %5853 = vst.msk [vmem:[%s9912_s25 + $0x140] sm:$0xff] %vm5812_vm1, %v5788_v39  ;;  %v5789_v0 = vadd.f32 %v9565_v30, %v5674_v51 }
 0x9ac   :  { %v5689_v46 = vpop.xlane.xlu0 %5688 }
 0x9ad   :  { %5854 = vst.msk [vmem:[%s9912_s25 + $0x148] sm:$0xff] %vm5812_vm1, %v5789_v0  ;;  %v5794_v26 = vadd.f32 %v9565_v30, %v5689_v46 }
 0x9ae   :  { %v5692_v14 = vpop.xlane.xlu1 %5691 }
 0x9af   :  { %5859 = vst.msk [vmem:[%s9912_s25 + $0x170] sm:$0xff] %vm5812_vm1, %v5794_v26  ;;  %v5795_v23 = vadd.f32 %v9565_v30, %v5692_v14 }
 0x9b0   :  { %v5683_v47 = vpop.xlane.xlu0 %5682 }
 0x9b1   :  { %5860 = vst.msk [vmem:[%s9912_s25 + $0x178] sm:$0xff] %vm5812_vm1, %v5795_v23  ;;  %v5792_v32 = vadd.f32 %v9565_v30, %v5683_v47 }
 0x9b2   :  { %v5686_v36 = vpop.xlane.xlu1 %5685 }
 0x9b3   :  { %5857 = vst.msk [vmem:[%s9912_s25 + $0x160] sm:$0xff] %vm5812_vm1, %v5792_v32  ;;  %v5793_v48 = vadd.f32 %v9565_v30, %v5686_v36 }
 0x9b4   :  { %v5701_v9 = vpop.xlane.xlu0 %5700 }
 0x9b5   :  { %5858 = vst.msk [vmem:[%s9912_s25 + $0x168] sm:$0xff] %vm5812_vm1, %v5793_v48  ;;  %v5798_v59 = vadd.f32 %v9565_v30, %v5701_v9 }
 0x9b6   :  { %v5704_v27 = vpop.xlane.xlu1 %5703 }
 0x9b7   :  { %5863 = vst.msk [vmem:[%s9912_s25 + $0x190] sm:$0xff] %vm5812_vm1, %v5798_v59  ;;  %v5799_v56 = vadd.f32 %v9565_v30, %v5704_v27 }
 0x9b8   :  { %v5695_v17 = vpop.xlane.xlu0 %5694 }
 0x9b9   :  { %5864 = vst.msk [vmem:[%s9912_s25 + $0x198] sm:$0xff] %vm5812_vm1, %v5799_v56  ;;  %v5796_v62 = vadd.f32 %v9565_v30, %v5695_v17 }
 0x9ba   :  { %v5698_v18 = vpop.xlane.xlu1 %5697 }
 0x9bb   :  { %5861 = vst.msk [vmem:[%s9912_s25 + $0x180] sm:$0xff] %vm5812_vm1, %v5796_v62  ;;  %v5797_v15 = vadd.f32 %v9565_v30, %v5698_v18 }
 0x9bc   :  { %v5713_v63 = vpop.xlane.xlu0 %5712 }
 0x9bd   :  { %5862 = vst.msk [vmem:[%s9912_s25 + $0x188] sm:$0xff] %vm5812_vm1, %v5797_v15  ;;  %v5802_v38 = vadd.f32 %v9565_v30, %v5713_v63 }
 0x9be   :  { %v5716_v35 = vpop.xlane.xlu1 %5715 }
 0x9bf   :  { %5867 = vst.msk [vmem:[%s9912_s25 + $0x1b0] sm:$0xff] %vm5812_vm1, %v5802_v38  ;;  %v5803_v57 = vadd.f32 %v9565_v30, %v5716_v35 }
 0x9c0   :  { %v5707_v24 = vpop.xlane.xlu0 %5706 }
 0x9c1   :  { %5868 = vst.msk [vmem:[%s9912_s25 + $0x1b8] sm:$0xff] %vm5812_vm1, %v5803_v57  ;;  %v5800_v7 = vadd.f32 %v9565_v30, %v5707_v24 }
 0x9c2   :  { %v5710_v60 = vpop.xlane.xlu1 %5709 }
 0x9c3   :  { %5865 = vst.msk [vmem:[%s9912_s25 + $0x1a0] sm:$0xff] %vm5812_vm1, %v5800_v7  ;;  %v5801_v31 = vadd.f32 %v9565_v30, %v5710_v60 }
 0x9c4   :  { %v5725_v61 = vpop.xlane.xlu0 %5724 }
 0x9c5   :  { %5866 = vst.msk [vmem:[%s9912_s25 + $0x1a8] sm:$0xff] %vm5812_vm1, %v5801_v31  ;;  %v5806_v21 = vadd.f32 %v9565_v30, %v5725_v61 }
 0x9c6   :  { %v5728_v41 = vpop.xlane.xlu1 %5727 }
 0x9c7   :  { %5871 = vst.msk [vmem:[%s9912_s25 + $0x1d0] sm:$0xff] %vm5812_vm1, %v5806_v21  ;;  %v5807_v2 = vadd.f32 %v9565_v30, %v5728_v41 }
 0x9c8   :  { %v5719_v50 = vpop.xlane.xlu0 %5718 }
 0x9c9   :  { %5872 = vst.msk [vmem:[%s9912_s25 + $0x1d8] sm:$0xff] %vm5812_vm1, %v5807_v2  ;;  %v5804_v6 = vadd.f32 %v9565_v30, %v5719_v50 }
 0x9ca   :  { %v5722_v22 = vpop.xlane.xlu1 %5721 }
 0x9cb   :  { %5869 = vst.msk [vmem:[%s9912_s25 + $0x1c0] sm:$0xff] %vm5812_vm1, %v5804_v6  ;;  %v5805_v3 = vadd.f32 %v9565_v30, %v5722_v22 }
 0x9cd   :  { %5870 = vst.msk [vmem:[%s9912_s25 + $0x1c8] sm:$0xff] %vm5812_vm1, %v5805_v3  ;;  %v5731_v58 = vpop.xlane.xlu0 %5730 }
 0x9ce   :  { %v5808_v11 = vadd.f32 %v9565_v30, %v5731_v58 }
 0x9cf   :  { %v5734_v37 = vpop.xlane.xlu1 %5733 }
 0x9d0   :  { %5873 = vst.msk [vmem:[%s9912_s25 + $0x1e0] sm:$0xff] %vm5812_vm1, %v5808_v11  ;;  %v5809_v13 = vadd.f32 %v9565_v30, %v5734_v37 }
 0x9d1   :  { %v5737_v44 = vpop.xlane.xlu0 %5736 }
 0x9d2   :  { %5874 = vst.msk [vmem:[%s9912_s25 + $0x1e8] sm:$0xff] %vm5812_vm1, %v5809_v13  ;;  %v5810_v40 = vadd.f32 %v9565_v30, %v5737_v44 }
 0x9d3   :  { %v5740_v25 = vpop.xlane.xlu1 %5739 }
 0x9d4   :  { %5875 = vst.msk [vmem:[%s9912_s25 + $0x1f0] sm:$0xff] %vm5812_vm1, %v5810_v40  ;;  %v5811_v20 = vadd.f32 %v9565_v30, %v5740_v25 }
 0x9d6   :  { %5876 = vst.msk [vmem:[%s9912_s25 + $0x1f8] sm:$0xff] %vm5812_vm1, %v5811_v20 }

</bundles_post_ra>
